<compile_context>
chip_gen: v6e
topology: v6e:2x2x1
jax: 0.10.0
libtpu: 0.0.40
codegen_flags: <defaults>
</compile_context>

<pallas_src>
import functools
import math

import jax
import jax.numpy as jnp
import numpy as np
from jax.experimental import pallas as pl
from jax.experimental.pallas import tpu as pltpu


# ----------------------------------------------------------------------------
# Pallas kernel: one (direction, time-block) grid step of a masked LSTM layer.
# ----------------------------------------------------------------------------
def _lstm_layer_kernel(x_ref, m_ref, wx_ref, wh_ref, b_ref, h0_ref, c0_ref,
                       out_ref, hn_ref, cn_ref, h_sc, c_sc,
                       *, tt, hidden, batch, fw_last_local):
    """Grid = (num_dirs, nT).  Recurrence carried in VMEM scratch across nT.

    x_ref : (tt*B, D)   time block, rows ordered [t0_b0, t0_b1, t1_b0, ...]
    m_ref : (tt, B, 1)  padding masks for the block
    wx_ref: (D, 4H)     fused-gate input projection (lane-dense)
    wh_ref: (H, 4H)     fused-gate recurrent projection
    b_ref : (1, 4H)     b_ih + b_hh
    out_ref: (B, tt*H)  lane-dense output slab; columns s*H:(s+1)*H = step s
    hn_ref/cn_ref: (B, H) final states for this direction
    """
    d = pl.program_id(0)          # direction: 0 = forward, 1 = backward
    tb = pl.program_id(1)         # time-block index (grid order)
    n_tb = pl.num_programs(1)
    H = hidden
    B = batch
    G = 4 * H

    h0 = h0_ref[...].astype(jnp.float32)
    c0 = c0_ref[...].astype(jnp.float32)

    @pl.when(tb == 0)
    def _():
        h_sc[...] = h0
        c_sc[...] = c0

    wh = wh_ref[...]              # (H, 4H), loaded once per block

    # Hoisted input projection + bias: one (tt*B, D) x (D, 4H) MXU dot per
    # time block (bias broadcast once), shared by both direction branches.
    gx = (jnp.dot(x_ref[...].astype(jnp.float32), wx_ref[...],
                  preferred_element_type=jnp.float32)
          + b_ref[...])           # (tt*B, 4H)

    def cell(s, h_prev, c_prev):
        """One LSTM step at static local time `s` within the block."""
        # NOTE: keeping Wh resident via pltpu.matmul_push_rhs/acc_lhs/pop would
        # save tt-1 weight pushes; skipped here for lowering portability.
        gates = (gx[s * B:(s + 1) * B, :]
                 + jnp.dot(h_prev, wh, preferred_element_type=jnp.float32))
        if G <= 128:
            # 4H fits a single 128-lane vreg: full-slab EUP passes.
            sig = jax.nn.sigmoid(gates)
            tnh = jnp.tanh(gates)
            i_g, f_g, o_g = sig[:, :H], sig[:, H:2 * H], sig[:, 3 * H:]
            g_g = tnh[:, 2 * H:3 * H]
        else:
            # Larger H: run each transcendental only on the gates that need it.
            i_g = jax.nn.sigmoid(gates[:, :H])
            f_g = jax.nn.sigmoid(gates[:, H:2 * H])
            g_g = jnp.tanh(gates[:, 2 * H:3 * H])
            o_g = jax.nn.sigmoid(gates[:, 3 * H:])
        c_new = f_g * c_prev + i_g * g_g
        h_new = o_g * jnp.tanh(c_new)
        # Masked update (exact for m in {0,1}): masked/padded positions keep
        # the INITIAL state, matching the PyTorch CPG_LSTM semantics.  The
        # mask is broadcast to (B, H) once and reused for both updates.
        m_t = jnp.broadcast_to(m_ref[s].astype(jnp.float32), (B, H))
        h_out = h0 + (h_new - h0) * m_t
        c_out = c0 + (c_new - c0) * m_t
        # Lane-dense output: static column slice of the (B, tt*H) slab.
        out_ref[:, s * H:(s + 1) * H] = h_out.astype(out_ref.dtype)
        return h_out, c_out

    # Direction-specialized, fully static unrolled time loops.
    @pl.when(d == 0)
    def _forward():
        h, c = h_sc[...], c_sc[...]
        for s in range(tt):
            h, c = cell(s, h, c)
            if s == fw_last_local:              # static: last REAL timestep
                @pl.when(tb == n_tb - 1)
                def _capture(h_cap=h, c_cap=c):
                    hn_ref[...] = h_cap.astype(hn_ref.dtype)
                    cn_ref[...] = c_cap.astype(cn_ref.dtype)
        h_sc[...] = h
        c_sc[...] = c

    @pl.when(d == 1)
    def _backward():
        h, c = h_sc[...], c_sc[...]
        for s in range(tt):
            h, c = cell(tt - 1 - s, h, c)       # process block in reverse time
        h_sc[...] = h
        c_sc[...] = c

        @pl.when(tb == n_tb - 1)                # grid block nT-1 == time block 0
        def _():
            hn_ref[...] = h.astype(hn_ref.dtype)
            cn_ref[...] = c.astype(cn_ref.dtype)


def run_lstm_layer(x, masks, wx_stack, wh_stack, b_stack, h0, c0, *, max_tt=32):
    """Run one LSTM layer (all directions) with the Pallas kernel.

    x:        (T, B, D)             float32
    masks:    (T, B, 1)             float32
    wx_stack: (ndir, D, 4H)         x-projection weights  (== w_ih.T per dir)
    wh_stack: (ndir, H, 4H)         h-projection weights  (== w_hh.T per dir)
    b_stack:  (ndir, 1, 4H)         b_ih + b_hh per dir
    h0, c0:   (B, H)
    returns:  out (ndir, T, B, H), h_n (ndir, B, H), c_n (ndir, B, H)
    """
    T, B, D = x.shape
    ndir, _, G = wx_stack.shape
    H = G // 4

    # Timesteps per grid step.  If T is not a multiple of tt, pad the time axis
    # at the END with zero inputs / zero masks (inert steps); h_n for the
    # forward direction is captured at the last REAL step inside the kernel.
    tt = min(T, max_tt)
    nT = -(-T // tt)                 # ceil(T / tt)
    T_pad = nT * tt
    if T_pad != T:
        pad = T_pad - T
        x = jnp.pad(x, ((0, pad), (0, 0), (0, 0)))
        masks = jnp.pad(masks, ((0, pad), (0, 0), (0, 0)))
    x_r = x.reshape(nT, tt * B, D)   # contiguous reshape (no transpose)
    fw_last_local = (T - 1) % tt

    def t_eff(d, t):
        # forward: grid block t -> time block t ; backward: time block nT-1-t
        return t + d * (nT - 1 - 2 * t)

    kernel = functools.partial(_lstm_layer_kernel, tt=tt, hidden=H, batch=B,
                               fw_last_local=fw_last_local)

    out, h_n, c_n = pl.pallas_call(
        kernel,
        out_shape=(
            jax.ShapeDtypeStruct((ndir, nT, B, tt * H), x.dtype),
            jax.ShapeDtypeStruct((ndir, B, H), x.dtype),
            jax.ShapeDtypeStruct((ndir, B, H), x.dtype),
        ),
        grid_spec=pltpu.PrefetchScalarGridSpec(
            num_scalar_prefetch=0,
            grid=(ndir, nT),
            in_specs=[
                pl.BlockSpec((None, tt * B, D), lambda d, t: (t_eff(d, t), 0, 0)),  # x block
                pl.BlockSpec((tt, B, 1), lambda d, t: (t_eff(d, t), 0, 0)),         # mask block
                pl.BlockSpec((None, D, G), lambda d, t: (d, 0, 0)),                 # Wx (per dir)
                pl.BlockSpec((None, H, G), lambda d, t: (d, 0, 0)),                 # Wh (per dir)
                pl.BlockSpec((None, 1, G), lambda d, t: (d, 0, 0)),                 # bias (per dir)
                pl.BlockSpec((B, H), lambda d, t: (0, 0)),                          # h0
                pl.BlockSpec((B, H), lambda d, t: (0, 0)),                          # c0
            ],
            out_specs=[
                pl.BlockSpec((None, None, B, tt * H),
                             lambda d, t: (d, t_eff(d, t), 0, 0)),                  # lane-dense out
                pl.BlockSpec((None, B, H), lambda d, t: (d, 0, 0)),                 # h_n
                pl.BlockSpec((None, B, H), lambda d, t: (d, 0, 0)),                 # c_n
            ],
            scratch_shapes=[
                pltpu.VMEM((B, H), jnp.float32),                                    # h carry
                pltpu.VMEM((B, H), jnp.float32),                                    # c carry
            ],
        ),
        compiler_params=pltpu.CompilerParams(
            dimension_semantics=("parallel", "arbitrary")),
    )(x_r, masks, wx_stack, wh_stack, b_stack, h0, c0)

    # (ndir, nT, B, tt*H) -> (ndir, T, B, H): cheap XLA transpose outside the kernel.
    out = out.reshape(ndir, nT, B, tt, H).transpose(0, 1, 3, 2, 4)
    out = out.reshape(ndir, T_pad, B, H)[:, :T]
    return out, h_n, c_n


# ----------------------------------------------------------------------------
# CPG_LSTM module (parameters + forward), eval mode, batch_first=False.
# ----------------------------------------------------------------------------
class CPGLSTMPallas:
    def __init__(self, input_size, hidden_size, task_dim_size,
                 num_layers=1, bidirectional=False, seed=0, max_tt=32):
        self.input_size = input_size
        self.hidden_size = hidden_size
        self.task_dim_size = task_dim_size
        self.num_layers = num_layers
        self.bidirectional = bidirectional
        self.num_directions = 2 if bidirectional else 1
        self.max_tt = max_tt

        key = jax.random.PRNGKey(seed)
        self._names = []
        self._weights = []                       # original PyTorch-layout params
        self._layer_packed = []                  # kernel-ready layouts per layer
        self.fparam_indices = [-1] * num_layers
        self.bparam_indices = [-1] * num_layers

        def xavier(key, shape):
            # torch xavier_uniform_: fan_in = shape[1]*prod(shape[2:]),
            #                        fan_out = shape[0]*prod(shape[2:])
            recept = int(np.prod(shape[2:])) if len(shape) > 2 else 1
            fan_in = shape[1] * recept
            fan_out = shape[0] * recept
            bound = math.sqrt(6.0 / (fan_in + fan_out))
            return jax.random.uniform(key, shape, jnp.float32, -bound, bound)

        H, TD = hidden_size, task_dim_size
        for layer in range(num_layers):
            lin = input_size if layer == 0 else hidden_size * self.num_directions
            self.fparam_indices[layer] = len(self._weights)
            dir_wx, dir_wh, dir_b = [], [], []
            for prefix in (["f"] + (["b"] if bidirectional else [])):
                if prefix == "b":
                    self.bparam_indices[layer] = len(self._weights)
                key, k1, k2 = jax.random.split(key, 3)
                w_ih = xavier(k1, (4 * H, lin, TD))
                w_hh = xavier(k2, (4 * H, H, TD))
                b_ih = jnp.zeros((4 * H, TD), jnp.float32)
                b_hh = jnp.zeros((4 * H, TD), jnp.float32)
                self._names += [f"{prefix}weights_ih_l{layer}",
                                f"{prefix}weights_hh_l{layer}",
                                f"{prefix}bias_ih_l{layer}",
                                f"{prefix}bias_hh_l{layer}"]
                self._weights += [w_ih, w_hh, b_ih, b_hh]
                # Kernel-ready layout precomputed once at init (no per-forward
                # transposes / stacks): contract with task_emb -> (lin, 4H) etc.
                dir_wx.append(jnp.transpose(w_ih, (1, 0, 2)))   # (lin, 4H, TD)
                dir_wh.append(jnp.transpose(w_hh, (1, 0, 2)))   # (H, 4H, TD)
                dir_b.append(b_ih + b_hh)                       # (4H, TD)
            self._layer_packed.append((jnp.stack(dir_wx, 0),    # (ndir, lin, 4H, TD)
                                       jnp.stack(dir_wh, 0),    # (ndir, H, 4H, TD)
                                       jnp.stack(dir_b, 0)))    # (ndir, 4H, TD)

    def __call__(self, task_emb, x, masks, initial=None):
        """task_emb: (task_dim,), x: (T, B, D_in), masks: (T, B, 1)."""
        T, B, _ = x.shape
        H = self.hidden_size
        masks = masks.astype(jnp.float32)        # stays (T, B, 1): no H broadcast

        if initial is None:
            z = jnp.zeros((B, H), x.dtype)
            initial = (z, z)
        h0, c0 = initial

        te = task_emb.reshape(-1).astype(jnp.float32)

        # TODO(synk): training-mode dropout_in / dropout_out (drop_masks) not
        # implemented; this is the eval-mode forward pass.
        h_n, c_n = [], []
        cur = x
        for layer in range(self.num_layers):
            wx_p, wh_p, b_p = self._layer_packed[layer]
            # CPG: contract kernel-ready parameters with the task embedding.
            wx_stack = jnp.einsum('nlgt,t->nlg', wx_p, te)           # (ndir, lin, 4H)
            wh_stack = jnp.einsum('nhgt,t->nhg', wh_p, te)           # (ndir, H, 4H)
            b_stack = jnp.einsum('ngt,t->ng', b_p, te)[:, None, :]   # (ndir, 1, 4H)

            out, hn, cn = run_lstm_layer(cur, masks, wx_stack, wh_stack,
                                         b_stack, h0, c0, max_tt=self.max_tt)
            if self.bidirectional:
                cur = jnp.concatenate([out[0], out[1]], axis=2)
                h_n.append(jnp.concatenate([hn[0], hn[1]], axis=1))
                c_n.append(jnp.concatenate([cn[0], cn[1]], axis=1))
            else:
                cur = out[0]
                h_n.append(hn[0])
                c_n.append(cn[0])
        return cur, (jnp.stack(h_n, 0), jnp.stack(c_n, 0))


# ----------------------------------------------------------------------------
# Pure-JAX reference (mirrors the PyTorch code) for a correctness check.
# ----------------------------------------------------------------------------
def _ref_cell(x, hx, cx, w_ih, w_hh, b):
    gates = x @ w_ih.T + hx @ w_hh.T + b
    H = hx.shape[1]
    i = jax.nn.sigmoid(gates[:, :H])
    f = jax.nn.sigmoid(gates[:, H:2 * H])
    g = jnp.tanh(gates[:, 2 * H:3 * H])
    o = jax.nn.sigmoid(gates[:, 3 * H:])
    cy = f * cx + i * g
    hy = o * jnp.tanh(cy)
    return hy, cy


def _ref_direction(x, masks, w_ih, w_hh, b, h0, c0, reverse):
    T = x.shape[0]
    order = range(T - 1, -1, -1) if reverse else range(T)
    h, c = h0, c0
    outs = [None] * T
    for t in order:
        hn, cn = _ref_cell(x[t], h, c, w_ih, w_hh, b)
        m = masks[t]                       # (B, 1)
        hn = hn * m + h0 * (1 - m)
        cn = cn * m + c0 * (1 - m)
        outs[t] = hn
        h, c = hn, cn
    return jnp.stack(outs, 0), h, c


def reference_forward(model, task_emb, x, masks):
    T, B, _ = x.shape
    H = model.hidden_size
    z = jnp.zeros((B, H), x.dtype)
    te = task_emb.reshape(-1)
    all_w = [jnp.einsum('...t,t->...', w, te) for w in model._weights]
    cur = x
    h_n, c_n = [], []
    for layer in range(model.num_layers):
        fi = model.fparam_indices[layer]
        fo, fh, fc = _ref_direction(cur, masks, all_w[fi], all_w[fi + 1],
                                    all_w[fi + 2] + all_w[fi + 3], z, z, False)
        if model.bidirectional:
            bi = model.bparam_indices[layer]
            bo, bh, bc = _ref_direction(cur, masks, all_w[bi], all_w[bi + 1],
                                        all_w[bi + 2] + all_w[bi + 3], z, z, True)
            h_n.append(jnp.concatenate([fh, bh], 1))
            c_n.append(jnp.concatenate([fc, bc], 1))
            cur = jnp.concatenate([fo, bo], 2)
        else:
            h_n.append(fh); c_n.append(fc); cur = fo
    return cur, (jnp.stack(h_n, 0), jnp.stack(c_n, 0))


# ----------------------------------------------------------------------------
if __name__ == "__main__":
    T, B = 8, 2            # seq len, batch
    D_IN = 16              # input feature size
    H = 32                 # hidden size
    TASK = 4               # task embedding dim
    NUM_LAYERS = 2
    BIDIR = True

    key = jax.random.PRNGKey(0)
    k1, k2 = jax.random.split(key)
    x = jax.random.normal(k1, (T, B, D_IN), jnp.float32)
    task_emb = jax.random.normal(k2, (TASK,), jnp.float32)

    # masks (T, B, 1): batch element 1 padded after step 5
    masks_np = np.ones((T, B, 1), np.float32)
    masks_np[6:, 1, 0] = 0.0
    masks = jnp.asarray(masks_np)

    model = CPGLSTMPallas(D_IN, H, TASK, num_layers=NUM_LAYERS,
                          bidirectional=BIDIR, seed=0)

    out, (h_n, c_n) = model(task_emb, x, masks)
    out = jax.block_until_ready(out)
    h_n = jax.block_until_ready(h_n)
    c_n = jax.block_until_ready(c_n)

    assert out.shape == (T, B, H * (2 if BIDIR else 1))
    assert h_n.shape == (NUM_LAYERS, B, H * (2 if BIDIR else 1))
    assert c_n.shape == (NUM_LAYERS, B, H * (2 if BIDIR else 1))

    ref_out, (ref_h, ref_c) = reference_forward(model, task_emb, x, masks)
    np.testing.assert_allclose(np.asarray(out), np.asarray(ref_out),
                               rtol=1e-4, atol=1e-4)
    np.testing.assert_allclose(np.asarray(h_n), np.asarray(ref_h),
                               rtol=1e-4, atol=1e-4)
    np.testing.assert_allclose(np.asarray(c_n), np.asarray(ref_c),
                               rtol=1e-4, atol=1e-4)

    # --- second config: T not divisible by tt -> exercises the padded path ---
    T2 = 11
    k3, _ = jax.random.split(jax.random.PRNGKey(1))
    x2 = jax.random.normal(k3, (T2, B, D_IN), jnp.float32)
    m2_np = np.ones((T2, B, 1), np.float32)
    m2_np[9:, 1, 0] = 0.0
    m2 = jnp.asarray(m2_np)

    model2 = CPGLSTMPallas(D_IN, H, TASK, num_layers=1, bidirectional=True,
                           seed=1, max_tt=4)       # tt=4, nT=3, 1 padded step
    out2, (h2, c2) = model2(task_emb, x2, m2)
    out2 = jax.block_until_ready(out2)
    ref2, (rh2, rc2) = reference_forward(model2, task_emb, x2, m2)
    np.testing.assert_allclose(np.asarray(out2), np.asarray(ref2),
                               rtol=1e-4, atol=1e-4)
    np.testing.assert_allclose(np.asarray(h2), np.asarray(rh2),
                               rtol=1e-4, atol=1e-4)
    np.testing.assert_allclose(np.asarray(c2), np.asarray(rc2),
                               rtol=1e-4, atol=1e-4)

    print("KERNEL_OK")
</pallas_src>

<mosaic_0001>
module attributes {stable_mosaic.version = 11 : i64} {
  func.func @_lstm_layer_kernel(%arg0: i32, %arg1: i32, %arg2: memref<1x16x16xf32, #tpu.memory_space<vmem>>, %arg3: memref<8x2x1xf32, #tpu.memory_space<vmem>>, %arg4: memref<1x16x128xf32, #tpu.memory_space<vmem>>, %arg5: memref<1x32x128xf32, #tpu.memory_space<vmem>>, %arg6: memref<1x1x128xf32, #tpu.memory_space<vmem>>, %arg7: memref<2x32xf32, #tpu.memory_space<vmem>>, %arg8: memref<2x32xf32, #tpu.memory_space<vmem>>, %arg9: memref<1x1x2x256xf32, #tpu.memory_space<vmem>>, %arg10: memref<1x2x32xf32, #tpu.memory_space<vmem>>, %arg11: memref<1x2x32xf32, #tpu.memory_space<vmem>>, %arg12: memref<2x32xf32, #tpu.memory_space<vmem>>, %arg13: memref<2x32xf32, #tpu.memory_space<vmem>>) attributes {dimension_semantics = [#tpu.dimension_semantics<parallel>, #tpu.dimension_semantics<arbitrary>], iteration_bounds = array<i64: 2, 1>, scalar_prefetch = 0 : i64, scratch_operands = 2 : i64, tpu.core_type = #tpu.core_type<tc>, window_params = [{transform_indices = @transform_0, window_bounds = array<i64: 1, 16, 16>}, {transform_indices = @transform_1, window_bounds = array<i64: 8, 2, 1>}, {transform_indices = @transform_2, window_bounds = array<i64: 1, 16, 128>}, {transform_indices = @transform_3, window_bounds = array<i64: 1, 32, 128>}, {transform_indices = @transform_4, window_bounds = array<i64: 1, 1, 128>}, {pipeline_mode = #tpu.pipeline_mode<synchronous>, transform_indices = @transform_5, window_bounds = array<i64: 2, 32>}, {pipeline_mode = #tpu.pipeline_mode<synchronous>, transform_indices = @transform_6, window_bounds = array<i64: 2, 32>}, {transform_indices = @transform_7, window_bounds = array<i64: 1, 1, 2, 256>}, {transform_indices = @transform_8, window_bounds = array<i64: 1, 2, 32>}, {transform_indices = @transform_9, window_bounds = array<i64: 1, 2, 32>}]} {
    %c0 = arith.constant 0 : index
    %c0_0 = arith.constant 0 : index
    %0 = vector.load %arg7[%c0, %c0_0] : memref<2x32xf32, #tpu.memory_space<vmem>>, vector<2x32xf32>
    %c0_1 = arith.constant 0 : index
    %c0_2 = arith.constant 0 : index
    %1 = vector.load %arg8[%c0_1, %c0_2] : memref<2x32xf32, #tpu.memory_space<vmem>>, vector<2x32xf32>
    %c0_i32 = arith.constant 0 : i32
    %2 = arith.cmpi eq, %arg1, %c0_i32 : i32
    %3 = arith.extui %2 : i1 to i32
    %c0_i32_3 = arith.constant 0 : i32
    %4 = arith.cmpi ne, %3, %c0_i32_3 : i32
    scf.if %4 {
      %c0_19 = arith.constant 0 : index
      %c0_20 = arith.constant 0 : index
      %22 = vector.load %arg12[%c0_19, %c0_20] : memref<2x32xf32, #tpu.memory_space<vmem>>, vector<2x32xf32>
      tpu.vector_store %arg12[%c0_19, %c0_20], %0 {strides = array<i32>} : memref<2x32xf32, #tpu.memory_space<vmem>>, vector<2x32xf32>,
      %c0_21 = arith.constant 0 : index
      %c0_22 = arith.constant 0 : index
      %23 = vector.load %arg13[%c0_21, %c0_22] : memref<2x32xf32, #tpu.memory_space<vmem>>, vector<2x32xf32>
      tpu.vector_store %arg13[%c0_21, %c0_22], %1 {strides = array<i32>} : memref<2x32xf32, #tpu.memory_space<vmem>>, vector<2x32xf32>,
    } else {
    }
    %c0_4 = arith.constant 0 : index
    %c0_5 = arith.constant 0 : index
    %c0_6 = arith.constant 0 : index
    %5 = vector.load %arg5[%c0_4, %c0_5, %c0_6] : memref<1x32x128xf32, #tpu.memory_space<vmem>>, vector<1x32x128xf32>
    %6 = vector.shape_cast %5 : vector<1x32x128xf32> to vector<32x128xf32>
    %c0_7 = arith.constant 0 : index
    %c0_8 = arith.constant 0 : index
    %c0_9 = arith.constant 0 : index
    %7 = vector.load %arg2[%c0_7, %c0_8, %c0_9] : memref<1x16x16xf32, #tpu.memory_space<vmem>>, vector<1x16x16xf32>
    %8 = vector.shape_cast %7 : vector<1x16x16xf32> to vector<16x16xf32>
    %c0_10 = arith.constant 0 : index
    %c0_11 = arith.constant 0 : index
    %c0_12 = arith.constant 0 : index
    %9 = vector.load %arg4[%c0_10, %c0_11, %c0_12] : memref<1x16x128xf32, #tpu.memory_space<vmem>>, vector<1x16x128xf32>
    %10 = vector.shape_cast %9 : vector<1x16x128xf32> to vector<16x128xf32>
    %cst = arith.constant dense<0.000000e+00> : vector<16x128xf32>
    %11 = tpu.matmul %8, %10, %cst {dimension_numbers = #tpu.dot_dimension_numbers<[1], [0], [0], [1], [0, 0, 1, 1], [], []>} : vector<16x16xf32>, vector<16x128xf32>, vector<16x128xf32> -> vector<16x128xf32>
    %c0_13 = arith.constant 0 : index
    %c0_14 = arith.constant 0 : index
    %c0_15 = arith.constant 0 : index
    %12 = vector.load %arg6[%c0_13, %c0_14, %c0_15] : memref<1x1x128xf32, #tpu.memory_space<vmem>>, vector<1x1x128xf32>
    %13 = vector.shape_cast %12 : vector<1x1x128xf32> to vector<1x128xf32>
    %14 = vector.broadcast %13 : vector<1x128xf32> to vector<16x128xf32>
    %15 = arith.addf %11, %14 : vector<16x128xf32>
    %c0_i32_16 = arith.constant 0 : i32
    %16 = arith.cmpi eq, %arg0, %c0_i32_16 : i32
    %17 = arith.extui %16 : i1 to i32
    %c0_i32_17 = arith.constant 0 : i32
    %18 = arith.cmpi ne, %17, %c0_i32_17 : i32
    scf.if %18 {
      %c0_19 = arith.constant 0 : index
      %c0_20 = arith.constant 0 : index
      %22 = vector.load %arg12[%c0_19, %c0_20] : memref<2x32xf32, #tpu.memory_space<vmem>>, vector<2x32xf32>
      %c0_21 = arith.constant 0 : index
      %c0_22 = arith.constant 0 : index
      %23 = vector.load %arg13[%c0_21, %c0_22] : memref<2x32xf32, #tpu.memory_space<vmem>>, vector<2x32xf32>
      %24 = vector.extract_strided_slice %15 {offsets = [0, 0], sizes = [2, 128], strides = [1, 1]} : vector<16x128xf32> to vector<2x128xf32>
      %cst_23 = arith.constant dense<0.000000e+00> : vector<2x128xf32>
      %25 = tpu.matmul %22, %6, %cst_23 {dimension_numbers = #tpu.dot_dimension_numbers<[1], [0], [0], [1], [0, 0, 1, 1], [], []>} : vector<2x32xf32>, vector<32x128xf32>, vector<2x128xf32> -> vector<2x128xf32>
      %26 = arith.addf %24, %25 : vector<2x128xf32>
      %27 = arith.negf %26 : vector<2x128xf32>
      %28 = math.exp %27 : vector<2x128xf32>
      %cst_24 = arith.constant 1.000000e+00 : f32
      %29 = vector.broadcast %cst_24 : f32 to vector<2x128xf32>
      %30 = arith.addf %29, %28 : vector<2x128xf32>
      %31 = arith.divf %29, %30 : vector<2x128xf32>
      %32 = math.tanh %26 : vector<2x128xf32>
      %33 = vector.extract_strided_slice %31 {offsets = [0, 0], sizes = [2, 32], strides = [1, 1]} : vector<2x128xf32> to vector<2x32xf32>
      %34 = vector.extract_strided_slice %31 {offsets = [0, 32], sizes = [2, 32], strides = [1, 1]} : vector<2x128xf32> to vector<2x32xf32>
      %35 = vector.extract_strided_slice %31 {offsets = [0, 96], sizes = [2, 32], strides = [1, 1]} : vector<2x128xf32> to vector<2x32xf32>
      %36 = vector.extract_strided_slice %32 {offsets = [0, 64], sizes = [2, 32], strides = [1, 1]} : vector<2x128xf32> to vector<2x32xf32>
      %37 = arith.mulf %34, %23 : vector<2x32xf32>
      %38 = arith.mulf %33, %36 : vector<2x32xf32>
      %39 = arith.addf %37, %38 : vector<2x32xf32>
      %40 = math.tanh %39 : vector<2x32xf32>
      %41 = arith.mulf %35, %40 : vector<2x32xf32>
      %c0_25 = arith.constant 0 : index
      %c0_26 = arith.constant 0 : index
      %c0_27 = arith.constant 0 : index
      %42 = vector.load %arg3[%c0_25, %c0_26, %c0_27] : memref<8x2x1xf32, #tpu.memory_space<vmem>>, vector<1x2x1xf32>
      %43 = vector.shape_cast %42 : vector<1x2x1xf32> to vector<2x1xf32>
      %44 = vector.shape_cast %43 : vector<2x1xf32> to vector<2x1xf32>
      %45 = vector.broadcast %44 : vector<2x1xf32> to vector<2x32xf32>
      %46 = arith.subf %41, %0 : vector<2x32xf32>
      %47 = arith.mulf %46, %45 : vector<2x32xf32>
      %48 = arith.addf %0, %47 : vector<2x32xf32>
      %49 = arith.subf %39, %1 : vector<2x32xf32>
      %50 = arith.mulf %49, %45 : vector<2x32xf32>
      %51 = arith.addf %1, %50 : vector<2x32xf32>
      %c0_28 = arith.constant 0 : index
      %c0_29 = arith.constant 0 : index
      %c0_30 = arith.constant 0 : index
      %c0_31 = arith.constant 0 : index
      %52 = vector.load %arg9[%c0_28, %c0_29, %c0_30, %c0_31] : memref<1x1x2x256xf32, #tpu.memory_space<vmem>>, vector<1x1x2x32xf32>
      %53 = vector.shape_cast %52 : vector<1x1x2x32xf32> to vector<2x32xf32>
      %54 = vector.shape_cast %48 : vector<2x32xf32> to vector<1x1x2x32xf32>
      tpu.vector_store %arg9[%c0_28, %c0_29, %c0_30, %c0_31], %54 {strides = array<i32>} : memref<1x1x2x256xf32, #tpu.memory_space<vmem>>, vector<1x1x2x32xf32>,
      %55 = vector.extract_strided_slice %15 {offsets = [2, 0], sizes = [2, 128], strides = [1, 1]} : vector<16x128xf32> to vector<2x128xf32>
      %cst_32 = arith.constant dense<0.000000e+00> : vector<2x128xf32>
      %56 = tpu.matmul %48, %6, %cst_32 {dimension_numbers = #tpu.dot_dimension_numbers<[1], [0], [0], [1], [0, 0, 1, 1], [], []>} : vector<2x32xf32>, vector<32x128xf32>, vector<2x128xf32> -> vector<2x128xf32>
      %57 = arith.addf %55, %56 : vector<2x128xf32>
      %58 = arith.negf %57 : vector<2x128xf32>
      %59 = math.exp %58 : vector<2x128xf32>
      %cst_33 = arith.constant 1.000000e+00 : f32
      %60 = vector.broadcast %cst_33 : f32 to vector<2x128xf32>
      %61 = arith.addf %60, %59 : vector<2x128xf32>
      %62 = arith.divf %60, %61 : vector<2x128xf32>
      %63 = math.tanh %57 : vector<2x128xf32>
      %64 = vector.extract_strided_slice %62 {offsets = [0, 0], sizes = [2, 32], strides = [1, 1]} : vector<2x128xf32> to vector<2x32xf32>
      %65 = vector.extract_strided_slice %62 {offsets = [0, 32], sizes = [2, 32], strides = [1, 1]} : vector<2x128xf32> to vector<2x32xf32>
      %66 = vector.extract_strided_slice %62 {offsets = [0, 96], sizes = [2, 32], strides = [1, 1]} : vector<2x128xf32> to vector<2x32xf32>
      %67 = vector.extract_strided_slice %63 {offsets = [0, 64], sizes = [2, 32], strides = [1, 1]} : vector<2x128xf32> to vector<2x32xf32>
      %68 = arith.mulf %65, %51 : vector<2x32xf32>
      %69 = arith.mulf %64, %67 : vector<2x32xf32>
      %70 = arith.addf %68, %69 : vector<2x32xf32>
      %71 = math.tanh %70 : vector<2x32xf32>
      %72 = arith.mulf %66, %71 : vector<2x32xf32>
      %c1 = arith.constant 1 : index
      %c0_34 = arith.constant 0 : index
      %c0_35 = arith.constant 0 : index
      %73 = vector.load %arg3[%c1, %c0_34, %c0_35] : memref<8x2x1xf32, #tpu.memory_space<vmem>>, vector<1x2x1xf32>
      %74 = vector.shape_cast %73 : vector<1x2x1xf32> to vector<2x1xf32>
      %75 = vector.shape_cast %74 : vector<2x1xf32> to vector<2x1xf32>
      %76 = vector.broadcast %75 : vector<2x1xf32> to vector<2x32xf32>
      %77 = arith.subf %72, %0 : vector<2x32xf32>
      %78 = arith.mulf %77, %76 : vector<2x32xf32>
      %79 = arith.addf %0, %78 : vector<2x32xf32>
      %80 = arith.subf %70, %1 : vector<2x32xf32>
      %81 = arith.mulf %80, %76 : vector<2x32xf32>
      %82 = arith.addf %1, %81 : vector<2x32xf32>
      %c0_36 = arith.constant 0 : index
      %c0_37 = arith.constant 0 : index
      %c0_38 = arith.constant 0 : index
      %c32 = arith.constant 32 : index
      %83 = vector.load %arg9[%c0_36, %c0_37, %c0_38, %c32] : memref<1x1x2x256xf32, #tpu.memory_space<vmem>>, vector<1x1x2x32xf32>
      %84 = vector.shape_cast %83 : vector<1x1x2x32xf32> to vector<2x32xf32>
      %85 = vector.shape_cast %79 : vector<2x32xf32> to vector<1x1x2x32xf32>
      tpu.vector_store %arg9[%c0_36, %c0_37, %c0_38, %c32], %85 {strides = array<i32>} : memref<1x1x2x256xf32, #tpu.memory_space<vmem>>, vector<1x1x2x32xf32>,
      %86 = vector.extract_strided_slice %15 {offsets = [4, 0], sizes = [2, 128], strides = [1, 1]} : vector<16x128xf32> to vector<2x128xf32>
      %cst_39 = arith.constant dense<0.000000e+00> : vector<2x128xf32>
      %87 = tpu.matmul %79, %6, %cst_39 {dimension_numbers = #tpu.dot_dimension_numbers<[1], [0], [0], [1], [0, 0, 1, 1], [], []>} : vector<2x32xf32>, vector<32x128xf32>, vector<2x128xf32> -> vector<2x128xf32>
      %88 = arith.addf %86, %87 : vector<2x128xf32>
      %89 = arith.negf %88 : vector<2x128xf32>
      %90 = math.exp %89 : vector<2x128xf32>
      %cst_40 = arith.constant 1.000000e+00 : f32
      %91 = vector.broadcast %cst_40 : f32 to vector<2x128xf32>
      %92 = arith.addf %91, %90 : vector<2x128xf32>
      %93 = arith.divf %91, %92 : vector<2x128xf32>
      %94 = math.tanh %88 : vector<2x128xf32>
      %95 = vector.extract_strided_slice %93 {offsets = [0, 0], sizes = [2, 32], strides = [1, 1]} : vector<2x128xf32> to vector<2x32xf32>
      %96 = vector.extract_strided_slice %93 {offsets = [0, 32], sizes = [2, 32], strides = [1, 1]} : vector<2x128xf32> to vector<2x32xf32>
      %97 = vector.extract_strided_slice %93 {offsets = [0, 96], sizes = [2, 32], strides = [1, 1]} : vector<2x128xf32> to vector<2x32xf32>
      %98 = vector.extract_strided_slice %94 {offsets = [0, 64], sizes = [2, 32], strides = [1, 1]} : vector<2x128xf32> to vector<2x32xf32>
      %99 = arith.mulf %96, %82 : vector<2x32xf32>
      %100 = arith.mulf %95, %98 : vector<2x32xf32>
      %101 = arith.addf %99, %100 : vector<2x32xf32>
      %102 = math.tanh %101 : vector<2x32xf32>
      %103 = arith.mulf %97, %102 : vector<2x32xf32>
      %c2 = arith.constant 2 : index
      %c0_41 = arith.constant 0 : index
      %c0_42 = arith.constant 0 : index
      %104 = vector.load %arg3[%c2, %c0_41, %c0_42] : memref<8x2x1xf32, #tpu.memory_space<vmem>>, vector<1x2x1xf32>
      %105 = vector.shape_cast %104 : vector<1x2x1xf32> to vector<2x1xf32>
      %106 = vector.shape_cast %105 : vector<2x1xf32> to vector<2x1xf32>
      %107 = vector.broadcast %106 : vector<2x1xf32> to vector<2x32xf32>
      %108 = arith.subf %103, %0 : vector<2x32xf32>
      %109 = arith.mulf %108, %107 : vector<2x32xf32>
      %110 = arith.addf %0, %109 : vector<2x32xf32>
      %111 = arith.subf %101, %1 : vector<2x32xf32>
      %112 = arith.mulf %111, %107 : vector<2x32xf32>
      %113 = arith.addf %1, %112 : vector<2x32xf32>
      %c0_43 = arith.constant 0 : index
      %c0_44 = arith.constant 0 : index
      %c0_45 = arith.constant 0 : index
      %c64 = arith.constant 64 : index
      %114 = vector.load %arg9[%c0_43, %c0_44, %c0_45, %c64] : memref<1x1x2x256xf32, #tpu.memory_space<vmem>>, vector<1x1x2x32xf32>
      %115 = vector.shape_cast %114 : vector<1x1x2x32xf32> to vector<2x32xf32>
      %116 = vector.shape_cast %110 : vector<2x32xf32> to vector<1x1x2x32xf32>
      tpu.vector_store %arg9[%c0_43, %c0_44, %c0_45, %c64], %116 {strides = array<i32>} : memref<1x1x2x256xf32, #tpu.memory_space<vmem>>, vector<1x1x2x32xf32>,
      %117 = vector.extract_strided_slice %15 {offsets = [6, 0], sizes = [2, 128], strides = [1, 1]} : vector<16x128xf32> to vector<2x128xf32>
      %cst_46 = arith.constant dense<0.000000e+00> : vector<2x128xf32>
      %118 = tpu.matmul %110, %6, %cst_46 {dimension_numbers = #tpu.dot_dimension_numbers<[1], [0], [0], [1], [0, 0, 1, 1], [], []>} : vector<2x32xf32>, vector<32x128xf32>, vector<2x128xf32> -> vector<2x128xf32>
      %119 = arith.addf %117, %118 : vector<2x128xf32>
      %120 = arith.negf %119 : vector<2x128xf32>
      %121 = math.exp %120 : vector<2x128xf32>
      %cst_47 = arith.constant 1.000000e+00 : f32
      %122 = vector.broadcast %cst_47 : f32 to vector<2x128xf32>
      %123 = arith.addf %122, %121 : vector<2x128xf32>
      %124 = arith.divf %122, %123 : vector<2x128xf32>
      %125 = math.tanh %119 : vector<2x128xf32>
      %126 = vector.extract_strided_slice %124 {offsets = [0, 0], sizes = [2, 32], strides = [1, 1]} : vector<2x128xf32> to vector<2x32xf32>
      %127 = vector.extract_strided_slice %124 {offsets = [0, 32], sizes = [2, 32], strides = [1, 1]} : vector<2x128xf32> to vector<2x32xf32>
      %128 = vector.extract_strided_slice %124 {offsets = [0, 96], sizes = [2, 32], strides = [1, 1]} : vector<2x128xf32> to vector<2x32xf32>
      %129 = vector.extract_strided_slice %125 {offsets = [0, 64], sizes = [2, 32], strides = [1, 1]} : vector<2x128xf32> to vector<2x32xf32>
      %130 = arith.mulf %127, %113 : vector<2x32xf32>
      %131 = arith.mulf %126, %129 : vector<2x32xf32>
      %132 = arith.addf %130, %131 : vector<2x32xf32>
      %133 = math.tanh %132 : vector<2x32xf32>
      %134 = arith.mulf %128, %133 : vector<2x32xf32>
      %c3 = arith.constant 3 : index
      %c0_48 = arith.constant 0 : index
      %c0_49 = arith.constant 0 : index
      %135 = vector.load %arg3[%c3, %c0_48, %c0_49] : memref<8x2x1xf32, #tpu.memory_space<vmem>>, vector<1x2x1xf32>
      %136 = vector.shape_cast %135 : vector<1x2x1xf32> to vector<2x1xf32>
      %137 = vector.shape_cast %136 : vector<2x1xf32> to vector<2x1xf32>
      %138 = vector.broadcast %137 : vector<2x1xf32> to vector<2x32xf32>
      %139 = arith.subf %134, %0 : vector<2x32xf32>
      %140 = arith.mulf %139, %138 : vector<2x32xf32>
      %141 = arith.addf %0, %140 : vector<2x32xf32>
      %142 = arith.subf %132, %1 : vector<2x32xf32>
      %143 = arith.mulf %142, %138 : vector<2x32xf32>
      %144 = arith.addf %1, %143 : vector<2x32xf32>
      %c0_50 = arith.constant 0 : index
      %c0_51 = arith.constant 0 : index
      %c0_52 = arith.constant 0 : index
      %c96 = arith.constant 96 : index
      %145 = vector.load %arg9[%c0_50, %c0_51, %c0_52, %c96] : memref<1x1x2x256xf32, #tpu.memory_space<vmem>>, vector<1x1x2x32xf32>
      %146 = vector.shape_cast %145 : vector<1x1x2x32xf32> to vector<2x32xf32>
      %147 = vector.shape_cast %141 : vector<2x32xf32> to vector<1x1x2x32xf32>
      tpu.vector_store %arg9[%c0_50, %c0_51, %c0_52, %c96], %147 {strides = array<i32>} : memref<1x1x2x256xf32, #tpu.memory_space<vmem>>, vector<1x1x2x32xf32>,
      %148 = vector.extract_strided_slice %15 {offsets = [8, 0], sizes = [2, 128], strides = [1, 1]} : vector<16x128xf32> to vector<2x128xf32>
      %cst_53 = arith.constant dense<0.000000e+00> : vector<2x128xf32>
      %149 = tpu.matmul %141, %6, %cst_53 {dimension_numbers = #tpu.dot_dimension_numbers<[1], [0], [0], [1], [0, 0, 1, 1], [], []>} : vector<2x32xf32>, vector<32x128xf32>, vector<2x128xf32> -> vector<2x128xf32>
      %150 = arith.addf %148, %149 : vector<2x128xf32>
      %151 = arith.negf %150 : vector<2x128xf32>
      %152 = math.exp %151 : vector<2x128xf32>
      %cst_54 = arith.constant 1.000000e+00 : f32
      %153 = vector.broadcast %cst_54 : f32 to vector<2x128xf32>
      %154 = arith.addf %153, %152 : vector<2x128xf32>
      %155 = arith.divf %153, %154 : vector<2x128xf32>
      %156 = math.tanh %150 : vector<2x128xf32>
      %157 = vector.extract_strided_slice %155 {offsets = [0, 0], sizes = [2, 32], strides = [1, 1]} : vector<2x128xf32> to vector<2x32xf32>
      %158 = vector.extract_strided_slice %155 {offsets = [0, 32], sizes = [2, 32], strides = [1, 1]} : vector<2x128xf32> to vector<2x32xf32>
      %159 = vector.extract_strided_slice %155 {offsets = [0, 96], sizes = [2, 32], strides = [1, 1]} : vector<2x128xf32> to vector<2x32xf32>
      %160 = vector.extract_strided_slice %156 {offsets = [0, 64], sizes = [2, 32], strides = [1, 1]} : vector<2x128xf32> to vector<2x32xf32>
      %161 = arith.mulf %158, %144 : vector<2x32xf32>
      %162 = arith.mulf %157, %160 : vector<2x32xf32>
      %163 = arith.addf %161, %162 : vector<2x32xf32>
      %164 = math.tanh %163 : vector<2x32xf32>
      %165 = arith.mulf %159, %164 : vector<2x32xf32>
      %c4 = arith.constant 4 : index
      %c0_55 = arith.constant 0 : index
      %c0_56 = arith.constant 0 : index
      %166 = vector.load %arg3[%c4, %c0_55, %c0_56] : memref<8x2x1xf32, #tpu.memory_space<vmem>>, vector<1x2x1xf32>
      %167 = vector.shape_cast %166 : vector<1x2x1xf32> to vector<2x1xf32>
      %168 = vector.shape_cast %167 : vector<2x1xf32> to vector<2x1xf32>
      %169 = vector.broadcast %168 : vector<2x1xf32> to vector<2x32xf32>
      %170 = arith.subf %165, %0 : vector<2x32xf32>
      %171 = arith.mulf %170, %169 : vector<2x32xf32>
      %172 = arith.addf %0, %171 : vector<2x32xf32>
      %173 = arith.subf %163, %1 : vector<2x32xf32>
      %174 = arith.mulf %173, %169 : vector<2x32xf32>
      %175 = arith.addf %1, %174 : vector<2x32xf32>
      %c0_57 = arith.constant 0 : index
      %c0_58 = arith.constant 0 : index
      %c0_59 = arith.constant 0 : index
      %c128 = arith.constant 128 : index
      %176 = vector.load %arg9[%c0_57, %c0_58, %c0_59, %c128] : memref<1x1x2x256xf32, #tpu.memory_space<vmem>>, vector<1x1x2x32xf32>
      %177 = vector.shape_cast %176 : vector<1x1x2x32xf32> to vector<2x32xf32>
      %178 = vector.shape_cast %172 : vector<2x32xf32> to vector<1x1x2x32xf32>
      tpu.vector_store %arg9[%c0_57, %c0_58, %c0_59, %c128], %178 {strides = array<i32>} : memref<1x1x2x256xf32, #tpu.memory_space<vmem>>, vector<1x1x2x32xf32>,
      %179 = vector.extract_strided_slice %15 {offsets = [10, 0], sizes = [2, 128], strides = [1, 1]} : vector<16x128xf32> to vector<2x128xf32>
      %cst_60 = arith.constant dense<0.000000e+00> : vector<2x128xf32>
      %180 = tpu.matmul %172, %6, %cst_60 {dimension_numbers = #tpu.dot_dimension_numbers<[1], [0], [0], [1], [0, 0, 1, 1], [], []>} : vector<2x32xf32>, vector<32x128xf32>, vector<2x128xf32> -> vector<2x128xf32>
      %181 = arith.addf %179, %180 : vector<2x128xf32>
      %182 = arith.negf %181 : vector<2x128xf32>
      %183 = math.exp %182 : vector<2x128xf32>
      %cst_61 = arith.constant 1.000000e+00 : f32
      %184 = vector.broadcast %cst_61 : f32 to vector<2x128xf32>
      %185 = arith.addf %184, %183 : vector<2x128xf32>
      %186 = arith.divf %184, %185 : vector<2x128xf32>
      %187 = math.tanh %181 : vector<2x128xf32>
      %188 = vector.extract_strided_slice %186 {offsets = [0, 0], sizes = [2, 32], strides = [1, 1]} : vector<2x128xf32> to vector<2x32xf32>
      %189 = vector.extract_strided_slice %186 {offsets = [0, 32], sizes = [2, 32], strides = [1, 1]} : vector<2x128xf32> to vector<2x32xf32>
      %190 = vector.extract_strided_slice %186 {offsets = [0, 96], sizes = [2, 32], strides = [1, 1]} : vector<2x128xf32> to vector<2x32xf32>
      %191 = vector.extract_strided_slice %187 {offsets = [0, 64], sizes = [2, 32], strides = [1, 1]} : vector<2x128xf32> to vector<2x32xf32>
      %192 = arith.mulf %189, %175 : vector<2x32xf32>
      %193 = arith.mulf %188, %191 : vector<2x32xf32>
      %194 = arith.addf %192, %193 : vector<2x32xf32>
      %195 = math.tanh %194 : vector<2x32xf32>
      %196 = arith.mulf %190, %195 : vector<2x32xf32>
      %c5 = arith.constant 5 : index
      %c0_62 = arith.constant 0 : index
      %c0_63 = arith.constant 0 : index
      %197 = vector.load %arg3[%c5, %c0_62, %c0_63] : memref<8x2x1xf32, #tpu.memory_space<vmem>>, vector<1x2x1xf32>
      %198 = vector.shape_cast %197 : vector<1x2x1xf32> to vector<2x1xf32>
      %199 = vector.shape_cast %198 : vector<2x1xf32> to vector<2x1xf32>
      %200 = vector.broadcast %199 : vector<2x1xf32> to vector<2x32xf32>
      %201 = arith.subf %196, %0 : vector<2x32xf32>
      %202 = arith.mulf %201, %200 : vector<2x32xf32>
      %203 = arith.addf %0, %202 : vector<2x32xf32>
      %204 = arith.subf %194, %1 : vector<2x32xf32>
      %205 = arith.mulf %204, %200 : vector<2x32xf32>
      %206 = arith.addf %1, %205 : vector<2x32xf32>
      %c0_64 = arith.constant 0 : index
      %c0_65 = arith.constant 0 : index
      %c0_66 = arith.constant 0 : index
      %c160 = arith.constant 160 : index
      %207 = vector.load %arg9[%c0_64, %c0_65, %c0_66, %c160] : memref<1x1x2x256xf32, #tpu.memory_space<vmem>>, vector<1x1x2x32xf32>
      %208 = vector.shape_cast %207 : vector<1x1x2x32xf32> to vector<2x32xf32>
      %209 = vector.shape_cast %203 : vector<2x32xf32> to vector<1x1x2x32xf32>
      tpu.vector_store %arg9[%c0_64, %c0_65, %c0_66, %c160], %209 {strides = array<i32>} : memref<1x1x2x256xf32, #tpu.memory_space<vmem>>, vector<1x1x2x32xf32>,
      %210 = vector.extract_strided_slice %15 {offsets = [12, 0], sizes = [2, 128], strides = [1, 1]} : vector<16x128xf32> to vector<2x128xf32>
      %cst_67 = arith.constant dense<0.000000e+00> : vector<2x128xf32>
      %211 = tpu.matmul %203, %6, %cst_67 {dimension_numbers = #tpu.dot_dimension_numbers<[1], [0], [0], [1], [0, 0, 1, 1], [], []>} : vector<2x32xf32>, vector<32x128xf32>, vector<2x128xf32> -> vector<2x128xf32>
      %212 = arith.addf %210, %211 : vector<2x128xf32>
      %213 = arith.negf %212 : vector<2x128xf32>
      %214 = math.exp %213 : vector<2x128xf32>
      %cst_68 = arith.constant 1.000000e+00 : f32
      %215 = vector.broadcast %cst_68 : f32 to vector<2x128xf32>
      %216 = arith.addf %215, %214 : vector<2x128xf32>
      %217 = arith.divf %215, %216 : vector<2x128xf32>
      %218 = math.tanh %212 : vector<2x128xf32>
      %219 = vector.extract_strided_slice %217 {offsets = [0, 0], sizes = [2, 32], strides = [1, 1]} : vector<2x128xf32> to vector<2x32xf32>
      %220 = vector.extract_strided_slice %217 {offsets = [0, 32], sizes = [2, 32], strides = [1, 1]} : vector<2x128xf32> to vector<2x32xf32>
      %221 = vector.extract_strided_slice %217 {offsets = [0, 96], sizes = [2, 32], strides = [1, 1]} : vector<2x128xf32> to vector<2x32xf32>
      %222 = vector.extract_strided_slice %218 {offsets = [0, 64], sizes = [2, 32], strides = [1, 1]} : vector<2x128xf32> to vector<2x32xf32>
      %223 = arith.mulf %220, %206 : vector<2x32xf32>
      %224 = arith.mulf %219, %222 : vector<2x32xf32>
      %225 = arith.addf %223, %224 : vector<2x32xf32>
      %226 = math.tanh %225 : vector<2x32xf32>
      %227 = arith.mulf %221, %226 : vector<2x32xf32>
      %c6 = arith.constant 6 : index
      %c0_69 = arith.constant 0 : index
      %c0_70 = arith.constant 0 : index
      %228 = vector.load %arg3[%c6, %c0_69, %c0_70] : memref<8x2x1xf32, #tpu.memory_space<vmem>>, vector<1x2x1xf32>
      %229 = vector.shape_cast %228 : vector<1x2x1xf32> to vector<2x1xf32>
      %230 = vector.shape_cast %229 : vector<2x1xf32> to vector<2x1xf32>
      %231 = vector.broadcast %230 : vector<2x1xf32> to vector<2x32xf32>
      %232 = arith.subf %227, %0 : vector<2x32xf32>
      %233 = arith.mulf %232, %231 : vector<2x32xf32>
      %234 = arith.addf %0, %233 : vector<2x32xf32>
      %235 = arith.subf %225, %1 : vector<2x32xf32>
      %236 = arith.mulf %235, %231 : vector<2x32xf32>
      %237 = arith.addf %1, %236 : vector<2x32xf32>
      %c0_71 = arith.constant 0 : index
      %c0_72 = arith.constant 0 : index
      %c0_73 = arith.constant 0 : index
      %c192 = arith.constant 192 : index
      %238 = vector.load %arg9[%c0_71, %c0_72, %c0_73, %c192] : memref<1x1x2x256xf32, #tpu.memory_space<vmem>>, vector<1x1x2x32xf32>
      %239 = vector.shape_cast %238 : vector<1x1x2x32xf32> to vector<2x32xf32>
      %240 = vector.shape_cast %234 : vector<2x32xf32> to vector<1x1x2x32xf32>
      tpu.vector_store %arg9[%c0_71, %c0_72, %c0_73, %c192], %240 {strides = array<i32>} : memref<1x1x2x256xf32, #tpu.memory_space<vmem>>, vector<1x1x2x32xf32>,
      %241 = vector.extract_strided_slice %15 {offsets = [14, 0], sizes = [2, 128], strides = [1, 1]} : vector<16x128xf32> to vector<2x128xf32>
      %cst_74 = arith.constant dense<0.000000e+00> : vector<2x128xf32>
      %242 = tpu.matmul %234, %6, %cst_74 {dimension_numbers = #tpu.dot_dimension_numbers<[1], [0], [0], [1], [0, 0, 1, 1], [], []>} : vector<2x32xf32>, vector<32x128xf32>, vector<2x128xf32> -> vector<2x128xf32>
      %243 = arith.addf %241, %242 : vector<2x128xf32>
      %244 = arith.negf %243 : vector<2x128xf32>
      %245 = math.exp %244 : vector<2x128xf32>
      %cst_75 = arith.constant 1.000000e+00 : f32
      %246 = vector.broadcast %cst_75 : f32 to vector<2x128xf32>
      %247 = arith.addf %246, %245 : vector<2x128xf32>
      %248 = arith.divf %246, %247 : vector<2x128xf32>
      %249 = math.tanh %243 : vector<2x128xf32>
      %250 = vector.extract_strided_slice %248 {offsets = [0, 0], sizes = [2, 32], strides = [1, 1]} : vector<2x128xf32> to vector<2x32xf32>
      %251 = vector.extract_strided_slice %248 {offsets = [0, 32], sizes = [2, 32], strides = [1, 1]} : vector<2x128xf32> to vector<2x32xf32>
      %252 = vector.extract_strided_slice %248 {offsets = [0, 96], sizes = [2, 32], strides = [1, 1]} : vector<2x128xf32> to vector<2x32xf32>
      %253 = vector.extract_strided_slice %249 {offsets = [0, 64], sizes = [2, 32], strides = [1, 1]} : vector<2x128xf32> to vector<2x32xf32>
      %254 = arith.mulf %251, %237 : vector<2x32xf32>
      %255 = arith.mulf %250, %253 : vector<2x32xf32>
      %256 = arith.addf %254, %255 : vector<2x32xf32>
      %257 = math.tanh %256 : vector<2x32xf32>
      %258 = arith.mulf %252, %257 : vector<2x32xf32>
      %c7 = arith.constant 7 : index
      %c0_76 = arith.constant 0 : index
      %c0_77 = arith.constant 0 : index
      %259 = vector.load %arg3[%c7, %c0_76, %c0_77] : memref<8x2x1xf32, #tpu.memory_space<vmem>>, vector<1x2x1xf32>
      %260 = vector.shape_cast %259 : vector<1x2x1xf32> to vector<2x1xf32>
      %261 = vector.shape_cast %260 : vector<2x1xf32> to vector<2x1xf32>
      %262 = vector.broadcast %261 : vector<2x1xf32> to vector<2x32xf32>
      %263 = arith.subf %258, %0 : vector<2x32xf32>
      %264 = arith.mulf %263, %262 : vector<2x32xf32>
      %265 = arith.addf %0, %264 : vector<2x32xf32>
      %266 = arith.subf %256, %1 : vector<2x32xf32>
      %267 = arith.mulf %266, %262 : vector<2x32xf32>
      %268 = arith.addf %1, %267 : vector<2x32xf32>
      %c0_78 = arith.constant 0 : index
      %c0_79 = arith.constant 0 : index
      %c0_80 = arith.constant 0 : index
      %c224 = arith.constant 224 : index
      %269 = vector.load %arg9[%c0_78, %c0_79, %c0_80, %c224] : memref<1x1x2x256xf32, #tpu.memory_space<vmem>>, vector<1x1x2x32xf32>
      %270 = vector.shape_cast %269 : vector<1x1x2x32xf32> to vector<2x32xf32>
      %271 = vector.shape_cast %265 : vector<2x32xf32> to vector<1x1x2x32xf32>
      tpu.vector_store %arg9[%c0_78, %c0_79, %c0_80, %c224], %271 {strides = array<i32>} : memref<1x1x2x256xf32, #tpu.memory_space<vmem>>, vector<1x1x2x32xf32>,
      %c0_i32_81 = arith.constant 0 : i32
      %272 = arith.cmpi eq, %arg1, %c0_i32_81 : i32
      %273 = arith.extui %272 : i1 to i32
      %c0_i32_82 = arith.constant 0 : i32
      %274 = arith.cmpi ne, %273, %c0_i32_82 : i32
      scf.if %274 {
        %c0_87 = arith.constant 0 : index
        %c0_88 = arith.constant 0 : index
        %c0_89 = arith.constant 0 : index
        %277 = vector.load %arg10[%c0_87, %c0_88, %c0_89] : memref<1x2x32xf32, #tpu.memory_space<vmem>>, vector<1x2x32xf32>
        %278 = vector.shape_cast %277 : vector<1x2x32xf32> to vector<2x32xf32>
        %279 = vector.shape_cast %265 : vector<2x32xf32> to vector<1x2x32xf32>
        tpu.vector_store %arg10[%c0_87, %c0_88, %c0_89], %279 {strides = array<i32>} : memref<1x2x32xf32, #tpu.memory_space<vmem>>, vector<1x2x32xf32>,
        %c0_90 = arith.constant 0 : index
        %c0_91 = arith.constant 0 : index
        %c0_92 = arith.constant 0 : index
        %280 = vector.load %arg11[%c0_90, %c0_91, %c0_92] : memref<1x2x32xf32, #tpu.memory_space<vmem>>, vector<1x2x32xf32>
        %281 = vector.shape_cast %280 : vector<1x2x32xf32> to vector<2x32xf32>
        %282 = vector.shape_cast %268 : vector<2x32xf32> to vector<1x2x32xf32>
        tpu.vector_store %arg11[%c0_90, %c0_91, %c0_92], %282 {strides = array<i32>} : memref<1x2x32xf32, #tpu.memory_space<vmem>>, vector<1x2x32xf32>,
      } else {
      }
      %c0_83 = arith.constant 0 : index
      %c0_84 = arith.constant 0 : index
      %275 = vector.load %arg12[%c0_83, %c0_84] : memref<2x32xf32, #tpu.memory_space<vmem>>, vector<2x32xf32>
      tpu.vector_store %arg12[%c0_83, %c0_84], %265 {strides = array<i32>} : memref<2x32xf32, #tpu.memory_space<vmem>>, vector<2x32xf32>,
      %c0_85 = arith.constant 0 : index
      %c0_86 = arith.constant 0 : index
      %276 = vector.load %arg13[%c0_85, %c0_86] : memref<2x32xf32, #tpu.memory_space<vmem>>, vector<2x32xf32>
      tpu.vector_store %arg13[%c0_85, %c0_86], %268 {strides = array<i32>} : memref<2x32xf32, #tpu.memory_space<vmem>>, vector<2x32xf32>,
    } else {
    }
    %c1_i32 = arith.constant 1 : i32
    %19 = arith.cmpi eq, %arg0, %c1_i32 : i32
    %20 = arith.extui %19 : i1 to i32
    %c0_i32_18 = arith.constant 0 : i32
    %21 = arith.cmpi ne, %20, %c0_i32_18 : i32
    scf.if %21 {
      %c0_19 = arith.constant 0 : index
      %c0_20 = arith.constant 0 : index
      %22 = vector.load %arg12[%c0_19, %c0_20] : memref<2x32xf32, #tpu.memory_space<vmem>>, vector<2x32xf32>
      %c0_21 = arith.constant 0 : index
      %c0_22 = arith.constant 0 : index
      %23 = vector.load %arg13[%c0_21, %c0_22] : memref<2x32xf32, #tpu.memory_space<vmem>>, vector<2x32xf32>
      %24 = vector.extract_strided_slice %15 {offsets = [14, 0], sizes = [2, 128], strides = [1, 1]} : vector<16x128xf32> to vector<2x128xf32>
      %cst_23 = arith.constant dense<0.000000e+00> : vector<2x128xf32>
      %25 = tpu.matmul %22, %6, %cst_23 {dimension_numbers = #tpu.dot_dimension_numbers<[1], [0], [0], [1], [0, 0, 1, 1], [], []>} : vector<2x32xf32>, vector<32x128xf32>, vector<2x128xf32> -> vector<2x128xf32>
      %26 = arith.addf %24, %25 : vector<2x128xf32>
      %27 = arith.negf %26 : vector<2x128xf32>
      %28 = math.exp %27 : vector<2x128xf32>
      %cst_24 = arith.constant 1.000000e+00 : f32
      %29 = vector.broadcast %cst_24 : f32 to vector<2x128xf32>
      %30 = arith.addf %29, %28 : vector<2x128xf32>
      %31 = arith.divf %29, %30 : vector<2x128xf32>
      %32 = math.tanh %26 : vector<2x128xf32>
      %33 = vector.extract_strided_slice %31 {offsets = [0, 0], sizes = [2, 32], strides = [1, 1]} : vector<2x128xf32> to vector<2x32xf32>
      %34 = vector.extract_strided_slice %31 {offsets = [0, 32], sizes = [2, 32], strides = [1, 1]} : vector<2x128xf32> to vector<2x32xf32>
      %35 = vector.extract_strided_slice %31 {offsets = [0, 96], sizes = [2, 32], strides = [1, 1]} : vector<2x128xf32> to vector<2x32xf32>
      %36 = vector.extract_strided_slice %32 {offsets = [0, 64], sizes = [2, 32], strides = [1, 1]} : vector<2x128xf32> to vector<2x32xf32>
      %37 = arith.mulf %34, %23 : vector<2x32xf32>
      %38 = arith.mulf %33, %36 : vector<2x32xf32>
      %39 = arith.addf %37, %38 : vector<2x32xf32>
      %40 = math.tanh %39 : vector<2x32xf32>
      %41 = arith.mulf %35, %40 : vector<2x32xf32>
      %c7 = arith.constant 7 : index
      %c0_25 = arith.constant 0 : index
      %c0_26 = arith.constant 0 : index
      %42 = vector.load %arg3[%c7, %c0_25, %c0_26] : memref<8x2x1xf32, #tpu.memory_space<vmem>>, vector<1x2x1xf32>
      %43 = vector.shape_cast %42 : vector<1x2x1xf32> to vector<2x1xf32>
      %44 = vector.shape_cast %43 : vector<2x1xf32> to vector<2x1xf32>
      %45 = vector.broadcast %44 : vector<2x1xf32> to vector<2x32xf32>
      %46 = arith.subf %41, %0 : vector<2x32xf32>
      %47 = arith.mulf %46, %45 : vector<2x32xf32>
      %48 = arith.addf %0, %47 : vector<2x32xf32>
      %49 = arith.subf %39, %1 : vector<2x32xf32>
      %50 = arith.mulf %49, %45 : vector<2x32xf32>
      %51 = arith.addf %1, %50 : vector<2x32xf32>
      %c0_27 = arith.constant 0 : index
      %c0_28 = arith.constant 0 : index
      %c0_29 = arith.constant 0 : index
      %c224 = arith.constant 224 : index
      %52 = vector.load %arg9[%c0_27, %c0_28, %c0_29, %c224] : memref<1x1x2x256xf32, #tpu.memory_space<vmem>>, vector<1x1x2x32xf32>
      %53 = vector.shape_cast %52 : vector<1x1x2x32xf32> to vector<2x32xf32>
      %54 = vector.shape_cast %48 : vector<2x32xf32> to vector<1x1x2x32xf32>
      tpu.vector_store %arg9[%c0_27, %c0_28, %c0_29, %c224], %54 {strides = array<i32>} : memref<1x1x2x256xf32, #tpu.memory_space<vmem>>, vector<1x1x2x32xf32>,
      %55 = vector.extract_strided_slice %15 {offsets = [12, 0], sizes = [2, 128], strides = [1, 1]} : vector<16x128xf32> to vector<2x128xf32>
      %cst_30 = arith.constant dense<0.000000e+00> : vector<2x128xf32>
      %56 = tpu.matmul %48, %6, %cst_30 {dimension_numbers = #tpu.dot_dimension_numbers<[1], [0], [0], [1], [0, 0, 1, 1], [], []>} : vector<2x32xf32>, vector<32x128xf32>, vector<2x128xf32> -> vector<2x128xf32>
      %57 = arith.addf %55, %56 : vector<2x128xf32>
      %58 = arith.negf %57 : vector<2x128xf32>
      %59 = math.exp %58 : vector<2x128xf32>
      %cst_31 = arith.constant 1.000000e+00 : f32
      %60 = vector.broadcast %cst_31 : f32 to vector<2x128xf32>
      %61 = arith.addf %60, %59 : vector<2x128xf32>
      %62 = arith.divf %60, %61 : vector<2x128xf32>
      %63 = math.tanh %57 : vector<2x128xf32>
      %64 = vector.extract_strided_slice %62 {offsets = [0, 0], sizes = [2, 32], strides = [1, 1]} : vector<2x128xf32> to vector<2x32xf32>
      %65 = vector.extract_strided_slice %62 {offsets = [0, 32], sizes = [2, 32], strides = [1, 1]} : vector<2x128xf32> to vector<2x32xf32>
      %66 = vector.extract_strided_slice %62 {offsets = [0, 96], sizes = [2, 32], strides = [1, 1]} : vector<2x128xf32> to vector<2x32xf32>
      %67 = vector.extract_strided_slice %63 {offsets = [0, 64], sizes = [2, 32], strides = [1, 1]} : vector<2x128xf32> to vector<2x32xf32>
      %68 = arith.mulf %65, %51 : vector<2x32xf32>
      %69 = arith.mulf %64, %67 : vector<2x32xf32>
      %70 = arith.addf %68, %69 : vector<2x32xf32>
      %71 = math.tanh %70 : vector<2x32xf32>
      %72 = arith.mulf %66, %71 : vector<2x32xf32>
      %c6 = arith.constant 6 : index
      %c0_32 = arith.constant 0 : index
      %c0_33 = arith.constant 0 : index
      %73 = vector.load %arg3[%c6, %c0_32, %c0_33] : memref<8x2x1xf32, #tpu.memory_space<vmem>>, vector<1x2x1xf32>
      %74 = vector.shape_cast %73 : vector<1x2x1xf32> to vector<2x1xf32>
      %75 = vector.shape_cast %74 : vector<2x1xf32> to vector<2x1xf32>
      %76 = vector.broadcast %75 : vector<2x1xf32> to vector<2x32xf32>
      %77 = arith.subf %72, %0 : vector<2x32xf32>
      %78 = arith.mulf %77, %76 : vector<2x32xf32>
      %79 = arith.addf %0, %78 : vector<2x32xf32>
      %80 = arith.subf %70, %1 : vector<2x32xf32>
      %81 = arith.mulf %80, %76 : vector<2x32xf32>
      %82 = arith.addf %1, %81 : vector<2x32xf32>
      %c0_34 = arith.constant 0 : index
      %c0_35 = arith.constant 0 : index
      %c0_36 = arith.constant 0 : index
      %c192 = arith.constant 192 : index
      %83 = vector.load %arg9[%c0_34, %c0_35, %c0_36, %c192] : memref<1x1x2x256xf32, #tpu.memory_space<vmem>>, vector<1x1x2x32xf32>
      %84 = vector.shape_cast %83 : vector<1x1x2x32xf32> to vector<2x32xf32>
      %85 = vector.shape_cast %79 : vector<2x32xf32> to vector<1x1x2x32xf32>
      tpu.vector_store %arg9[%c0_34, %c0_35, %c0_36, %c192], %85 {strides = array<i32>} : memref<1x1x2x256xf32, #tpu.memory_space<vmem>>, vector<1x1x2x32xf32>,
      %86 = vector.extract_strided_slice %15 {offsets = [10, 0], sizes = [2, 128], strides = [1, 1]} : vector<16x128xf32> to vector<2x128xf32>
      %cst_37 = arith.constant dense<0.000000e+00> : vector<2x128xf32>
      %87 = tpu.matmul %79, %6, %cst_37 {dimension_numbers = #tpu.dot_dimension_numbers<[1], [0], [0], [1], [0, 0, 1, 1], [], []>} : vector<2x32xf32>, vector<32x128xf32>, vector<2x128xf32> -> vector<2x128xf32>
      %88 = arith.addf %86, %87 : vector<2x128xf32>
      %89 = arith.negf %88 : vector<2x128xf32>
      %90 = math.exp %89 : vector<2x128xf32>
      %cst_38 = arith.constant 1.000000e+00 : f32
      %91 = vector.broadcast %cst_38 : f32 to vector<2x128xf32>
      %92 = arith.addf %91, %90 : vector<2x128xf32>
      %93 = arith.divf %91, %92 : vector<2x128xf32>
      %94 = math.tanh %88 : vector<2x128xf32>
      %95 = vector.extract_strided_slice %93 {offsets = [0, 0], sizes = [2, 32], strides = [1, 1]} : vector<2x128xf32> to vector<2x32xf32>
      %96 = vector.extract_strided_slice %93 {offsets = [0, 32], sizes = [2, 32], strides = [1, 1]} : vector<2x128xf32> to vector<2x32xf32>
      %97 = vector.extract_strided_slice %93 {offsets = [0, 96], sizes = [2, 32], strides = [1, 1]} : vector<2x128xf32> to vector<2x32xf32>
      %98 = vector.extract_strided_slice %94 {offsets = [0, 64], sizes = [2, 32], strides = [1, 1]} : vector<2x128xf32> to vector<2x32xf32>
      %99 = arith.mulf %96, %82 : vector<2x32xf32>
      %100 = arith.mulf %95, %98 : vector<2x32xf32>
      %101 = arith.addf %99, %100 : vector<2x32xf32>
      %102 = math.tanh %101 : vector<2x32xf32>
      %103 = arith.mulf %97, %102 : vector<2x32xf32>
      %c5 = arith.constant 5 : index
      %c0_39 = arith.constant 0 : index
      %c0_40 = arith.constant 0 : index
      %104 = vector.load %arg3[%c5, %c0_39, %c0_40] : memref<8x2x1xf32, #tpu.memory_space<vmem>>, vector<1x2x1xf32>
      %105 = vector.shape_cast %104 : vector<1x2x1xf32> to vector<2x1xf32>
      %106 = vector.shape_cast %105 : vector<2x1xf32> to vector<2x1xf32>
      %107 = vector.broadcast %106 : vector<2x1xf32> to vector<2x32xf32>
      %108 = arith.subf %103, %0 : vector<2x32xf32>
      %109 = arith.mulf %108, %107 : vector<2x32xf32>
      %110 = arith.addf %0, %109 : vector<2x32xf32>
      %111 = arith.subf %101, %1 : vector<2x32xf32>
      %112 = arith.mulf %111, %107 : vector<2x32xf32>
      %113 = arith.addf %1, %112 : vector<2x32xf32>
      %c0_41 = arith.constant 0 : index
      %c0_42 = arith.constant 0 : index
      %c0_43 = arith.constant 0 : index
      %c160 = arith.constant 160 : index
      %114 = vector.load %arg9[%c0_41, %c0_42, %c0_43, %c160] : memref<1x1x2x256xf32, #tpu.memory_space<vmem>>, vector<1x1x2x32xf32>
      %115 = vector.shape_cast %114 : vector<1x1x2x32xf32> to vector<2x32xf32>
      %116 = vector.shape_cast %110 : vector<2x32xf32> to vector<1x1x2x32xf32>
      tpu.vector_store %arg9[%c0_41, %c0_42, %c0_43, %c160], %116 {strides = array<i32>} : memref<1x1x2x256xf32, #tpu.memory_space<vmem>>, vector<1x1x2x32xf32>,
      %117 = vector.extract_strided_slice %15 {offsets = [8, 0], sizes = [2, 128], strides = [1, 1]} : vector<16x128xf32> to vector<2x128xf32>
      %cst_44 = arith.constant dense<0.000000e+00> : vector<2x128xf32>
      %118 = tpu.matmul %110, %6, %cst_44 {dimension_numbers = #tpu.dot_dimension_numbers<[1], [0], [0], [1], [0, 0, 1, 1], [], []>} : vector<2x32xf32>, vector<32x128xf32>, vector<2x128xf32> -> vector<2x128xf32>
      %119 = arith.addf %117, %118 : vector<2x128xf32>
      %120 = arith.negf %119 : vector<2x128xf32>
      %121 = math.exp %120 : vector<2x128xf32>
      %cst_45 = arith.constant 1.000000e+00 : f32
      %122 = vector.broadcast %cst_45 : f32 to vector<2x128xf32>
      %123 = arith.addf %122, %121 : vector<2x128xf32>
      %124 = arith.divf %122, %123 : vector<2x128xf32>
      %125 = math.tanh %119 : vector<2x128xf32>
      %126 = vector.extract_strided_slice %124 {offsets = [0, 0], sizes = [2, 32], strides = [1, 1]} : vector<2x128xf32> to vector<2x32xf32>
      %127 = vector.extract_strided_slice %124 {offsets = [0, 32], sizes = [2, 32], strides = [1, 1]} : vector<2x128xf32> to vector<2x32xf32>
      %128 = vector.extract_strided_slice %124 {offsets = [0, 96], sizes = [2, 32], strides = [1, 1]} : vector<2x128xf32> to vector<2x32xf32>
      %129 = vector.extract_strided_slice %125 {offsets = [0, 64], sizes = [2, 32], strides = [1, 1]} : vector<2x128xf32> to vector<2x32xf32>
      %130 = arith.mulf %127, %113 : vector<2x32xf32>
      %131 = arith.mulf %126, %129 : vector<2x32xf32>
      %132 = arith.addf %130, %131 : vector<2x32xf32>
      %133 = math.tanh %132 : vector<2x32xf32>
      %134 = arith.mulf %128, %133 : vector<2x32xf32>
      %c4 = arith.constant 4 : index
      %c0_46 = arith.constant 0 : index
      %c0_47 = arith.constant 0 : index
      %135 = vector.load %arg3[%c4, %c0_46, %c0_47] : memref<8x2x1xf32, #tpu.memory_space<vmem>>, vector<1x2x1xf32>
      %136 = vector.shape_cast %135 : vector<1x2x1xf32> to vector<2x1xf32>
      %137 = vector.shape_cast %136 : vector<2x1xf32> to vector<2x1xf32>
      %138 = vector.broadcast %137 : vector<2x1xf32> to vector<2x32xf32>
      %139 = arith.subf %134, %0 : vector<2x32xf32>
      %140 = arith.mulf %139, %138 : vector<2x32xf32>
      %141 = arith.addf %0, %140 : vector<2x32xf32>
      %142 = arith.subf %132, %1 : vector<2x32xf32>
      %143 = arith.mulf %142, %138 : vector<2x32xf32>
      %144 = arith.addf %1, %143 : vector<2x32xf32>
      %c0_48 = arith.constant 0 : index
      %c0_49 = arith.constant 0 : index
      %c0_50 = arith.constant 0 : index
      %c128 = arith.constant 128 : index
      %145 = vector.load %arg9[%c0_48, %c0_49, %c0_50, %c128] : memref<1x1x2x256xf32, #tpu.memory_space<vmem>>, vector<1x1x2x32xf32>
      %146 = vector.shape_cast %145 : vector<1x1x2x32xf32> to vector<2x32xf32>
      %147 = vector.shape_cast %141 : vector<2x32xf32> to vector<1x1x2x32xf32>
      tpu.vector_store %arg9[%c0_48, %c0_49, %c0_50, %c128], %147 {strides = array<i32>} : memref<1x1x2x256xf32, #tpu.memory_space<vmem>>, vector<1x1x2x32xf32>,
      %148 = vector.extract_strided_slice %15 {offsets = [6, 0], sizes = [2, 128], strides = [1, 1]} : vector<16x128xf32> to vector<2x128xf32>
      %cst_51 = arith.constant dense<0.000000e+00> : vector<2x128xf32>
      %149 = tpu.matmul %141, %6, %cst_51 {dimension_numbers = #tpu.dot_dimension_numbers<[1], [0], [0], [1], [0, 0, 1, 1], [], []>} : vector<2x32xf32>, vector<32x128xf32>, vector<2x128xf32> -> vector<2x128xf32>
      %150 = arith.addf %148, %149 : vector<2x128xf32>
      %151 = arith.negf %150 : vector<2x128xf32>
      %152 = math.exp %151 : vector<2x128xf32>
      %cst_52 = arith.constant 1.000000e+00 : f32
      %153 = vector.broadcast %cst_52 : f32 to vector<2x128xf32>
      %154 = arith.addf %153, %152 : vector<2x128xf32>
      %155 = arith.divf %153, %154 : vector<2x128xf32>
      %156 = math.tanh %150 : vector<2x128xf32>
      %157 = vector.extract_strided_slice %155 {offsets = [0, 0], sizes = [2, 32], strides = [1, 1]} : vector<2x128xf32> to vector<2x32xf32>
      %158 = vector.extract_strided_slice %155 {offsets = [0, 32], sizes = [2, 32], strides = [1, 1]} : vector<2x128xf32> to vector<2x32xf32>
      %159 = vector.extract_strided_slice %155 {offsets = [0, 96], sizes = [2, 32], strides = [1, 1]} : vector<2x128xf32> to vector<2x32xf32>
      %160 = vector.extract_strided_slice %156 {offsets = [0, 64], sizes = [2, 32], strides = [1, 1]} : vector<2x128xf32> to vector<2x32xf32>
      %161 = arith.mulf %158, %144 : vector<2x32xf32>
      %162 = arith.mulf %157, %160 : vector<2x32xf32>
      %163 = arith.addf %161, %162 : vector<2x32xf32>
      %164 = math.tanh %163 : vector<2x32xf32>
      %165 = arith.mulf %159, %164 : vector<2x32xf32>
      %c3 = arith.constant 3 : index
      %c0_53 = arith.constant 0 : index
      %c0_54 = arith.constant 0 : index
      %166 = vector.load %arg3[%c3, %c0_53, %c0_54] : memref<8x2x1xf32, #tpu.memory_space<vmem>>, vector<1x2x1xf32>
      %167 = vector.shape_cast %166 : vector<1x2x1xf32> to vector<2x1xf32>
      %168 = vector.shape_cast %167 : vector<2x1xf32> to vector<2x1xf32>
      %169 = vector.broadcast %168 : vector<2x1xf32> to vector<2x32xf32>
      %170 = arith.subf %165, %0 : vector<2x32xf32>
      %171 = arith.mulf %170, %169 : vector<2x32xf32>
      %172 = arith.addf %0, %171 : vector<2x32xf32>
      %173 = arith.subf %163, %1 : vector<2x32xf32>
      %174 = arith.mulf %173, %169 : vector<2x32xf32>
      %175 = arith.addf %1, %174 : vector<2x32xf32>
      %c0_55 = arith.constant 0 : index
      %c0_56 = arith.constant 0 : index
      %c0_57 = arith.constant 0 : index
      %c96 = arith.constant 96 : index
      %176 = vector.load %arg9[%c0_55, %c0_56, %c0_57, %c96] : memref<1x1x2x256xf32, #tpu.memory_space<vmem>>, vector<1x1x2x32xf32>
      %177 = vector.shape_cast %176 : vector<1x1x2x32xf32> to vector<2x32xf32>
      %178 = vector.shape_cast %172 : vector<2x32xf32> to vector<1x1x2x32xf32>
      tpu.vector_store %arg9[%c0_55, %c0_56, %c0_57, %c96], %178 {strides = array<i32>} : memref<1x1x2x256xf32, #tpu.memory_space<vmem>>, vector<1x1x2x32xf32>,
      %179 = vector.extract_strided_slice %15 {offsets = [4, 0], sizes = [2, 128], strides = [1, 1]} : vector<16x128xf32> to vector<2x128xf32>
      %cst_58 = arith.constant dense<0.000000e+00> : vector<2x128xf32>
      %180 = tpu.matmul %172, %6, %cst_58 {dimension_numbers = #tpu.dot_dimension_numbers<[1], [0], [0], [1], [0, 0, 1, 1], [], []>} : vector<2x32xf32>, vector<32x128xf32>, vector<2x128xf32> -> vector<2x128xf32>
      %181 = arith.addf %179, %180 : vector<2x128xf32>
      %182 = arith.negf %181 : vector<2x128xf32>
      %183 = math.exp %182 : vector<2x128xf32>
      %cst_59 = arith.constant 1.000000e+00 : f32
      %184 = vector.broadcast %cst_59 : f32 to vector<2x128xf32>
      %185 = arith.addf %184, %183 : vector<2x128xf32>
      %186 = arith.divf %184, %185 : vector<2x128xf32>
      %187 = math.tanh %181 : vector<2x128xf32>
      %188 = vector.extract_strided_slice %186 {offsets = [0, 0], sizes = [2, 32], strides = [1, 1]} : vector<2x128xf32> to vector<2x32xf32>
      %189 = vector.extract_strided_slice %186 {offsets = [0, 32], sizes = [2, 32], strides = [1, 1]} : vector<2x128xf32> to vector<2x32xf32>
      %190 = vector.extract_strided_slice %186 {offsets = [0, 96], sizes = [2, 32], strides = [1, 1]} : vector<2x128xf32> to vector<2x32xf32>
      %191 = vector.extract_strided_slice %187 {offsets = [0, 64], sizes = [2, 32], strides = [1, 1]} : vector<2x128xf32> to vector<2x32xf32>
      %192 = arith.mulf %189, %175 : vector<2x32xf32>
      %193 = arith.mulf %188, %191 : vector<2x32xf32>
      %194 = arith.addf %192, %193 : vector<2x32xf32>
      %195 = math.tanh %194 : vector<2x32xf32>
      %196 = arith.mulf %190, %195 : vector<2x32xf32>
      %c2 = arith.constant 2 : index
      %c0_60 = arith.constant 0 : index
      %c0_61 = arith.constant 0 : index
      %197 = vector.load %arg3[%c2, %c0_60, %c0_61] : memref<8x2x1xf32, #tpu.memory_space<vmem>>, vector<1x2x1xf32>
      %198 = vector.shape_cast %197 : vector<1x2x1xf32> to vector<2x1xf32>
      %199 = vector.shape_cast %198 : vector<2x1xf32> to vector<2x1xf32>
      %200 = vector.broadcast %199 : vector<2x1xf32> to vector<2x32xf32>
      %201 = arith.subf %196, %0 : vector<2x32xf32>
      %202 = arith.mulf %201, %200 : vector<2x32xf32>
      %203 = arith.addf %0, %202 : vector<2x32xf32>
      %204 = arith.subf %194, %1 : vector<2x32xf32>
      %205 = arith.mulf %204, %200 : vector<2x32xf32>
      %206 = arith.addf %1, %205 : vector<2x32xf32>
      %c0_62 = arith.constant 0 : index
      %c0_63 = arith.constant 0 : index
      %c0_64 = arith.constant 0 : index
      %c64 = arith.constant 64 : index
      %207 = vector.load %arg9[%c0_62, %c0_63, %c0_64, %c64] : memref<1x1x2x256xf32, #tpu.memory_space<vmem>>, vector<1x1x2x32xf32>
      %208 = vector.shape_cast %207 : vector<1x1x2x32xf32> to vector<2x32xf32>
      %209 = vector.shape_cast %203 : vector<2x32xf32> to vector<1x1x2x32xf32>
      tpu.vector_store %arg9[%c0_62, %c0_63, %c0_64, %c64], %209 {strides = array<i32>} : memref<1x1x2x256xf32, #tpu.memory_space<vmem>>, vector<1x1x2x32xf32>,
      %210 = vector.extract_strided_slice %15 {offsets = [2, 0], sizes = [2, 128], strides = [1, 1]} : vector<16x128xf32> to vector<2x128xf32>
      %cst_65 = arith.constant dense<0.000000e+00> : vector<2x128xf32>
      %211 = tpu.matmul %203, %6, %cst_65 {dimension_numbers = #tpu.dot_dimension_numbers<[1], [0], [0], [1], [0, 0, 1, 1], [], []>} : vector<2x32xf32>, vector<32x128xf32>, vector<2x128xf32> -> vector<2x128xf32>
      %212 = arith.addf %210, %211 : vector<2x128xf32>
      %213 = arith.negf %212 : vector<2x128xf32>
      %214 = math.exp %213 : vector<2x128xf32>
      %cst_66 = arith.constant 1.000000e+00 : f32
      %215 = vector.broadcast %cst_66 : f32 to vector<2x128xf32>
      %216 = arith.addf %215, %214 : vector<2x128xf32>
      %217 = arith.divf %215, %216 : vector<2x128xf32>
      %218 = math.tanh %212 : vector<2x128xf32>
      %219 = vector.extract_strided_slice %217 {offsets = [0, 0], sizes = [2, 32], strides = [1, 1]} : vector<2x128xf32> to vector<2x32xf32>
      %220 = vector.extract_strided_slice %217 {offsets = [0, 32], sizes = [2, 32], strides = [1, 1]} : vector<2x128xf32> to vector<2x32xf32>
      %221 = vector.extract_strided_slice %217 {offsets = [0, 96], sizes = [2, 32], strides = [1, 1]} : vector<2x128xf32> to vector<2x32xf32>
      %222 = vector.extract_strided_slice %218 {offsets = [0, 64], sizes = [2, 32], strides = [1, 1]} : vector<2x128xf32> to vector<2x32xf32>
      %223 = arith.mulf %220, %206 : vector<2x32xf32>
      %224 = arith.mulf %219, %222 : vector<2x32xf32>
      %225 = arith.addf %223, %224 : vector<2x32xf32>
      %226 = math.tanh %225 : vector<2x32xf32>
      %227 = arith.mulf %221, %226 : vector<2x32xf32>
      %c1 = arith.constant 1 : index
      %c0_67 = arith.constant 0 : index
      %c0_68 = arith.constant 0 : index
      %228 = vector.load %arg3[%c1, %c0_67, %c0_68] : memref<8x2x1xf32, #tpu.memory_space<vmem>>, vector<1x2x1xf32>
      %229 = vector.shape_cast %228 : vector<1x2x1xf32> to vector<2x1xf32>
      %230 = vector.shape_cast %229 : vector<2x1xf32> to vector<2x1xf32>
      %231 = vector.broadcast %230 : vector<2x1xf32> to vector<2x32xf32>
      %232 = arith.subf %227, %0 : vector<2x32xf32>
      %233 = arith.mulf %232, %231 : vector<2x32xf32>
      %234 = arith.addf %0, %233 : vector<2x32xf32>
      %235 = arith.subf %225, %1 : vector<2x32xf32>
      %236 = arith.mulf %235, %231 : vector<2x32xf32>
      %237 = arith.addf %1, %236 : vector<2x32xf32>
      %c0_69 = arith.constant 0 : index
      %c0_70 = arith.constant 0 : index
      %c0_71 = arith.constant 0 : index
      %c32 = arith.constant 32 : index
      %238 = vector.load %arg9[%c0_69, %c0_70, %c0_71, %c32] : memref<1x1x2x256xf32, #tpu.memory_space<vmem>>, vector<1x1x2x32xf32>
      %239 = vector.shape_cast %238 : vector<1x1x2x32xf32> to vector<2x32xf32>
      %240 = vector.shape_cast %234 : vector<2x32xf32> to vector<1x1x2x32xf32>
      tpu.vector_store %arg9[%c0_69, %c0_70, %c0_71, %c32], %240 {strides = array<i32>} : memref<1x1x2x256xf32, #tpu.memory_space<vmem>>, vector<1x1x2x32xf32>,
      %241 = vector.extract_strided_slice %15 {offsets = [0, 0], sizes = [2, 128], strides = [1, 1]} : vector<16x128xf32> to vector<2x128xf32>
      %cst_72 = arith.constant dense<0.000000e+00> : vector<2x128xf32>
      %242 = tpu.matmul %234, %6, %cst_72 {dimension_numbers = #tpu.dot_dimension_numbers<[1], [0], [0], [1], [0, 0, 1, 1], [], []>} : vector<2x32xf32>, vector<32x128xf32>, vector<2x128xf32> -> vector<2x128xf32>
      %243 = arith.addf %241, %242 : vector<2x128xf32>
      %244 = arith.negf %243 : vector<2x128xf32>
      %245 = math.exp %244 : vector<2x128xf32>
      %cst_73 = arith.constant 1.000000e+00 : f32
      %246 = vector.broadcast %cst_73 : f32 to vector<2x128xf32>
      %247 = arith.addf %246, %245 : vector<2x128xf32>
      %248 = arith.divf %246, %247 : vector<2x128xf32>
      %249 = math.tanh %243 : vector<2x128xf32>
      %250 = vector.extract_strided_slice %248 {offsets = [0, 0], sizes = [2, 32], strides = [1, 1]} : vector<2x128xf32> to vector<2x32xf32>
      %251 = vector.extract_strided_slice %248 {offsets = [0, 32], sizes = [2, 32], strides = [1, 1]} : vector<2x128xf32> to vector<2x32xf32>
      %252 = vector.extract_strided_slice %248 {offsets = [0, 96], sizes = [2, 32], strides = [1, 1]} : vector<2x128xf32> to vector<2x32xf32>
      %253 = vector.extract_strided_slice %249 {offsets = [0, 64], sizes = [2, 32], strides = [1, 1]} : vector<2x128xf32> to vector<2x32xf32>
      %254 = arith.mulf %251, %237 : vector<2x32xf32>
      %255 = arith.mulf %250, %253 : vector<2x32xf32>
      %256 = arith.addf %254, %255 : vector<2x32xf32>
      %257 = math.tanh %256 : vector<2x32xf32>
      %258 = arith.mulf %252, %257 : vector<2x32xf32>
      %c0_74 = arith.constant 0 : index
      %c0_75 = arith.constant 0 : index
      %c0_76 = arith.constant 0 : index
      %259 = vector.load %arg3[%c0_74, %c0_75, %c0_76] : memref<8x2x1xf32, #tpu.memory_space<vmem>>, vector<1x2x1xf32>
      %260 = vector.shape_cast %259 : vector<1x2x1xf32> to vector<2x1xf32>
      %261 = vector.shape_cast %260 : vector<2x1xf32> to vector<2x1xf32>
      %262 = vector.broadcast %261 : vector<2x1xf32> to vector<2x32xf32>
      %263 = arith.subf %258, %0 : vector<2x32xf32>
      %264 = arith.mulf %263, %262 : vector<2x32xf32>
      %265 = arith.addf %0, %264 : vector<2x32xf32>
      %266 = arith.subf %256, %1 : vector<2x32xf32>
      %267 = arith.mulf %266, %262 : vector<2x32xf32>
      %268 = arith.addf %1, %267 : vector<2x32xf32>
      %c0_77 = arith.constant 0 : index
      %c0_78 = arith.constant 0 : index
      %c0_79 = arith.constant 0 : index
      %c0_80 = arith.constant 0 : index
      %269 = vector.load %arg9[%c0_77, %c0_78, %c0_79, %c0_80] : memref<1x1x2x256xf32, #tpu.memory_space<vmem>>, vector<1x1x2x32xf32>
      %270 = vector.shape_cast %269 : vector<1x1x2x32xf32> to vector<2x32xf32>
      %271 = vector.shape_cast %265 : vector<2x32xf32> to vector<1x1x2x32xf32>
      tpu.vector_store %arg9[%c0_77, %c0_78, %c0_79, %c0_80], %271 {strides = array<i32>} : memref<1x1x2x256xf32, #tpu.memory_space<vmem>>, vector<1x1x2x32xf32>,
      %c0_81 = arith.constant 0 : index
      %c0_82 = arith.constant 0 : index
      %272 = vector.load %arg12[%c0_81, %c0_82] : memref<2x32xf32, #tpu.memory_space<vmem>>, vector<2x32xf32>
      tpu.vector_store %arg12[%c0_81, %c0_82], %265 {strides = array<i32>} : memref<2x32xf32, #tpu.memory_space<vmem>>, vector<2x32xf32>,
      %c0_83 = arith.constant 0 : index
      %c0_84 = arith.constant 0 : index
      %273 = vector.load %arg13[%c0_83, %c0_84] : memref<2x32xf32, #tpu.memory_space<vmem>>, vector<2x32xf32>
      tpu.vector_store %arg13[%c0_83, %c0_84], %268 {strides = array<i32>} : memref<2x32xf32, #tpu.memory_space<vmem>>, vector<2x32xf32>,
      %c0_i32_85 = arith.constant 0 : i32
      %274 = arith.cmpi eq, %arg1, %c0_i32_85 : i32
      %275 = arith.extui %274 : i1 to i32
      %c0_i32_86 = arith.constant 0 : i32
      %276 = arith.cmpi ne, %275, %c0_i32_86 : i32
      scf.if %276 {
        %c0_87 = arith.constant 0 : index
        %c0_88 = arith.constant 0 : index
        %c0_89 = arith.constant 0 : index
        %277 = vector.load %arg10[%c0_87, %c0_88, %c0_89] : memref<1x2x32xf32, #tpu.memory_space<vmem>>, vector<1x2x32xf32>
        %278 = vector.shape_cast %277 : vector<1x2x32xf32> to vector<2x32xf32>
        %279 = vector.shape_cast %265 : vector<2x32xf32> to vector<1x2x32xf32>
        tpu.vector_store %arg10[%c0_87, %c0_88, %c0_89], %279 {strides = array<i32>} : memref<1x2x32xf32, #tpu.memory_space<vmem>>, vector<1x2x32xf32>,
        %c0_90 = arith.constant 0 : index
        %c0_91 = arith.constant 0 : index
        %c0_92 = arith.constant 0 : index
        %280 = vector.load %arg11[%c0_90, %c0_91, %c0_92] : memref<1x2x32xf32, #tpu.memory_space<vmem>>, vector<1x2x32xf32>
        %281 = vector.shape_cast %280 : vector<1x2x32xf32> to vector<2x32xf32>
        %282 = vector.shape_cast %268 : vector<2x32xf32> to vector<1x2x32xf32>
        tpu.vector_store %arg11[%c0_90, %c0_91, %c0_92], %282 {strides = array<i32>} : memref<1x2x32xf32, #tpu.memory_space<vmem>>, vector<1x2x32xf32>,
      } else {
      }
    } else {
    }
    return
  }
  func.func @transform_0(%arg0: i32, %arg1: i32) -> (i32, i32, i32) {
    %c2_i32 = arith.constant 2 : i32
    %0 = arith.muli %c2_i32, %arg1 : i32
    %c0_i32 = arith.constant 0 : i32
    %1 = arith.subi %c0_i32, %0 : i32
    %2 = arith.muli %arg0, %1 : i32
    %3 = arith.addi %arg1, %2 : i32
    %c0_i32_0 = arith.constant 0 : i32
    %c0_i32_1 = arith.constant 0 : i32
    %c0_i32_2 = arith.constant 0 : i32
    return %3, %c0_i32_0, %c0_i32_1 : i32, i32, i32
  }
  func.func @transform_1(%arg0: i32, %arg1: i32) -> (i32, i32, i32) {
    %c2_i32 = arith.constant 2 : i32
    %0 = arith.muli %c2_i32, %arg1 : i32
    %c0_i32 = arith.constant 0 : i32
    %1 = arith.subi %c0_i32, %0 : i32
    %2 = arith.muli %arg0, %1 : i32
    %3 = arith.addi %arg1, %2 : i32
    %c0_i32_0 = arith.constant 0 : i32
    %c0_i32_1 = arith.constant 0 : i32
    %c0_i32_2 = arith.constant 0 : i32
    return %3, %c0_i32_0, %c0_i32_1 : i32, i32, i32
  }
  func.func @transform_2(%arg0: i32, %arg1: i32) -> (i32, i32, i32) {
    %c0_i32 = arith.constant 0 : i32
    %c0_i32_0 = arith.constant 0 : i32
    %c0_i32_1 = arith.constant 0 : i32
    return %arg0, %c0_i32, %c0_i32_0 : i32, i32, i32
  }
  func.func @transform_3(%arg0: i32, %arg1: i32) -> (i32, i32, i32) {
    %c0_i32 = arith.constant 0 : i32
    %c0_i32_0 = arith.constant 0 : i32
    %c0_i32_1 = arith.constant 0 : i32
    return %arg0, %c0_i32, %c0_i32_0 : i32, i32, i32
  }
  func.func @transform_4(%arg0: i32, %arg1: i32) -> (i32, i32, i32) {
    %c0_i32 = arith.constant 0 : i32
    %c0_i32_0 = arith.constant 0 : i32
    %c0_i32_1 = arith.constant 0 : i32
    return %arg0, %c0_i32, %c0_i32_0 : i32, i32, i32
  }
  func.func @transform_5(%arg0: i32, %arg1: i32) -> (i32, i32) {
    %c0_i32 = arith.constant 0 : i32
    %c0_i32_0 = arith.constant 0 : i32
    %c0_i32_1 = arith.constant 0 : i32
    return %c0_i32, %c0_i32_0 : i32, i32
  }
  func.func @transform_6(%arg0: i32, %arg1: i32) -> (i32, i32) {
    %c0_i32 = arith.constant 0 : i32
    %c0_i32_0 = arith.constant 0 : i32
    %c0_i32_1 = arith.constant 0 : i32
    return %c0_i32, %c0_i32_0 : i32, i32
  }
  func.func @transform_7(%arg0: i32, %arg1: i32) -> (i32, i32, i32, i32) {
    %c2_i32 = arith.constant 2 : i32
    %0 = arith.muli %c2_i32, %arg1 : i32
    %c0_i32 = arith.constant 0 : i32
    %1 = arith.subi %c0_i32, %0 : i32
    %2 = arith.muli %arg0, %1 : i32
    %3 = arith.addi %arg1, %2 : i32
    %c0_i32_0 = arith.constant 0 : i32
    %c0_i32_1 = arith.constant 0 : i32
    %c0_i32_2 = arith.constant 0 : i32
    return %arg0, %3, %c0_i32_0, %c0_i32_1 : i32, i32, i32, i32
  }
  func.func @transform_8(%arg0: i32, %arg1: i32) -> (i32, i32, i32) {
    %c0_i32 = arith.constant 0 : i32
    %c0_i32_0 = arith.constant 0 : i32
    %c0_i32_1 = arith.constant 0 : i32
    return %arg0, %c0_i32, %c0_i32_0 : i32, i32, i32
  }
  func.func @transform_9(%arg0: i32, %arg1: i32) -> (i32, i32, i32) {
    %c0_i32 = arith.constant 0 : i32
    %c0_i32_0 = arith.constant 0 : i32
    %c0_i32_1 = arith.constant 0 : i32
    return %arg0, %c0_i32, %c0_i32_0 : i32, i32, i32
  }
}

</mosaic_0001>

<bundles_post_ra>
// kernel: tpu_custom_call.1
= control target key start
LH: loop header
LB: loop body
LE: loop exit
PB: predicated region body
PF: predicated region fallthrough
CT: control target
= control target key end

     0   :  { %s4874_s0 = inlined_call_operand.vmem [shape: f32[1,16,16], index: 0, kind: input, shape index: {}]   ;;  %s4875_s1 = inlined_call_operand.vmem [shape: f32[8,2,1], index: 1, kind: input, shape index: {}]   ;;  %s4876_s2 = inlined_call_operand.hbm [shape: f32[2,16,128], index: 2, kind: input, shape index: {}]   ;;  %s4877_s3 = inlined_call_operand.hbm [shape: f32[2,32,128], index: 3, kind: input, shape index: {}]   ;;  %s4878_s4 = inlined_call_operand.vmem [shape: f32[2,1,128], index: 4, kind: input, shape index: {}]   ;;  %s4879_s5 = inlined_call_operand.vmem [shape: f32[2,32], index: 5, kind: input, shape index: {}]   ;;  %s4880_s6 = inlined_call_operand.vmem [shape: f32[2,32], index: 6, kind: input, shape index: {}]   ;;  %s4881_s7 = inlined_call_operand.hbm [shape: f32[2,1,2,256], index: 7, kind: output, shape index: {0}]   ;;  %s4882_s8 = inlined_call_operand.hbm [shape: f32[2,2,32], index: 8, kind: output, shape index: {1}]   ;;  %s4883_s9 = inlined_call_operand.hbm [shape: f32[2,2,32], index: 9, kind: output, shape index: {2}]  }
   0x1   :  { %4891 = sst [smem:[#allocation22_spill]] %s4874_s0 }
   0x2   :  { %4892 = sst [smem:[#allocation23_spill]] %s4876_s2 }
   0x3   :  { %4893 = sst [smem:[#allocation24_spill]] %s4881_s7 }
   0x4   :  { %4894 = sst [smem:[#allocation25_spill]] %s4883_s9 }
   0x5   :  { %15 = vsyncpa [#allocation5], 0 }
   0x6   :  { %17 = vsyncpa [#allocation5 + $0x1], 0 }
   0x7   :  { %18 = vsyncpa [#allocation8], 0 }
   0x8   :  { %20 = vsyncpa [#allocation8 + $0x1], 0 }
   0x9   :  { %21 = vsyncpa [#allocation6], 0 }
   0xa   :  { %23 = vsyncpa [#allocation6 + $0x1], 0 }
   0xb   :  { %24 = vsyncpa [#allocation11], 0 }
   0xc   :  { %26 = vsyncpa [#allocation11 + $0x1], 0  ;;  %s4038_s30 = smov 0   ;;  %s4040_s10 = smov 0  }
   0xd   :  { %s4042_s11 = smov 0   ;;  %s4044_s12 = smov 0  }
   0xe   :  { %s4046_s13 = smov 0   ;;  %s4048_s14 = smov 0  }
   0xf LB: > { %4895 = sst [smem:[#allocation17_spill]] %s3945_s30  ;;  %s4069_s15 = sadd.s32 4294967295, %s3965_s14   ;;  %s3965_s14 = sphi %s4048_s14, %s32_s14   ;;  %s3961_s13 = sphi %s4046_s13, %s4920_s13   ;;  %s3957_s12 = sphi %s4044_s12, %s4919_s12   ;;  %s3953_s11 = sphi %s4042_s11, %s4915_s11   ;;  %s3949_s10 = sphi %s4040_s10, %s4918_s10   ;;  %s3945_s30 = sphi %s4038_s30, %s4917_s30  }
  0x10   : > { %4896 = sst [smem:[#allocation18_spill]] %s3953_s11  ;;  %s4885_s16 = sadd.s32 4294967294, %s3965_s14  }
  0x11   : > { %s44_s17 = sadd.s32 1, %s3961_s13  ;;  %s119_s18 = sadd.s32 1, %s3953_s11 }
  0x12   : > { %p46_p0 = scmp.ge.s32.totalorder %s44_s17, 2  ;;  %p126_p1 = scmp.ne.s32.totalorder %s3953_s11, %s3949_s10 }
  0x13   : > { %p127_p2 = scmp.eq.s32.totalorder %s3965_s14, 0  ;;  %p132_p3 = scmp.ne.s32.totalorder %s3949_s10, %s3945_s30 }
  0x14   : > { %s4922_s17 = smov (%p46_p0, %s44_s17), 0  ;;  %p133_p5 = scmp.eq.s32.totalorder %s4069_s15, 0 }
  0x15   : > { %4897 = sst [smem:[#allocation19_spill]] %s4922_s17  ;;  %p4081_p4 = por %p127_p2, %p126_p1 }
  0x16   : > { %s116_s20 = ssub.s32 %s3961_s13, %s4922_s17  ;;  %p260_p6 = scmp.eq.s32.totalorder %s4069_s15, 1 }
  0x17   : > { %p117_p7 = scmp.eq.s32.totalorder %s116_s20, 0  ;;  %p4089_p8 = por %p133_p5, %p132_p3 }
  0x18   : > { %p4093_p9 = por %p260_p6, %p126_p1  ;;  %p266_p10 = scmp.eq.s32.totalorder %s4885_s16, 1 }
  0x19   : > { %s4100_s23 = scalar_select %p117_p7, %s3953_s11, %s119_s18  }
  0x1a   : > { %p4102_p11 = por %p266_p10, %p132_p3  ;;  %p3199_p12 = scmp.ge.s32.totalorder %s3965_s14, 2 }
  0x1b   : > { %4901 = sst [smem:[#allocation20_spill]] %s4100_s23  ;;  %p3571_p13 = scmp.lt.s32.totalorder %s3965_s14, 2 }
  0x1c   : > { %s4902_s24 = scalar_select %p4102_p11, 1, 0 }
  0x1d   : > { %s4109_s25 = sand.u32 1, %s3953_s11   ;;  %s3274_s27 = sshll.u32 %s3961_s13, 8 }
  0x1e   : > { %4903 = sst [smem:[#allocation21_spill]] %s4902_s24  ;;  %s3202_s26 = sshll.u32 %s4109_s25, 4 }
  0x1f   : > { %s4904_s2 = sld [smem:[#allocation23_spill]]  ;;  %s381_s17 = scalar_lea.vmem [#allocation4], %s3202_s26 }
  0x20   : > { %s388_s16 = sshll.u32 %s381_s17, 4  ;;  %p4118_p0 = pnand %p3571_p13, %p4081_p4  ;;  %s389_s16 = int_to_ptr.vmem [resolvable:$true] %s388_s16 }
  0x21   : > { %p3208_p1 = scmp.ge.s32.totalorder %s3965_s14, 1  ;;  %s378_s23 = scalar_lea.sflag [#allocation5], %s4109_s25 }
  0x22   : > { %p3771_p2 = pneg %p4118_p0  ;;  %s3782_s11 = scalar_lea.vmem %s389_s16, 256 }
  0x23   : > { %p3783_p3 = scmp.ne.s32.totalorder %s389_s16, %s3782_s11  ;;  %s3967_s26 = smov [#allocation4]  }
  0x24   : > { %s3787_s17 = sshll.u32 %s3967_s26, 4  ;;  %s3788_s17 = int_to_ptr.vmem [resolvable:$false] %s3787_s17 }
  0x25   : > { %s387_s20 = scalar_lea.hbm %s4904_s2, %s3274_s27  ;;  %p3785_p5 = pnand %p3783_p3, %p3771_p2 }
  0x26   : > { %s3789_s19 = scalar_lea.vmem %s3788_s17, 512  ;;  %p3790_p4 = scmp.lt.s32.totalorder %s389_s16, %s3788_s17 }
  0x27   : > { %p3786_p6 = pneg %p3785_p5  ;;  %p3791_p7 = scmp.lt.s32.totalorder %s3789_s19, %s3782_s11 }
  0x29   : > { %p3792_p10 = por %p3791_p7, %p3790_p4 }
  0x2b   : > { %p3793_p13 = pnand %p3792_p10, %p3786_p6 }
  0x2d   : > { %3796 = shalt.err (!%p3793_p13)
}
  0x2e   : > { %s3968_s27 = smov 128   ;;  %s3969_s28 = smov 8  }
  0x2f   : > { %3557 = dma.hbm_to_vmem [thread:$0]  (!%p4118_p0), %s387_s20, 256, %s389_s16, %s378_s23, %s3968_s27, %s3968_s27, %s3969_s28  }
  0x30   : > { %p423_p3 = scmp.lt.s32.totalorder %s3965_s14, 3  ;;  %s3205_s29 = sshll.u32 %s4109_s25, 5 }
  0x31   : > { %s3275_s26 = sshll.u32 %s3961_s13, 9  ;;  %s402_s24 = scalar_lea.vmem [#allocation7], %s3205_s29 }
  0x32   : > { %p4136_p5 = pnand %p3208_p1, %p423_p3  ;;  %s408_s2 = scalar_lea.hbm %s4877_s3, %s3275_s26 }
  0x33   : > { %s409_s30 = sshll.u32 %s402_s24, 4  ;;  %s399_s9 = scalar_lea.sflag [#allocation8], %s4109_s25  ;;  %s410_s30 = int_to_ptr.vmem [resolvable:$true] %s409_s30 }
  0x34   : > { %s3810_s7 = scalar_lea.vmem %s410_s30, 512  ;;  %s3970_s16 = smov [#allocation7]  }
  0x35   : > { %p3811_p6 = scmp.ne.s32.totalorder %s410_s30, %s3810_s7  ;;  %s3815_s23 = sshll.u32 %s3970_s16, 4  ;;  %s3816_s23 = int_to_ptr.vmem [resolvable:$false] %s3815_s23 }
  0x36   : > { %s3817_s20 = scalar_lea.vmem %s3816_s23, 1024  ;;  %p3818_p1 = scmp.lt.s32.totalorder %s410_s30, %s3816_s23 }
  0x37   : > { %p3813_p4 = pnand %p3811_p6, %p3771_p2  ;;  %p3819_p10 = scmp.lt.s32.totalorder %s3817_s20, %s3810_s7 }
  0x39   : > { %p3814_p7 = pneg %p3813_p4  ;;  %p3820_p13 = por %p3819_p10, %p3818_p1 }
  0x3b   : > { %p3821_p3 = pnand %p3820_p13, %p3814_p7 }
  0x3d   : > { %3824 = shalt.err (!%p3821_p3)
}
  0x3e   : > { %3560 = dma.hbm_to_vmem [thread:$0]  (!%p4118_p0), %s408_s2, 512, %s410_s30, %s399_s9, %s3968_s27, %s3968_s27, %s3969_s28  }
  0x3f   : > { %427 = sbr.rel (%p4136_p5) target bundleno = 11667 (0x2d93), region = 48  ;;  %s4152_s24 = sand.u32 (!%p4136_p5), 1, %s3949_s10  }
  0x40   : > { %s3209_s25 = sshll.u32 (!%p4136_p5), %s4152_s24, 4  ;;  %s430_s29 = scalar_lea.sflag (!%p4136_p5), [#allocation5], %s4152_s24 }
  0x41   : > { %s433_s26 = scalar_lea.vmem (!%p4136_p5), [#allocation4], %s3209_s25 }
  0x44   : > { %3928 = dma.done.wait (%p4089_p8), %s430_s29, 256  }
  0x45   : > { %3930 = vsyncadd (%p4089_p8), %s430_s29, 4294967040  ;;  %s3210_s2 = sshll.u32 %s4152_s24, 5  ;;  %s439_s7 = scalar_lea.sflag [#allocation8], %s4152_s24 }
  0x46   : > { %s442_s9 = scalar_lea.vmem [#allocation7], %s3210_s2 }
  0x47   : > { %3932 = dma.done.wait (%p4089_p8), %s439_s7, 512  }
  0x48   : > { %3934 = vsyncadd (%p4089_p8), %s439_s7, 4294966784  ;;  %s3211_s30 = sshll.u32 %s4152_s24, 2  ;;  %s3212_s18 = sshll.u32 %s4152_s24, 1  ;;  %vm553_vm0 = vcmask 254976   ;;  %v4171_v0 = vld [vmem:[%s4879_s5] sm:$0x3] }
  0x49   : > { %v4176_v1 = vld [vmem:[%s4880_s6] sm:$0x3]  ;;  %v4178_v2 = vld [vmem:[%s442_s9] sm:$0xff]  ;;  %vm571_vm1 = vcmask 130048   ;;  %554 = vst.msk [vmem:[#allocation2] sm:$0x3] %vm553_vm0, %v4171_v0 }
  0x4a   : > { %555 = vst.msk [vmem:[#allocation3] sm:$0x3] %vm553_vm0, %v4176_v1  ;;  %v4184_v3 = vld [vmem:[%s442_s9 + $0x8] sm:$0xff]  ;;  %v4186_v4 = vld [vmem:[%s442_s9 + $0x10] sm:$0xff]  ;;  %v4188_v5 = vld [vmem:[%s442_s9 + $0x18] sm:$0xff]  ;;  %s4907_s0 = sld [smem:[#allocation22_spill]] }
  0x4b   : > { %v563_v6 = vld [vmem:[%s433_s26 + $0x8] sm:$0xff]  ;;  %v562_v7 = vld [vmem:[%s433_s26] sm:$0xff]  ;;  %p540_p8 = scmp.lt.s32.totalorder %s3957_s12, 1  ;;  %s4205_s2 = scalar_lea.vmem [#allocation9], %s3211_s30 }
  0x4c   : > { %3361 = vmatprep.subr.mxu0 %v563_v6  ;;  %s4209_s7 = scalar_lea.vmem [#allocation10], %s3212_s18  ;;  %s4213_s9 = scalar_lea.vmem [#allocation12], %s3212_s18 }
  0x4d   : > { %3362 = vmatpush3.msra.mxu0 %v563_v6  ;;  %s541_s20 = scalar_select %p540_p8, %s3957_s12, 1 }
  0x4e   : > { %3363 = vmatprep.subr.mxu0 %v562_v7  ;;  %p3217_p0 = scmp.ne.s32.totalorder %s3957_s12, 0 }
  0x4f   : > { %3364 = vmatpush3.msra.mxu0 %v562_v7  ;;  %s542_s26 = scalar_lea.vmem %s4878_s4, %s541_s20  ;;  %s3974_s30 = smov (!%p3217_p0), 64  }
  0x50   : > { %v560_v8 = vld [vmem:[%s4907_s0] sm:$0xff]  ;;  %v561_v9 = vld [vmem:[%s4907_s0 + $0x8] sm:$0xff]  ;;  %s3975_s18 = smov (!%p3217_p0), 32   ;;  %s3976_s11 = smov (!%p3217_p0), 96  }
  0x51   : > { %3365 = vmatprep.mubr.msk.f32.mxu0 %vm571_vm1, %v560_v8  ;;  %v3214_v10 = vld [vmem:[%s542_s26] ss:$0 sm:$0xff] }
  0x52   : > { %3366 = vmatmul.mubr.msk.f32.vlgmr.msra.gmra.mxu0 %vm571_vm1, %v561_v9 }
 0x111   : > { %656 = sbr.rel (%p3217_p0) target bundleno = 5991 (0x1767), region = 64 }
 0x112   : > { %v3367_v11 = vpop.f32.mrf.mxu0 }
 0x113   : > { %v4201_v12 = vadd.f32 %v3367_v11, %v3214_v10 }
 0x114   : > { %v644_v13 = vpop.f32.mrf.mxu0 }
 0x115   : > { %v4203_v14 = vadd.f32 %v3214_v10, %v644_v13 }
 0x116   : > { %v3971_v15 = vmov 0.0   ;;  %vm3972_vm2 = vmmov 0   ;;  %v657_v16 = vld [vmem:[#allocation2] sm:$0x3]  ;;  %vm659_vm3 = vcmask 261120   ;;  %v3973_v20 = vmov 0  }
 0x117   : > { %3368 = vmatprep.subr.mxu0 %v3971_v15  ;;  %3376 = vmatprep.mubr.msk.f32.mxu0 %vm3972_vm2, %v3971_v15  ;;  %v658_v22 = vld [vmem:[#allocation3] sm:$0x3]  ;;  %v762_v29 = vld [vmem:[%s4875_s1] sm:$0x3]  ;;  %v904_v8 = vrot.slane %v4171_v0, 6  ;;  %v918_v9 = vrot.slane %v4176_v1, 6 }
 0x118   : > { %3369 = vmatpush3.msra.mxu0 %v4188_v5  ;;  %3379 = vmatprep.subr.mxu1 %v3971_v15  ;;  %v3222_v57 = vld [vmem:[%s4875_s1 + $0x2] sm:$0x3]  ;;  %vm941_vm4 = vcmask 517376   ;;  %vm1091_vm5 = vcmask 779776   ;;  %vm1241_vm6 = vcmask 1042176  }
 0x119   : > { %3370 = vmatprep.subr.mxu0 %v3971_v15  ;;  %3380 = vmatpush3.msra.mxu1 %v4188_v5 }
 0x11a   : > { %3371 = vmatpush3.msra.mxu0 %v4186_v4  ;;  %3381 = vmatprep.subr.mxu1 %v3971_v15 }
 0x11b   : > { %3372 = vmatprep.subr.mxu0 %v3971_v15  ;;  %3382 = vmatpush3.msra.mxu1 %v4186_v4 }
 0x11c   : > { %3373 = vmatpush3.msra.mxu0 %v4184_v3  ;;  %3383 = vmatprep.subr.mxu1 %v3971_v15 }
 0x11d   : > { %3374 = vmatprep.subr.mxu0 %v3971_v15  ;;  %3384 = vmatpush3.msra.mxu1 %v4184_v3 }
 0x11e   : > { %3375 = vmatpush3.msra.mxu0 %v4178_v2  ;;  %3385 = vmatprep.subr.mxu1 %v3971_v15 }
 0x11f   : > { %3377 = vmatmul.mubr.msk.f32.vlgmr.msra.gmra.mxu0 %vm659_vm3, %v657_v16  ;;  %3386 = vmatpush3.msra.mxu1 %v4178_v2 }
 0x120   : > { %3387 = vmatprep.mubr.msk.f32.mxu1 %vm3972_vm2, %v3971_v15  ;;  %3390 = vmatprep.subr.mxu0 %v3971_v15 }
 0x121   : > { %3391 = vmatpush3.msra.mxu0 %v4188_v5  ;;  %3398 = vmatprep.mubr.msk.f32.mxu0 %vm3972_vm2, %v3971_v15 }
 0x122   : > { %3392 = vmatprep.subr.mxu0 %v3971_v15  ;;  %3401 = vmatprep.subr.mxu1 %v3971_v15 }
 0x123   : > { %3393 = vmatpush3.msra.mxu0 %v4186_v4  ;;  %3637 = vset.pattern.permute.xlu1 %v3973_v20 }
 0x124   : > { %3394 = vmatprep.subr.mxu0 %v3971_v15  ;;  %3638 = vset.pattern.permute.xlu0 %v3973_v20 }
 0x125   : > { %3395 = vmatpush3.msra.mxu0 %v4184_v3 }
 0x126   : > { %3396 = vmatprep.subr.mxu0 %v3971_v15 }
 0x127   : > { %3397 = vmatpush3.msra.mxu0 %v4178_v2 }
 0x128   : > { %3412 = vmatprep.subr.mxu0 %v3971_v15 }
 0x1df   : > { %v729_v17 = vpop.f32.mrf.mxu0 }
 0x1e0   : > { %v733_v18 = vadd.f32 %v729_v17, %v4203_v14 }
 0x1e1   : > { %v3378_v19 = vpop.f32.mrf.mxu0 }
 0x1e2   : > { %3639 = vtanh.f32 %v733_v18  ;;  %v3219_v23 = vmul.f32 -1.442695, %v733_v18 }
 0x1e4   : > { %3641 = vpow2.f32 %v3219_v23 }
 0x1ef   : > { %v3640_v21 = vpop.eup %3639 }
 0x1f0   : > { %747 = vrot.lane.b32.xlu0 %v3640_v21, %s3974_s30 }
 0x1f1   : > { %v3642_v24 = vpop.eup %3641 }
 0x1f2   : > { %v737_v25 = vadd.f32 1.0, %v3642_v24 }
 0x1f4   : > { %742 = vrot.lane.b32.xlu0 %v658_v22, %s3975_s18  ;;  %3643 = vrcp.f32 %v737_v25 }
 0x201   : > { %v3644_v26 = vpop.eup %3643 }
 0x262   : > { %v748_v27 = vpop.permute.xlu0 %747 }
 0x263   : > { %v750_v28 = vmul.f32 %v3644_v26, %v748_v27 }
 0x265   : > { %752 = vrot.lane.b32.xlu1 %v750_v28, %s3975_s18 }
 0x266   : > { %v743_v30 = vpop.permute.xlu0 %742 }
 0x267   : > { %v745_v31 = vmul.f32 %v3644_v26, %v743_v30  ;;  %v3225_v30 = vld [vmem:[%s4875_s1 + $0x4] sm:$0x3] }
 0x269   : > { %765 = vperm.xlu1 %3637, %v762_v29  }
 0x26d   : > { %769 = vrot.lane.b32.xlu1 %v4171_v0, %s3976_s11 }
 0x271   : > { %780 = vrot.lane.b32.xlu1 %v4176_v1, %s3975_s18 }
 0x2d7   : > { %v753_v32 = vpop.permute.xlu1 %752 }
 0x2d8   : > { %v755_v33 = vadd.f32 %v753_v32, %v745_v31 }
 0x2da   : > { %3645 = vtanh.f32 %v755_v33 }
 0x2e4   : > { %v766_v35 = vpop.permute.xlu1 %765 }
 0x2e7   : > { %v3646_v34 = vpop.eup %3645 }
 0x2e8   : > { %758 = vrot.lane.b32.xlu0 %v3646_v34, %s3974_s30  ;;  %v4261_v36 = vpop.permute.xlu1 %769 }
 0x2ec   : > { %v4263_v39 = vpop.permute.xlu1 %780 }
 0x2ed   : > { %v783_v41 = vsub.f32 %v755_v33, %v4263_v39 }
 0x2ef   : > { %v784_v43 = vmul.f32 %v783_v41, %v766_v35 }
 0x35a   : > { %v759_v37 = vpop.permute.xlu0 %758 }
 0x35b   : > { %v761_v38 = vmul.f32 %v3644_v26, %v759_v37  ;;  %v1068_v37 = vrot.slane %v4176_v1, 4 }
 0x35d   : > { %v772_v40 = vsub.f32 %v761_v38, %v4261_v36 }
 0x35f   : > { %v773_v42 = vmul.f32 %v772_v40, %v766_v35  ;;  %v1054_v35 = vrot.slane %v4171_v0, 4 }
 0x361   : > { %775 = vrot.lane.b32.xlu0 %v773_v42, %s3975_s18 }
 0x365   : > { %786 = vrot.lane.b32.xlu0 %v784_v43, %s3976_s11 }
 0x3d3   : > { %v776_v44 = vpop.permute.xlu0 %775 }
 0x3d4   : > { %v778_v45 = vadd.f32 %v776_v44, %v4171_v0 }
 0x3d6   : > { %791 = vst.msk [vmem:[%s4205_s2] sm:$0x3] %vm553_vm0, %v778_v45  ;;  %3388 = vmatmul.mubr.msk.f32.vlgmr.msra.gmra.mxu1 %vm659_vm3, %v778_v45 }
 0x3d7   : > { %v787_v46 = vpop.permute.xlu0 %786  ;;  %3402 = vmatpush3.msra.mxu1 %v4188_v5  ;;  %3409 = vmatprep.mubr.msk.f32.mxu1 %vm3972_vm2, %v3971_v15 }
 0x3d8   : > { %v789_v47 = vadd.f32 %v787_v46, %v4176_v1  ;;  %3403 = vmatprep.subr.mxu1 %v3971_v15 }
 0x3d9   : > { %3404 = vmatpush3.msra.mxu1 %v4186_v4 }
 0x3da   : > { %v877_v48 = vrot.slane %v789_v47, 6  ;;  %3405 = vmatprep.subr.mxu1 %v3971_v15 }
 0x3db   : > { %3406 = vmatpush3.msra.mxu1 %v4184_v3 }
 0x3dc   : > { %878 = vrot.lane.b32.xlu0 %v877_v48, %s3975_s18  ;;  %3407 = vmatprep.subr.mxu1 %v3971_v15 }
 0x3dd   : > { %3408 = vmatpush3.msra.mxu1 %v4178_v2 }
 0x3de   : > { %3423 = vmatprep.subr.mxu1 %v3971_v15 }
 0x3e0   : > { %902 = vperm.xlu0 %3638, %v3222_v57  }
 0x44e   : > { %v879_v61 = vpop.permute.xlu0 %878 }
 0x45b   : > { %v903_v11 = vpop.permute.xlu0 %902 }
 0x45c   : > { %v909_v16 = vrot.slane %v903_v11, 6 }
 0x496   : > { %v861_v49 = vpop.f32.mrf.mxu1 }
 0x497   : > { %v866_v50 = vrot.slane %v861_v49, 6 }
 0x498   : > { %v3389_v51 = vpop.f32.mrf.mxu1 }
 0x499   : > { %v868_v52 = vadd.f32 %v866_v50, %v4203_v14 }
 0x49b   : > { %3647 = vtanh.f32 %v868_v52  ;;  %v3221_v54 = vmul.f32 -1.442695, %v868_v52 }
 0x49d   : > { %3649 = vpow2.f32 %v3221_v54 }
 0x4a8   : > { %v3648_v53 = vpop.eup %3647 }
 0x4a9   : > { %883 = vrot.lane.b32.xlu1 %v3648_v53, %s3974_s30 }
 0x4aa   : > { %v3650_v55 = vpop.eup %3649 }
 0x4ab   : > { %v872_v56 = vadd.f32 1.0, %v3650_v55 }
 0x4ad   : > { %3651 = vrcp.f32 %v872_v56 }
 0x4ba   : > { %v3652_v58 = vpop.eup %3651 }
 0x4bb   : > { %v881_v62 = vmul.f32 %v3652_v58, %v879_v61 }
 0x51b   : > { %v884_v59 = vpop.permute.xlu1 %883 }
 0x51c   : > { %v886_v60 = vmul.f32 %v3652_v58, %v884_v59 }
 0x51e   : > { %888 = vrot.lane.b32.xlu1 %v886_v60, %s3975_s18 }
 0x590   : > { %v889_v63 = vpop.permute.xlu1 %888 }
 0x591   : > { %v891_v6 = vadd.f32 %v889_v63, %v881_v62 }
 0x593   : > { %3653 = vtanh.f32 %v891_v6 }
 0x5a0   : > { %v3654_v7 = vpop.eup %3653 }
 0x5a1   : > { %894 = vrot.lane.b32.xlu1 %v3654_v7, %s3974_s30 }
 0x5a5   : > { %905 = vrot.lane.b32.xlu1 %v904_v8, %s3976_s11 }
 0x5a9   : > { %919 = vrot.lane.b32.xlu1 %v918_v9, %s3975_s18 }
 0x613   : > { %v895_v10 = vpop.permute.xlu1 %894 }
 0x614   : > { %v897_v13 = vmul.f32 %v3652_v58, %v895_v10  ;;  %v3228_v10 = vld [vmem:[%s4875_s1 + $0x6] sm:$0x3] }
 0x617   : > { %v4296_v17 = vpop.permute.xlu1 %905 }
 0x618   : > { %v908_v18 = vsub.f32 %v897_v13, %v4296_v17 }
 0x61a   : > { %v911_v19 = vmul.f32 %v909_v16, %v908_v18 }
 0x61b   : > { %v4299_v20 = vpop.permute.xlu1 %919 }
 0x61c   : > { %v913_v21 = vrot.slane %v911_v19, 2  ;;  %v922_v22 = vsub.f32 %v891_v6, %v4299_v20  ;;  %v1204_v19 = vrot.slane %v4171_v0, 2 }
 0x61e   : > { %v923_v23 = vmul.f32 %v922_v22, %v909_v16  ;;  %914 = vrot.lane.b32.xlu0 %v913_v21, %s3975_s18  ;;  %v1218_v21 = vrot.slane %v4176_v1, 2 }
 0x620   : > { %v925_v24 = vrot.slane %v923_v23, 2 }
 0x622   : > { %926 = vrot.lane.b32.xlu0 %v925_v24, %s3976_s11 }
 0x690   : > { %v915_v25 = vpop.permute.xlu0 %914 }
 0x691   : > { %v4305_v26 = vadd.f32 %v915_v25, %v4171_v0 }
 0x693   : > { %3399 = vmatmul.mubr.msk.f32.vlgmr.msra.gmra.mxu0 %vm659_vm3, %v4305_v26 }
 0x694   : > { %v927_v27 = vpop.permute.xlu0 %926  ;;  %3413 = vmatpush3.msra.mxu0 %v4188_v5  ;;  %3420 = vmatprep.mubr.msk.f32.mxu0 %vm3972_vm2, %v3971_v15 }
 0x695   : > { %v929_v28 = vadd.f32 %v927_v27, %v4176_v1  ;;  %3414 = vmatprep.subr.mxu0 %v3971_v15 }
 0x696   : > { %3415 = vmatpush3.msra.mxu0 %v4186_v4 }
 0x697   : > { %v1027_v29 = vrot.slane %v929_v28, 4  ;;  %3416 = vmatprep.subr.mxu0 %v3971_v15 }
 0x698   : > { %3417 = vmatpush3.msra.mxu0 %v4184_v3 }
 0x699   : > { %1028 = vrot.lane.b32.xlu0 %v1027_v29, %s3975_s18  ;;  %3418 = vmatprep.subr.mxu0 %v3971_v15 }
 0x69a   : > { %3419 = vmatpush3.msra.mxu0 %v4178_v2 }
 0x69b   : > { %3434 = vmatprep.subr.mxu0 %v3971_v15 }
 0x69d   : > { %1052 = vperm.xlu0 %3638, %v3225_v30  }
 0x6a1   : > { %1055 = vrot.lane.b32.xlu0 %v1054_v35, %s3976_s11 }
 0x6a5   : > { %1069 = vrot.lane.b32.xlu0 %v1068_v37, %s3975_s18 }
 0x70b   : > { %v1029_v46 = vpop.permute.xlu0 %1028 }
 0x718   : > { %v1053_v51 = vpop.permute.xlu0 %1052 }
 0x719   : > { %v1059_v56 = vrot.slane %v1053_v51, 4 }
 0x71c   : > { %v4332_v52 = vpop.permute.xlu0 %1055 }
 0x720   : > { %v4334_v53 = vpop.permute.xlu0 %1069 }
 0x753   : > { %v1011_v31 = vpop.f32.mrf.mxu0 }
 0x754   : > { %v1016_v32 = vrot.slane %v1011_v31, 4 }
 0x755   : > { %v3400_v33 = vpop.f32.mrf.mxu0 }
 0x756   : > { %v1018_v34 = vadd.f32 %v1016_v32, %v4203_v14 }
 0x758   : > { %3655 = vtanh.f32 %v1018_v34  ;;  %v3224_v40 = vmul.f32 -1.442695, %v1018_v34 }
 0x75a   : > { %3657 = vpow2.f32 %v3224_v40 }
 0x765   : > { %v3656_v38 = vpop.eup %3655 }
 0x766   : > { %1033 = vrot.lane.b32.xlu1 %v3656_v38, %s3974_s30 }
 0x767   : > { %v3658_v41 = vpop.eup %3657 }
 0x768   : > { %v1022_v42 = vadd.f32 1.0, %v3658_v41 }
 0x76a   : > { %3659 = vrcp.f32 %v1022_v42 }
 0x777   : > { %v3660_v43 = vpop.eup %3659 }
 0x778   : > { %v1031_v47 = vmul.f32 %v3660_v43, %v1029_v46 }
 0x7d8   : > { %v1034_v44 = vpop.permute.xlu1 %1033 }
 0x7d9   : > { %v1036_v45 = vmul.f32 %v3660_v43, %v1034_v44 }
 0x7db   : > { %1038 = vrot.lane.b32.xlu1 %v1036_v45, %s3975_s18 }
 0x84d   : > { %v1039_v48 = vpop.permute.xlu1 %1038 }
 0x84e   : > { %v1041_v49 = vadd.f32 %v1039_v48, %v1031_v47 }
 0x850   : > { %3661 = vtanh.f32 %v1041_v49  ;;  %v1072_v57 = vsub.f32 %v1041_v49, %v4334_v53 }
 0x852   : > { %v1073_v60 = vmul.f32 %v1072_v57, %v1059_v56 }
 0x854   : > { %v1075_v62 = vrot.slane %v1073_v60, 4 }
 0x85d   : > { %v3662_v50 = vpop.eup %3661 }
 0x85e   : > { %1044 = vrot.lane.b32.xlu1 %v3662_v50, %s3974_s30 }
 0x8d0   : > { %v1045_v54 = vpop.permute.xlu1 %1044 }
 0x8d1   : > { %v1047_v55 = vmul.f32 %v3660_v43, %v1045_v54 }
 0x8d3   : > { %v1058_v58 = vsub.f32 %v1047_v55, %v4332_v52  ;;  %v3231_v55 = vld [vmem:[%s4875_s1 + $0x8] sm:$0x3] }
 0x8d5   : > { %v1061_v59 = vmul.f32 %v1059_v56, %v1058_v58 }
 0x8d7   : > { %v1063_v61 = vrot.slane %v1061_v59, 4 }
 0x8d9   : > { %1064 = vrot.lane.b32.xlu1 %v1063_v61, %s3975_s18 }
 0x8dd   : > { %1076 = vrot.lane.b32.xlu1 %v1075_v62, %s3976_s11 }
 0x94b   : > { %v1065_v63 = vpop.permute.xlu1 %1064 }
 0x94c   : > { %v4341_v6 = vadd.f32 %v1065_v63, %v4171_v0 }
 0x94e   : > { %3410 = vmatmul.mubr.msk.f32.vlgmr.msra.gmra.mxu1 %vm659_vm3, %v4341_v6 }
 0x94f   : > { %v1077_v7 = vpop.permute.xlu1 %1076  ;;  %3424 = vmatpush3.msra.mxu1 %v4188_v5  ;;  %3431 = vmatprep.mubr.msk.f32.mxu1 %vm3972_vm2, %v3971_v15 }
 0x950   : > { %v1079_v8 = vadd.f32 %v1077_v7, %v4176_v1  ;;  %3425 = vmatprep.subr.mxu1 %v3971_v15 }
 0x951   : > { %3426 = vmatpush3.msra.mxu1 %v4186_v4 }
 0x952   : > { %v1177_v9 = vrot.slane %v1079_v8, 2  ;;  %3427 = vmatprep.subr.mxu1 %v3971_v15 }
 0x953   : > { %3428 = vmatpush3.msra.mxu1 %v4184_v3 }
 0x954   : > { %1178 = vrot.lane.b32.xlu1 %v1177_v9, %s3975_s18  ;;  %3429 = vmatprep.subr.mxu1 %v3971_v15 }
 0x955   : > { %3430 = vmatpush3.msra.mxu1 %v4178_v2 }
 0x956   : > { %3445 = vmatprep.subr.mxu1 %v3971_v15 }
 0x958   : > { %1202 = vperm.xlu1 %3637, %v3228_v10  }
 0x95c   : > { %1205 = vrot.lane.b32.xlu1 %v1204_v19, %s3976_s11 }
 0x960   : > { %1219 = vrot.lane.b32.xlu1 %v1218_v21, %s3975_s18 }
 0x9c6   : > { %v1179_v30 = vpop.permute.xlu1 %1178 }
 0x9d3   : > { %v1203_v35 = vpop.permute.xlu1 %1202 }
 0x9d4   : > { %v1209_v42 = vrot.slane %v1203_v35, 2 }
 0x9d7   : > { %v4368_v37 = vpop.permute.xlu1 %1205 }
 0x9db   : > { %v4370_v38 = vpop.permute.xlu1 %1219 }
 0xa0e   : > { %v1161_v11 = vpop.f32.mrf.mxu1 }
 0xa0f   : > { %v1166_v13 = vrot.slane %v1161_v11, 2 }
 0xa10   : > { %v3411_v16 = vpop.f32.mrf.mxu1 }
 0xa11   : > { %v1168_v18 = vadd.f32 %v1166_v13, %v4203_v14 }
 0xa13   : > { %3663 = vtanh.f32 %v1168_v18  ;;  %v3227_v23 = vmul.f32 -1.442695, %v1168_v18 }
 0xa15   : > { %3665 = vpow2.f32 %v3227_v23 }
 0xa20   : > { %v3664_v22 = vpop.eup %3663 }
 0xa21   : > { %1183 = vrot.lane.b32.xlu0 %v3664_v22, %s3974_s30 }
 0xa22   : > { %v3666_v24 = vpop.eup %3665 }
 0xa23   : > { %v1172_v25 = vadd.f32 1.0, %v3666_v24 }
 0xa25   : > { %3667 = vrcp.f32 %v1172_v25 }
 0xa32   : > { %v3668_v27 = vpop.eup %3667 }
 0xa33   : > { %v1181_v31 = vmul.f32 %v3668_v27, %v1179_v30 }
 0xa93   : > { %v1184_v28 = vpop.permute.xlu0 %1183 }
 0xa94   : > { %v1186_v29 = vmul.f32 %v3668_v27, %v1184_v28 }
 0xa96   : > { %1188 = vrot.lane.b32.xlu0 %v1186_v29, %s3975_s18 }
 0xb08   : > { %v1189_v32 = vpop.permute.xlu0 %1188 }
 0xb09   : > { %v1191_v33 = vadd.f32 %v1189_v32, %v1181_v31 }
 0xb0b   : > { %3669 = vtanh.f32 %v1191_v33  ;;  %v1222_v43 = vsub.f32 %v1191_v33, %v4370_v38 }
 0xb0d   : > { %v1223_v46 = vmul.f32 %v1222_v43, %v1209_v42 }
 0xb0f   : > { %v1225_v48 = vrot.slane %v1223_v46, 6 }
 0xb18   : > { %v3670_v34 = vpop.eup %3669 }
 0xb19   : > { %1194 = vrot.lane.b32.xlu0 %v3670_v34, %s3974_s30 }
 0xb8b   : > { %v1195_v40 = vpop.permute.xlu0 %1194 }
 0xb8c   : > { %v1197_v41 = vmul.f32 %v3668_v27, %v1195_v40 }
 0xb8e   : > { %v1208_v44 = vsub.f32 %v1197_v41, %v4368_v37 }
 0xb90   : > { %v1211_v45 = vmul.f32 %v1209_v42, %v1208_v44 }
 0xb92   : > { %v1213_v47 = vrot.slane %v1211_v45, 6 }
 0xb94   : > { %1214 = vrot.lane.b32.xlu0 %v1213_v47, %s3975_s18 }
 0xb98   : > { %1226 = vrot.lane.b32.xlu0 %v1225_v48, %s3976_s11 }
 0xc06   : > { %v1215_v49 = vpop.permute.xlu0 %1214 }
 0xc07   : > { %v4377_v50 = vadd.f32 %v1215_v49, %v4171_v0 }
 0xc09   : > { %3421 = vmatmul.mubr.msk.f32.vlgmr.msra.gmra.mxu0 %vm659_vm3, %v4377_v50 }
 0xc0a   : > { %v1227_v51 = vpop.permute.xlu0 %1226  ;;  %3435 = vmatpush3.msra.mxu0 %v4188_v5  ;;  %3442 = vmatprep.mubr.msk.f32.mxu0 %vm3972_vm2, %v3971_v15 }
 0xc0b   : > { %v1229_v54 = vadd.f32 %v1227_v51, %v4176_v1  ;;  %3436 = vmatprep.subr.mxu0 %v3971_v15 }
 0xc0c   : > { %3437 = vmatpush3.msra.mxu0 %v4186_v4 }
 0xc0d   : > { %1324 = vrot.lane.b32.xlu0 %v1229_v54, %s3975_s18  ;;  %3438 = vmatprep.subr.mxu0 %v3971_v15 }
 0xc0e   : > { %3439 = vmatpush3.msra.mxu0 %v4184_v3 }
 0xc0f   : > { %3440 = vmatprep.subr.mxu0 %v3971_v15 }
 0xc10   : > { %3441 = vmatpush3.msra.mxu0 %v4178_v2 }
 0xc11   : > { %1348 = vperm.xlu0 %3638, %v3231_v55  }
 0xc7f   : > { %v1325_v9 = vpop.permute.xlu0 %1324 }
 0xc8c   : > { %v1349_v19 = vpop.permute.xlu0 %1348 }
 0xcc9   : > { %v1311_v56 = vpop.f32.mrf.mxu0 }
 0xcca   : > { %v1315_v57 = vadd.f32 %v1311_v56, %v4201_v12 }
 0xccb   : > { %v3422_v58 = vpop.f32.mrf.mxu0 }
 0xccc   : > { %3671 = vtanh.f32 %v1315_v57  ;;  %v3230_v60 = vmul.f32 -1.442695, %v1315_v57 }
 0xcce   : > { %3673 = vpow2.f32 %v3230_v60 }
 0xcd9   : > { %v3672_v59 = vpop.eup %3671 }
 0xcda   : > { %1329 = vrot.lane.b32.xlu1 %v3672_v59, %s3974_s30 }
 0xcdb   : > { %v3674_v61 = vpop.eup %3673 }
 0xcdc   : > { %v1319_v62 = vadd.f32 1.0, %v3674_v61 }
 0xcde   : > { %3675 = vrcp.f32 %v1319_v62 }
 0xceb   : > { %v3676_v63 = vpop.eup %3675 }
 0xcec   : > { %v1327_v10 = vmul.f32 %v3676_v63, %v1325_v9 }
 0xd4c   : > { %v1330_v7 = vpop.permute.xlu1 %1329 }
 0xd4d   : > { %v1332_v8 = vmul.f32 %v3676_v63, %v1330_v7 }
 0xd4f   : > { %1334 = vrot.lane.b32.xlu1 %v1332_v8, %s3975_s18 }
 0xdc1   : > { %v1335_v11 = vpop.permute.xlu1 %1334 }
 0xdc2   : > { %v1337_v13 = vadd.f32 %v1335_v11, %v1327_v10 }
 0xdc4   : > { %3677 = vtanh.f32 %v1337_v13  ;;  %v1358_v16 = vsub.f32 %v1337_v13, %v4263_v39  ;;  %v3234_v39 = vld [vmem:[%s4875_s1 + $0xa] sm:$0x3] }
 0xdc6   : > { %v1359_v21 = vmul.f32 %v1358_v16, %v1349_v19 }
 0xdd1   : > { %v3678_v18 = vpop.eup %3677 }
 0xdd2   : > { %1340 = vrot.lane.b32.xlu1 %v3678_v18, %s3974_s30 }
 0xdd6   : > { %1361 = vrot.lane.b32.xlu1 %v1359_v21, %s3976_s11 }
 0xe44   : > { %v1341_v22 = vpop.permute.xlu1 %1340 }
 0xe45   : > { %v1343_v23 = vmul.f32 %v3676_v63, %v1341_v22 }
 0xe47   : > { %v1351_v24 = vsub.f32 %v1343_v23, %v4261_v36 }
 0xe48   : > { %v1362_v25 = vpop.permute.xlu1 %1361 }
 0xe49   : > { %v1364_v27 = vadd.f32 %v1362_v25, %v4176_v1  ;;  %v1352_v28 = vmul.f32 %v1351_v24, %v1349_v19 }
 0xe4b   : > { %v1451_v29 = vrot.slane %v1364_v27, 6  ;;  %1354 = vrot.lane.b32.xlu0 %v1352_v28, %s3975_s18 }
 0xe4d   : > { %1452 = vrot.lane.b32.xlu1 %v1451_v29, %s3975_s18 }
 0xe51   : > { %1476 = vperm.xlu1 %3637, %v3234_v39  }
 0xebd   : > { %v1355_v30 = vpop.permute.xlu0 %1354 }
 0xebe   : > { %v1357_v31 = vadd.f32 %v1355_v30, %v4171_v0 }
 0xec0   : > { %1365 = vst.msk [vmem:[%s4205_s2 + $0x2] sm:$0x3] %vm553_vm0, %v1357_v31  ;;  %3432 = vmatmul.mubr.msk.f32.vlgmr.msra.gmra.mxu1 %vm659_vm3, %v1357_v31 }
 0xec1   : > { %3446 = vmatpush3.msra.mxu1 %v4188_v5  ;;  %3453 = vmatprep.mubr.msk.f32.mxu1 %vm3972_vm2, %v3971_v15 }
 0xec2   : > { %3447 = vmatprep.subr.mxu1 %v3971_v15 }
 0xec3   : > { %3448 = vmatpush3.msra.mxu1 %v4186_v4 }
 0xec4   : > { %3449 = vmatprep.subr.mxu1 %v3971_v15 }
 0xec5   : > { %3450 = vmatpush3.msra.mxu1 %v4184_v3 }
 0xec6   : > { %3451 = vmatprep.subr.mxu1 %v3971_v15  ;;  %v1453_v15 = vpop.permute.xlu1 %1452 }
 0xec7   : > { %3452 = vmatpush3.msra.mxu1 %v4178_v2 }
 0xecc   : > { %v1477_v49 = vpop.permute.xlu1 %1476 }
 0xecd   : > { %v1479_v54 = vrot.slane %v1477_v49, 6 }
 0xf80   : > { %v1435_v36 = vpop.f32.mrf.mxu1 }
 0xf81   : > { %v1440_v32 = vrot.slane %v1435_v36, 6 }
 0xf82   : > { %v3433_v33 = vpop.f32.mrf.mxu1 }
 0xf83   : > { %v1442_v34 = vadd.f32 %v1440_v32, %v4201_v12 }
 0xf85   : > { %3679 = vtanh.f32 %v1442_v34  ;;  %v3233_v40 = vmul.f32 -1.442695, %v1442_v34 }
 0xf87   : > { %3681 = vpow2.f32 %v3233_v40 }
 0xf92   : > { %v3680_v35 = vpop.eup %3679 }
 0xf93   : > { %1457 = vrot.lane.b32.xlu0 %v3680_v35, %s3974_s30 }
 0xf94   : > { %v3682_v41 = vpop.eup %3681 }
 0xf95   : > { %v1446_v42 = vadd.f32 1.0, %v3682_v41 }
 0xf97   : > { %3683 = vrcp.f32 %v1446_v42 }
 0xfa4   : > { %v3684_v43 = vpop.eup %3683 }
 0xfa5   : > { %v1455_v46 = vmul.f32 %v3684_v43, %v1453_v15 }
0x1005   : > { %v1458_v44 = vpop.permute.xlu0 %1457 }
0x1006   : > { %v1460_v45 = vmul.f32 %v3684_v43, %v1458_v44 }
0x1008   : > { %1462 = vrot.lane.b32.xlu0 %v1460_v45, %s3975_s18 }
0x107a   : > { %v1463_v47 = vpop.permute.xlu0 %1462 }
0x107b   : > { %v1465_v48 = vadd.f32 %v1463_v47, %v1455_v46 }
0x107d   : > { %3685 = vtanh.f32 %v1465_v48  ;;  %v1488_v51 = vsub.f32 %v1465_v48, %v4299_v20  ;;  %v3237_v20 = vld [vmem:[%s4875_s1 + $0xc] sm:$0x3] }
0x107f   : > { %v1489_v55 = vmul.f32 %v1488_v51, %v1479_v54 }
0x1081   : > { %v1491_v57 = vrot.slane %v1489_v55, 2 }
0x108a   : > { %v3686_v56 = vpop.eup %3685 }
0x108b   : > { %1468 = vrot.lane.b32.xlu0 %v3686_v56, %s3974_s30 }
0x108f   : > { %1492 = vrot.lane.b32.xlu0 %v1491_v57, %s3976_s11 }
0x10fd   : > { %v1469_v58 = vpop.permute.xlu0 %1468 }
0x10fe   : > { %v1471_v59 = vmul.f32 %v3684_v43, %v1469_v58 }
0x1100   : > { %v1478_v60 = vsub.f32 %v1471_v59, %v4296_v17 }
0x1101   : > { %v1493_v61 = vpop.permute.xlu0 %1492 }
0x1102   : > { %v1495_v62 = vadd.f32 %v1493_v61, %v4176_v1  ;;  %v1481_v63 = vmul.f32 %v1479_v54, %v1478_v60 }
0x1104   : > { %v1592_v7 = vrot.slane %v1495_v62, 4  ;;  %v1483_v8 = vrot.slane %v1481_v63, 2 }
0x1106   : > { %1593 = vrot.lane.b32.xlu0 %v1592_v7, %s3975_s18  ;;  %1484 = vrot.lane.b32.xlu1 %v1483_v8, %s3975_s18  ;;  %v3977_v8 = vmov 1983009808  }
0x110a   : > { %1617 = vperm.xlu0 %3638, %v3237_v20   ;;  %v932_v20 = vunpack.c.l.s4 %v3977_v8 }
0x1178   : > { %v1485_v9 = vpop.permute.xlu1 %1484  ;;  %v1594_v27 = vpop.permute.xlu0 %1593 }
0x1179   : > { %v4435_v10 = vadd.f32 %v1485_v9, %v4171_v0  ;;  %v934_v9 = vlaneseq }
0x117b   : > { %3443 = vmatmul.mubr.msk.f32.vlgmr.msra.gmra.mxu0 %vm659_vm3, %v4435_v10 }
0x1185   : > { %v1618_v30 = vpop.permute.xlu0 %1617 }
0x1186   : > { %v1620_v36 = vrot.slane %v1618_v30, 4 }
0x123b   : > { %v1576_v17 = vpop.f32.mrf.mxu0 }
0x123c   : > { %v1581_v11 = vrot.slane %v1576_v17, 4  ;;  %v933_v17 = vunpack.c.0.s8 %v932_v20 }
0x123d   : > { %v3444_v13 = vpop.f32.mrf.mxu0 }
0x123e   : > { %v1583_v16 = vadd.f32 %v1581_v11, %v4201_v12  ;;  %v935_v11 = vshrl.u32 %v934_v9, 7 }
0x1240   : > { %3687 = vtanh.f32 %v1583_v16  ;;  %v3236_v19 = vmul.f32 -1.442695, %v1583_v16  ;;  %v936_v16 = vsub.s32 %v933_v17, %v935_v11 }
0x1242   : > { %3689 = vpow2.f32 %v3236_v19 }
0x124d   : > { %v3688_v18 = vpop.eup %3687 }
0x124e   : > { %1598 = vrot.lane.b32.xlu1 %v3688_v18, %s3974_s30 }
0x124f   : > { %v3690_v21 = vpop.eup %3689 }
0x1250   : > { %v1587_v22 = vadd.f32 1.0, %v3690_v21 }
0x1252   : > { %3691 = vrcp.f32 %v1587_v22  ;;  %v937_v22 = vrot.slane %v4305_v26, %v936_v16 }
0x125f   : > { %v3692_v23 = vpop.eup %3691 }
0x1260   : > { %v1596_v28 = vmul.f32 %v3692_v23, %v1594_v27 }
0x12c0   : > { %v1599_v24 = vpop.permute.xlu1 %1598 }
0x12c1   : > { %v1601_v25 = vmul.f32 %v3692_v23, %v1599_v24 }
0x12c3   : > { %1603 = vrot.lane.b32.xlu1 %v1601_v25, %s3975_s18 }
0x1335   : > { %v1604_v29 = vpop.permute.xlu1 %1603 }
0x1336   : > { %v1606_v39 = vadd.f32 %v1604_v29, %v1596_v28 }
0x1338   : > { %3693 = vtanh.f32 %v1606_v39  ;;  %v1629_v31 = vsub.f32 %v1606_v39, %v4334_v53  ;;  %v3240_v53 = vld [vmem:[%s4875_s1 + $0xe] sm:$0x3] }
0x133a   : > { %v1630_v32 = vmul.f32 %v1629_v31, %v1620_v36 }
0x133c   : > { %v1632_v34 = vrot.slane %v1630_v32, 4  ;;  %v1237_v32 = vrot.slane %v4377_v50, %v936_v16 }
0x1345   : > { %v3694_v33 = vpop.eup %3693 }
0x1346   : > { %1609 = vrot.lane.b32.xlu1 %v3694_v33, %s3974_s30 }
0x134a   : > { %1633 = vrot.lane.b32.xlu1 %v1632_v34, %s3976_s11 }
0x13b8   : > { %v1610_v35 = vpop.permute.xlu1 %1609 }
0x13b9   : > { %v1612_v40 = vmul.f32 %v3692_v23, %v1610_v35 }
0x13bb   : > { %v1619_v41 = vsub.f32 %v1612_v40, %v4332_v52 }
0x13bc   : > { %v1634_v42 = vpop.permute.xlu1 %1633 }
0x13bd   : > { %v1636_v43 = vadd.f32 %v1634_v42, %v4176_v1  ;;  %v1622_v44 = vmul.f32 %v1620_v36, %v1619_v41  ;;  %v1503_v36 = vrot.slane %v4435_v10, %v936_v16 }
0x13bf   : > { %v1733_v45 = vrot.slane %v1636_v43, 2  ;;  %v1624_v15 = vrot.slane %v1622_v44, 4 }
0x13c1   : > { %1625 = vrot.lane.b32.xlu0 %v1624_v15, %s3975_s18  ;;  %1734 = vrot.lane.b32.xlu1 %v1733_v45, %s3975_s18 }
0x13c5   : > { %1758 = vperm.xlu1 %3637, %v3240_v53  }
0x1433   : > { %v1626_v46 = vpop.permute.xlu0 %1625  ;;  %v1735_v61 = vpop.permute.xlu1 %1734 }
0x1434   : > { %v1628_v47 = vadd.f32 %v1626_v46, %v4171_v0 }
0x1436   : > { %3454 = vmatmul.mubr.msk.f32.vlgmr.msra.gmra.mxu1 %vm659_vm3, %v1628_v47  ;;  %v1644_v25 = vrot.slane %v1628_v47, %v936_v16 }
0x1440   : > { %v1759_v13 = vpop.permute.xlu1 %1758 }
0x1441   : > { %v1761_v21 = vrot.slane %v1759_v13, 2 }
0x14f6   : > { %v1717_v52 = vpop.f32.mrf.mxu1 }
0x14f7   : > { %v1722_v48 = vrot.slane %v1717_v52, 2 }
0x14f8   : > { %v3455_v49 = vpop.f32.mrf.mxu1 }
0x14f9   : > { %v1724_v51 = vadd.f32 %v1722_v48, %v4201_v12 }
0x14fb   : > { %3695 = vtanh.f32 %v1724_v51  ;;  %v3239_v55 = vmul.f32 -1.442695, %v1724_v51 }
0x14fd   : > { %3697 = vpow2.f32 %v3239_v55 }
0x1508   : > { %v3696_v54 = vpop.eup %3695 }
0x1509   : > { %1739 = vrot.lane.b32.xlu0 %v3696_v54, %s3974_s30 }
0x150a   : > { %v3698_v56 = vpop.eup %3697 }
0x150b   : > { %v1728_v57 = vadd.f32 1.0, %v3698_v56 }
0x150d   : > { %3699 = vrcp.f32 %v1728_v57 }
0x151a   : > { %v3700_v58 = vpop.eup %3699 }
0x151b   : > { %v1737_v62 = vmul.f32 %v3700_v58, %v1735_v61 }
0x157b   : > { %v1740_v59 = vpop.permute.xlu0 %1739 }
0x157c   : > { %v1742_v60 = vmul.f32 %v3700_v58, %v1740_v59 }
0x157e   : > { %1744 = vrot.lane.b32.xlu0 %v1742_v60, %s3975_s18 }
0x15f0   : > { %v1745_v63 = vpop.permute.xlu0 %1744 }
0x15f1   : > { %v1747_v7 = vadd.f32 %v1745_v63, %v1737_v62 }
0x15f3   : > { %3701 = vtanh.f32 %v1747_v7  ;;  %v1770_v18 = vsub.f32 %v1747_v7, %v4370_v38 }
0x15f5   : > { %v1771_v23 = vmul.f32 %v1770_v18, %v1761_v21 }
0x15f7   : > { %v1773_v24 = vrot.slane %v1771_v23, 6 }
0x1600   : > { %v3702_v19 = vpop.eup %3701 }
0x1601   : > { %1750 = vrot.lane.b32.xlu0 %v3702_v19, %s3974_s30 }
0x1605   : > { %938 = vrot.lane.b32.xlu0 %v937_v22, %s3975_s18 }
0x1609   : > { %1774 = vrot.lane.b32.xlu0 %v1773_v24, %s3976_s11 }
0x160d   : > { %1645 = vrot.lane.b32.xlu0 %v1644_v25, %s3974_s30 }
0x1673   : > { %v1751_v27 = vpop.permute.xlu0 %1750 }
0x1674   : > { %v1753_v28 = vmul.f32 %v3700_v58, %v1751_v27 }
0x1676   : > { %v1760_v38 = vsub.f32 %v1753_v28, %v4368_v37  ;;  %v1087_v37 = vrot.slane %v4341_v6, %v936_v16 }
0x1677   : > { %v939_v29 = vpop.permute.xlu0 %938 }
0x1678   : > { %942 = vst.msk [vmem:[%s4205_s2] sm:$0x3] %vm941_vm4, %v939_v29  ;;  %v1763_v26 = vmul.f32 %v1761_v21, %v1760_v38 }
0x167a   : > { %v1765_v39 = vrot.slane %v1763_v26, 6 }
0x167b   : > { %v1775_v30 = vpop.permute.xlu0 %1774 }
0x167c   : > { %v1777_v31 = vadd.f32 %v1775_v30, %v4176_v1  ;;  %1766 = vrot.lane.b32.xlu1 %v1765_v39, %s3975_s18 }
0x167e   : > { %1794 = vst.msk [vmem:[%s4213_s9] sm:$0x3] %vm553_vm0, %v1777_v31  ;;  %1796 = vst.msk [vmem:[#allocation3] sm:$0x3] %vm553_vm0, %v1777_v31 }
0x167f   : > { %v1646_v6 = vpop.permute.xlu0 %1645 }
0x1680   : > { %1504 = vrot.lane.b32.xlu1 %v1503_v36, %s3975_s18 }
0x1684   : > { %1088 = vrot.lane.b32.xlu1 %v1087_v37, %s3974_s30 }
0x1688   : > { %1238 = vrot.lane.b32.xlu1 %v1237_v32, %s3976_s11 }
0x16ee   : > { %v1767_v33 = vpop.permute.xlu1 %1766 }
0x16ef   : > { %v1769_v10 = vadd.f32 %v1767_v33, %v4171_v0 }
0x16f1   : > { %1793 = vst.msk [vmem:[%s4209_s7] sm:$0x3] %vm553_vm0, %v1769_v10  ;;  %1795 = vst.msk [vmem:[#allocation2] sm:$0x3] %vm553_vm0, %v1769_v10  ;;  %v1785_v34 = vrot.slane %v1769_v10, %v936_v16 }
0x16f2   : > { %v1505_v35 = vpop.permute.xlu1 %1504 }
0x16f3   : > { %1507 = vst.msk [vmem:[%s4205_s2 + $0x2] sm:$0x3] %vm941_vm4, %v1505_v35  ;;  %1786 = vrot.lane.b32.xlu0 %v1785_v34, %s3976_s11 }
0x16f4   : > { %1648 = vst.msk [vmem:[%s4205_s2 + $0x2] sm:$0x3] %vm1091_vm5, %v1646_v6 }
0x16f6   : > { %v1089_v50 = vpop.permute.xlu1 %1088 }
0x16f7   : > { %1092 = vst.msk [vmem:[%s4205_s2] sm:$0x3] %vm1091_vm5, %v1089_v50 }
0x16fa   : > { %v1239_v40 = vpop.permute.xlu1 %1238 }
0x16fb   : > { %1242 = vst.msk [vmem:[%s4205_s2] sm:$0x3] %vm1241_vm6, %v1239_v40 }
0x1765   : > { %v1787_v41 = vpop.permute.xlu0 %1786 }
0x1766   : > { %1789 = vst.msk [vmem:[%s4205_s2 + $0x2] sm:$0x3] %vm1241_vm6, %v1787_v41 }
0x1767 PF: > { %p3241_p2 = scmp.ne.s32.totalorder %s3957_s12, 1 }
0x1768   : > { %s3981_s30 = smov (!%p3241_p2), 64   ;;  %s3982_s18 = smov (!%p3241_p2), 32  }
0x1769   : > { %1800 = sbr.rel (%p3241_p2) target bundleno = 11597 (0x2d4d), region = 72  ;;  %s3983_s23 = smov (!%p3241_p2), 96  }
0x176e   : > { %v3978_v42 = vmov 0.0   ;;  %vm3979_vm7 = vmmov 0   ;;  %v1801_v43 = vld [vmem:[#allocation2] sm:$0x3]  ;;  %vm1803_vm8 = vcmask 261120   ;;  %v3980_v46 = vmov 0  }
0x176f   : > { %3456 = vmatprep.subr.mxu0 %v3978_v42  ;;  %3464 = vmatprep.mubr.msk.f32.mxu0 %vm3979_vm7, %v3978_v42  ;;  %v1802_v47 = vld [vmem:[#allocation3] sm:$0x3]  ;;  %v3244_v58 = vld [vmem:[%s4875_s1 + $0xe] sm:$0x3]  ;;  %v1917_v59 = vrot.slane %v4171_v0, 2  ;;  %v1932_v60 = vrot.slane %v4176_v1, 2 }
0x1770   : > { %3457 = vmatpush3.msra.mxu0 %v4188_v5  ;;  %3467 = vmatprep.subr.mxu1 %v3978_v42  ;;  %v1889_v48 = vrot.slane %v1802_v47, 2  ;;  %v3247_v10 = vld [vmem:[%s4875_s1 + $0xc] sm:$0x3]  ;;  %vm1955_vm9 = vcmask 1042176   ;;  %vm2105_vm10 = vcmask 779776   ;;  %vm2255_vm11 = vcmask 517376  }
0x1771   : > { %3458 = vmatprep.subr.mxu0 %v3978_v42  ;;  %3468 = vmatpush3.msra.mxu1 %v4188_v5 }
0x1772   : > { %3459 = vmatpush3.msra.mxu0 %v4186_v4  ;;  %3469 = vmatprep.subr.mxu1 %v3978_v42 }
0x1773   : > { %3460 = vmatprep.subr.mxu0 %v3978_v42  ;;  %3470 = vmatpush3.msra.mxu1 %v4186_v4 }
0x1774   : > { %3461 = vmatpush3.msra.mxu0 %v4184_v3  ;;  %3471 = vmatprep.subr.mxu1 %v3978_v42 }
0x1775   : > { %3462 = vmatprep.subr.mxu0 %v3978_v42  ;;  %3472 = vmatpush3.msra.mxu1 %v4184_v3 }
0x1776   : > { %3463 = vmatpush3.msra.mxu0 %v4178_v2  ;;  %3473 = vmatprep.subr.mxu1 %v3978_v42 }
0x1777   : > { %3465 = vmatmul.mubr.msk.f32.vlgmr.msra.gmra.mxu0 %vm1803_vm8, %v1801_v43  ;;  %3474 = vmatpush3.msra.mxu1 %v4178_v2 }
0x1778   : > { %3475 = vmatprep.mubr.msk.f32.mxu1 %vm3979_vm7, %v3978_v42  ;;  %3478 = vmatprep.subr.mxu0 %v3978_v42 }
0x1779   : > { %3479 = vmatpush3.msra.mxu0 %v4188_v5  ;;  %3486 = vmatprep.mubr.msk.f32.mxu0 %vm3979_vm7, %v3978_v42 }
0x177a   : > { %3480 = vmatprep.subr.mxu0 %v3978_v42  ;;  %3489 = vmatprep.subr.mxu1 %v3978_v42 }
0x177b   : > { %3481 = vmatpush3.msra.mxu0 %v4186_v4  ;;  %3703 = vset.pattern.permute.xlu1 %v3980_v46 }
0x177c   : > { %3482 = vmatprep.subr.mxu0 %v3978_v42  ;;  %3704 = vset.pattern.permute.xlu0 %v3980_v46 }
0x177d   : > { %3483 = vmatpush3.msra.mxu0 %v4184_v3 }
0x177e   : > { %3484 = vmatprep.subr.mxu0 %v3978_v42 }
0x177f   : > { %3485 = vmatpush3.msra.mxu0 %v4178_v2 }
0x1780   : > { %3500 = vmatprep.subr.mxu0 %v3978_v42 }
0x1837   : > { %v1873_v44 = vpop.f32.mrf.mxu0 }
0x1838   : > { %v1878_v45 = vrot.slane %v1873_v44, 2 }
0x1839   : > { %v3466_v15 = vpop.f32.mrf.mxu0 }
0x183a   : > { %v1880_v53 = vadd.f32 %v1878_v45, %v4201_v12  ;;  %v2068_v45 = vrot.slane %v4171_v0, 4  ;;  %v2082_v15 = vrot.slane %v4176_v1, 4 }
0x183c   : > { %3705 = vtanh.f32 %v1880_v53  ;;  %v3243_v49 = vmul.f32 -1.442695, %v1880_v53 }
0x183e   : > { %3707 = vpow2.f32 %v3243_v49 }
0x1849   : > { %v3706_v52 = vpop.eup %3705 }
0x184a   : > { %1895 = vrot.lane.b32.xlu0 %v3706_v52, %s3981_s30 }
0x184b   : > { %v3708_v51 = vpop.eup %3707 }
0x184c   : > { %v1884_v54 = vadd.f32 1.0, %v3708_v51 }
0x184e   : > { %1890 = vrot.lane.b32.xlu0 %v1889_v48, %s3982_s18  ;;  %3709 = vrcp.f32 %v1884_v54 }
0x185b   : > { %v3710_v55 = vpop.eup %3709 }
0x18bc   : > { %v1896_v56 = vpop.permute.xlu0 %1895 }
0x18bd   : > { %v1898_v57 = vmul.f32 %v3710_v55, %v1896_v56 }
0x18bf   : > { %1900 = vrot.lane.b32.xlu1 %v1898_v57, %s3982_s18 }
0x18c0   : > { %v1891_v61 = vpop.permute.xlu0 %1890 }
0x18c1   : > { %v1893_v62 = vmul.f32 %v3710_v55, %v1891_v61 }
0x18c3   : > { %1914 = vperm.xlu1 %3703, %v3244_v58  }
0x18c7   : > { %1918 = vrot.lane.b32.xlu1 %v1917_v59, %s3983_s23 }
0x18cb   : > { %1933 = vrot.lane.b32.xlu1 %v1932_v60, %s3982_s18 }
0x1931   : > { %v1901_v63 = vpop.permute.xlu1 %1900 }
0x1932   : > { %v1903_v7 = vadd.f32 %v1901_v63, %v1893_v62 }
0x1934   : > { %3711 = vtanh.f32 %v1903_v7 }
0x193e   : > { %v1915_v20 = vpop.permute.xlu1 %1914 }
0x193f   : > { %v1922_v16 = vrot.slane %v1915_v20, 2 }
0x1941   : > { %v3712_v8 = vpop.eup %3711 }
0x1942   : > { %1906 = vrot.lane.b32.xlu0 %v3712_v8, %s3981_s30  ;;  %v4534_v9 = vpop.permute.xlu1 %1918 }
0x1946   : > { %v4536_v17 = vpop.permute.xlu1 %1933 }
0x1947   : > { %v1936_v18 = vsub.f32 %v1903_v7, %v4536_v17  ;;  %v3250_v7 = vld [vmem:[%s4875_s1 + $0xa] sm:$0x3] }
0x1949   : > { %v1937_v22 = vmul.f32 %v1936_v18, %v1922_v16  ;;  %v2232_v18 = vrot.slane %v4176_v1, 6 }
0x194b   : > { %v1939_v24 = vrot.slane %v1937_v22, 6 }
0x19b4   : > { %v1907_v11 = vpop.permute.xlu0 %1906 }
0x19b5   : > { %v1909_v13 = vmul.f32 %v3710_v55, %v1907_v11 }
0x19b7   : > { %v1921_v19 = vsub.f32 %v1909_v13, %v4534_v9 }
0x19b9   : > { %v1924_v21 = vmul.f32 %v1922_v16, %v1921_v19  ;;  %v2218_v16 = vrot.slane %v4171_v0, 6 }
0x19bb   : > { %v1926_v23 = vrot.slane %v1924_v21, 6 }
0x19bd   : > { %1927 = vrot.lane.b32.xlu0 %v1926_v23, %s3982_s18 }
0x19c1   : > { %1940 = vrot.lane.b32.xlu0 %v1939_v24, %s3983_s23 }
0x1a2f   : > { %v1928_v25 = vpop.permute.xlu0 %1927 }
0x1a30   : > { %v4543_v27 = vadd.f32 %v1928_v25, %v4171_v0 }
0x1a32   : > { %3476 = vmatmul.mubr.msk.f32.vlgmr.msra.gmra.mxu1 %vm1803_vm8, %v4543_v27 }
0x1a33   : > { %v1941_v28 = vpop.permute.xlu0 %1940  ;;  %3490 = vmatpush3.msra.mxu1 %v4188_v5  ;;  %3497 = vmatprep.mubr.msk.f32.mxu1 %vm3979_vm7, %v3978_v42 }
0x1a34   : > { %v1943_v38 = vadd.f32 %v1941_v28, %v4176_v1  ;;  %3491 = vmatprep.subr.mxu1 %v3978_v42 }
0x1a35   : > { %3492 = vmatpush3.msra.mxu1 %v4186_v4 }
0x1a36   : > { %v2041_v29 = vrot.slane %v1943_v38, 4  ;;  %3493 = vmatprep.subr.mxu1 %v3978_v42 }
0x1a37   : > { %3494 = vmatpush3.msra.mxu1 %v4184_v3 }
0x1a38   : > { %2042 = vrot.lane.b32.xlu0 %v2041_v29, %s3982_s18  ;;  %3495 = vmatprep.subr.mxu1 %v3978_v42 }
0x1a39   : > { %3496 = vmatpush3.msra.mxu1 %v4178_v2 }
0x1a3a   : > { %3511 = vmatprep.subr.mxu1 %v3978_v42 }
0x1a3c   : > { %2066 = vperm.xlu0 %3704, %v3247_v10  }
0x1aaa   : > { %v2043_v50 = vpop.permute.xlu0 %2042 }
0x1ab7   : > { %v2067_v46 = vpop.permute.xlu0 %2066 }
0x1ab8   : > { %v2073_v52 = vrot.slane %v2067_v46, 4 }
0x1af2   : > { %v2025_v26 = vpop.f32.mrf.mxu1 }
0x1af3   : > { %v2030_v39 = vrot.slane %v2025_v26, 4 }
0x1af4   : > { %v3477_v30 = vpop.f32.mrf.mxu1 }
0x1af5   : > { %v2032_v31 = vadd.f32 %v2030_v39, %v4201_v12 }
0x1af7   : > { %3713 = vtanh.f32 %v2032_v31  ;;  %v3246_v37 = vmul.f32 -1.442695, %v2032_v31 }
0x1af9   : > { %3715 = vpow2.f32 %v3246_v37 }
0x1b04   : > { %v3714_v36 = vpop.eup %3713 }
0x1b05   : > { %2047 = vrot.lane.b32.xlu1 %v3714_v36, %s3981_s30 }
0x1b06   : > { %v3716_v32 = vpop.eup %3715 }
0x1b07   : > { %v2036_v33 = vadd.f32 1.0, %v3716_v32 }
0x1b09   : > { %3717 = vrcp.f32 %v2036_v33 }
0x1b16   : > { %v3718_v34 = vpop.eup %3717 }
0x1b17   : > { %v2045_v40 = vmul.f32 %v3718_v34, %v2043_v50 }
0x1b77   : > { %v2048_v35 = vpop.permute.xlu1 %2047 }
0x1b78   : > { %v2050_v6 = vmul.f32 %v3718_v34, %v2048_v35 }
0x1b7a   : > { %2052 = vrot.lane.b32.xlu1 %v2050_v6, %s3982_s18 }
0x1bec   : > { %v2053_v41 = vpop.permute.xlu1 %2052 }
0x1bed   : > { %v2055_v43 = vadd.f32 %v2053_v41, %v2045_v40 }
0x1bef   : > { %3719 = vtanh.f32 %v2055_v43 }
0x1bfc   : > { %v3720_v44 = vpop.eup %3719 }
0x1bfd   : > { %2058 = vrot.lane.b32.xlu1 %v3720_v44, %s3981_s30 }
0x1c01   : > { %2069 = vrot.lane.b32.xlu1 %v2068_v45, %s3983_s23 }
0x1c05   : > { %2083 = vrot.lane.b32.xlu1 %v2082_v15, %s3982_s18 }
0x1c6f   : > { %v2059_v53 = vpop.permute.xlu1 %2058 }
0x1c70   : > { %v2061_v47 = vmul.f32 %v3718_v34, %v2059_v53  ;;  %v3253_v53 = vld [vmem:[%s4875_s1 + $0x8] sm:$0x3] }
0x1c73   : > { %v4570_v48 = vpop.permute.xlu1 %2069 }
0x1c74   : > { %v2072_v49 = vsub.f32 %v2061_v47, %v4570_v48 }
0x1c76   : > { %v2075_v51 = vmul.f32 %v2073_v52, %v2072_v49 }
0x1c77   : > { %v4573_v54 = vpop.permute.xlu1 %2083 }
0x1c78   : > { %v2077_v55 = vrot.slane %v2075_v51, 4  ;;  %v2086_v56 = vsub.f32 %v2055_v43, %v4573_v54 }
0x1c7a   : > { %v2087_v57 = vmul.f32 %v2086_v56, %v2073_v52  ;;  %2078 = vrot.lane.b32.xlu0 %v2077_v55, %s3982_s18 }
0x1c7c   : > { %v2089_v58 = vrot.slane %v2087_v57, 4 }
0x1c7e   : > { %2090 = vrot.lane.b32.xlu0 %v2089_v58, %s3983_s23 }
0x1cec   : > { %v2079_v59 = vpop.permute.xlu0 %2078 }
0x1ced   : > { %v4579_v60 = vadd.f32 %v2079_v59, %v4171_v0 }
0x1cef   : > { %3487 = vmatmul.mubr.msk.f32.vlgmr.msra.gmra.mxu0 %vm1803_vm8, %v4579_v60 }
0x1cf0   : > { %v2091_v61 = vpop.permute.xlu0 %2090  ;;  %3501 = vmatpush3.msra.mxu0 %v4188_v5  ;;  %3508 = vmatprep.mubr.msk.f32.mxu0 %vm3979_vm7, %v3978_v42 }
0x1cf1   : > { %v2093_v62 = vadd.f32 %v2091_v61, %v4176_v1  ;;  %3502 = vmatprep.subr.mxu0 %v3978_v42 }
0x1cf2   : > { %3503 = vmatpush3.msra.mxu0 %v4186_v4 }
0x1cf3   : > { %v2191_v63 = vrot.slane %v2093_v62, 6  ;;  %3504 = vmatprep.subr.mxu0 %v3978_v42 }
0x1cf4   : > { %3505 = vmatpush3.msra.mxu0 %v4184_v3 }
0x1cf5   : > { %2192 = vrot.lane.b32.xlu0 %v2191_v63, %s3982_s18  ;;  %3506 = vmatprep.subr.mxu0 %v3978_v42 }
0x1cf6   : > { %3507 = vmatpush3.msra.mxu0 %v4178_v2 }
0x1cf7   : > { %3522 = vmatprep.subr.mxu0 %v3978_v42 }
0x1cf9   : > { %2216 = vperm.xlu0 %3704, %v3250_v7  }
0x1cfd   : > { %2219 = vrot.lane.b32.xlu0 %v2218_v16, %s3983_s23 }
0x1d01   : > { %2233 = vrot.lane.b32.xlu0 %v2232_v18, %s3982_s18 }
0x1d67   : > { %v2193_v38 = vpop.permute.xlu0 %2192 }
0x1d74   : > { %v2217_v31 = vpop.permute.xlu0 %2216 }
0x1d75   : > { %v2223_v10 = vrot.slane %v2217_v31, 6 }
0x1d78   : > { %v4606_v36 = vpop.permute.xlu0 %2219 }
0x1d7c   : > { %v4608_v37 = vpop.permute.xlu0 %2233 }
0x1daf   : > { %v2175_v8 = vpop.f32.mrf.mxu0 }
0x1db0   : > { %v2180_v20 = vrot.slane %v2175_v8, 6 }
0x1db1   : > { %v3488_v11 = vpop.f32.mrf.mxu0 }
0x1db2   : > { %v2182_v13 = vadd.f32 %v2180_v20, %v4201_v12 }
0x1db4   : > { %3721 = vtanh.f32 %v2182_v13  ;;  %v3249_v21 = vmul.f32 -1.442695, %v2182_v13 }
0x1db6   : > { %3723 = vpow2.f32 %v3249_v21 }
0x1dc1   : > { %v3722_v19 = vpop.eup %3721 }
0x1dc2   : > { %2197 = vrot.lane.b32.xlu1 %v3722_v19, %s3981_s30 }
0x1dc3   : > { %v3724_v22 = vpop.eup %3723 }
0x1dc4   : > { %v2186_v23 = vadd.f32 1.0, %v3724_v22 }
0x1dc6   : > { %3725 = vrcp.f32 %v2186_v23 }
0x1dd3   : > { %v3726_v24 = vpop.eup %3725 }
0x1dd4   : > { %v2195_v29 = vmul.f32 %v3726_v24, %v2193_v38 }
0x1e34   : > { %v2198_v25 = vpop.permute.xlu1 %2197 }
0x1e35   : > { %v2200_v28 = vmul.f32 %v3726_v24, %v2198_v25 }
0x1e37   : > { %2202 = vrot.lane.b32.xlu1 %v2200_v28, %s3982_s18 }
0x1ea9   : > { %v2203_v26 = vpop.permute.xlu1 %2202 }
0x1eaa   : > { %v2205_v39 = vadd.f32 %v2203_v26, %v2195_v29  ;;  %v3256_v29 = vld [vmem:[%s4875_s1 + $0x6] sm:$0x3] }
0x1eac   : > { %3727 = vtanh.f32 %v2205_v39  ;;  %v2236_v34 = vsub.f32 %v2205_v39, %v4608_v37 }
0x1eae   : > { %v2237_v50 = vmul.f32 %v2236_v34, %v2223_v10 }
0x1eb0   : > { %v2239_v41 = vrot.slane %v2237_v50, 2 }
0x1eb9   : > { %v3728_v30 = vpop.eup %3727 }
0x1eba   : > { %2208 = vrot.lane.b32.xlu1 %v3728_v30, %s3981_s30 }
0x1f2c   : > { %v2209_v32 = vpop.permute.xlu1 %2208 }
0x1f2d   : > { %v2211_v33 = vmul.f32 %v3726_v24, %v2209_v32 }
0x1f2f   : > { %v2222_v35 = vsub.f32 %v2211_v33, %v4606_v36 }
0x1f31   : > { %v2225_v6 = vmul.f32 %v2223_v10, %v2222_v35 }
0x1f33   : > { %v2227_v40 = vrot.slane %v2225_v6, 2 }
0x1f35   : > { %2228 = vrot.lane.b32.xlu1 %v2227_v40, %s3982_s18 }
0x1f39   : > { %2240 = vrot.lane.b32.xlu1 %v2239_v41, %s3983_s23 }
0x1fa7   : > { %v2229_v43 = vpop.permute.xlu1 %2228 }
0x1fa8   : > { %v4615_v44 = vadd.f32 %v2229_v43, %v4171_v0 }
0x1faa   : > { %3498 = vmatmul.mubr.msk.f32.vlgmr.msra.gmra.mxu1 %vm1803_vm8, %v4615_v44 }
0x1fab   : > { %v2241_v45 = vpop.permute.xlu1 %2240  ;;  %3512 = vmatpush3.msra.mxu1 %v4188_v5  ;;  %3519 = vmatprep.mubr.msk.f32.mxu1 %vm3979_vm7, %v3978_v42 }
0x1fac   : > { %v2243_v15 = vadd.f32 %v2241_v45, %v4176_v1  ;;  %3513 = vmatprep.subr.mxu1 %v3978_v42 }
0x1fad   : > { %3514 = vmatpush3.msra.mxu1 %v4186_v4 }
0x1fae   : > { %2338 = vrot.lane.b32.xlu1 %v2243_v15, %s3982_s18  ;;  %3515 = vmatprep.subr.mxu1 %v3978_v42 }
0x1faf   : > { %3516 = vmatpush3.msra.mxu1 %v4184_v3 }
0x1fb0   : > { %3517 = vmatprep.subr.mxu1 %v3978_v42 }
0x1fb1   : > { %3518 = vmatpush3.msra.mxu1 %v4178_v2 }
0x1fb2   : > { %2362 = vperm.xlu1 %3703, %v3253_v53   ;;  %3533 = vmatprep.subr.mxu1 %v3978_v42 }
0x1fb6   : > { %2365 = vrot.lane.b32.xlu1 %v4171_v0, %s3983_s23 }
0x1fba   : > { %2375 = vrot.lane.b32.xlu1 %v4176_v1, %s3982_s18 }
0x2020   : > { %v2339_v61 = vpop.permute.xlu1 %2338 }
0x202d   : > { %v2363_v8 = vpop.permute.xlu1 %2362 }
0x2031   : > { %v4642_v20 = vpop.permute.xlu1 %2365 }
0x2035   : > { %v4644_v16 = vpop.permute.xlu1 %2375 }
0x206a   : > { %v2325_v46 = vpop.f32.mrf.mxu1 }
0x206b   : > { %v2329_v47 = vadd.f32 %v2325_v46, %v4201_v12 }
0x206c   : > { %v3499_v52 = vpop.f32.mrf.mxu1 }
0x206d   : > { %3729 = vtanh.f32 %v2329_v47  ;;  %v3252_v51 = vmul.f32 -1.442695, %v2329_v47 }
0x206f   : > { %3731 = vpow2.f32 %v3252_v51 }
0x207a   : > { %v3730_v49 = vpop.eup %3729 }
0x207b   : > { %2343 = vrot.lane.b32.xlu0 %v3730_v49, %s3981_s30 }
0x207c   : > { %v3732_v55 = vpop.eup %3731 }
0x207d   : > { %v2333_v56 = vadd.f32 1.0, %v3732_v55 }
0x207f   : > { %3733 = vrcp.f32 %v2333_v56 }
0x208c   : > { %v3734_v57 = vpop.eup %3733 }
0x208d   : > { %v2341_v62 = vmul.f32 %v3734_v57, %v2339_v61 }
0x20ed   : > { %v2344_v58 = vpop.permute.xlu0 %2343 }
0x20ee   : > { %v2346_v59 = vmul.f32 %v3734_v57, %v2344_v58 }
0x20f0   : > { %2348 = vrot.lane.b32.xlu0 %v2346_v59, %s3982_s18 }
0x2162   : > { %v2349_v63 = vpop.permute.xlu0 %2348 }
0x2163   : > { %v2351_v7 = vadd.f32 %v2349_v63, %v2341_v62 }
0x2165   : > { %3735 = vtanh.f32 %v2351_v7  ;;  %v2378_v19 = vsub.f32 %v2351_v7, %v4644_v16 }
0x2167   : > { %v2379_v22 = vmul.f32 %v2378_v19, %v2363_v8 }
0x2172   : > { %v3736_v12 = vpop.eup %3735 }
0x2173   : > { %2354 = vrot.lane.b32.xlu0 %v3736_v12, %s3981_s30 }
0x21e5   : > { %v2355_v11 = vpop.permute.xlu0 %2354 }
0x21e6   : > { %v2357_v13 = vmul.f32 %v3734_v57, %v2355_v11 }
0x21e8   : > { %v2368_v18 = vsub.f32 %v2357_v13, %v4642_v20 }
0x21ea   : > { %v2369_v21 = vmul.f32 %v2368_v18, %v2363_v8 }
0x21ec   : > { %2371 = vrot.lane.b32.xlu0 %v2369_v21, %s3982_s18 }
0x21f0   : > { %2381 = vrot.lane.b32.xlu0 %v2379_v22, %s3983_s23 }
0x225e   : > { %v2372_v23 = vpop.permute.xlu0 %2371 }
0x225f   : > { %v4651_v24 = vadd.f32 %v2372_v23, %v4171_v0 }
0x2261   : > { %3509 = vmatmul.mubr.msk.f32.vlgmr.msra.gmra.mxu0 %vm1803_vm8, %v4651_v24 }
0x2262   : > { %v2382_v25 = vpop.permute.xlu0 %2381  ;;  %3523 = vmatpush3.msra.mxu0 %v4188_v5  ;;  %3530 = vmatprep.mubr.msk.f32.mxu0 %vm3979_vm7, %v3978_v42 }
0x2263   : > { %v2384_v28 = vadd.f32 %v2382_v25, %v4176_v1  ;;  %3524 = vmatprep.subr.mxu0 %v3978_v42 }
0x2264   : > { %3525 = vmatpush3.msra.mxu0 %v4186_v4 }
0x2265   : > { %v2472_v38 = vrot.slane %v2384_v28, 2  ;;  %3526 = vmatprep.subr.mxu0 %v3978_v42 }
0x2266   : > { %3527 = vmatpush3.msra.mxu0 %v4184_v3 }
0x2267   : > { %2473 = vrot.lane.b32.xlu0 %v2472_v38, %s3982_s18  ;;  %3528 = vmatprep.subr.mxu0 %v3978_v42 }
0x2268   : > { %3529 = vmatpush3.msra.mxu0 %v4178_v2 }
0x226b   : > { %2497 = vperm.xlu0 %3704, %v3256_v29  }
0x22d9   : > { %v2474_v40 = vpop.permute.xlu0 %2473 }
0x22e6   : > { %v2498_v15 = vpop.permute.xlu0 %2497 }
0x22e7   : > { %v2500_v46 = vrot.slane %v2498_v15, 2 }
0x2321   : > { %v2456_v26 = vpop.f32.mrf.mxu0 }
0x2322   : > { %v2461_v39 = vrot.slane %v2456_v26, 2 }
0x2323   : > { %v3510_v30 = vpop.f32.mrf.mxu0 }
0x2324   : > { %v2463_v31 = vadd.f32 %v2461_v39, %v4203_v14 }
0x2326   : > { %3737 = vtanh.f32 %v2463_v31  ;;  %v3255_v33 = vmul.f32 -1.442695, %v2463_v31 }
0x2328   : > { %3739 = vpow2.f32 %v3255_v33 }
0x2333   : > { %v3738_v32 = vpop.eup %3737 }
0x2334   : > { %2478 = vrot.lane.b32.xlu1 %v3738_v32, %s3981_s30 }
0x2335   : > { %v3740_v10 = vpop.eup %3739 }
0x2336   : > { %v2467_v34 = vadd.f32 1.0, %v3740_v10 }
0x2338   : > { %3741 = vrcp.f32 %v2467_v34 }
0x2345   : > { %v3742_v35 = vpop.eup %3741 }
0x2346   : > { %v2476_v41 = vmul.f32 %v3742_v35, %v2474_v40 }
0x23a6   : > { %v2479_v6 = vpop.permute.xlu1 %2478 }
0x23a7   : > { %v2481_v50 = vmul.f32 %v3742_v35, %v2479_v6 }
0x23a9   : > { %2483 = vrot.lane.b32.xlu1 %v2481_v50, %s3982_s18 }
0x241b   : > { %v2484_v43 = vpop.permute.xlu1 %2483 }
0x241c   : > { %v2486_v45 = vadd.f32 %v2484_v43, %v2476_v41 }
0x241e   : > { %3743 = vtanh.f32 %v2486_v45  ;;  %v2509_v53 = vsub.f32 %v2486_v45, %v4536_v17  ;;  %v3259_v17 = vld [vmem:[%s4875_s1 + $0x4] sm:$0x3] }
0x2420   : > { %v2510_v47 = vmul.f32 %v2509_v53, %v2500_v46 }
0x2422   : > { %v2512_v49 = vrot.slane %v2510_v47, 6 }
0x242b   : > { %v3744_v52 = vpop.eup %3743 }
0x242c   : > { %2489 = vrot.lane.b32.xlu1 %v3744_v52, %s3981_s30 }
0x2430   : > { %2513 = vrot.lane.b32.xlu1 %v2512_v49, %s3983_s23 }
0x249e   : > { %v2490_v51 = vpop.permute.xlu1 %2489 }
0x249f   : > { %v2492_v55 = vmul.f32 %v3742_v35, %v2490_v51 }
0x24a1   : > { %v2499_v56 = vsub.f32 %v2492_v55, %v4534_v9 }
0x24a2   : > { %v2514_v57 = vpop.permute.xlu1 %2513 }
0x24a3   : > { %v2516_v58 = vadd.f32 %v2514_v57, %v4176_v1  ;;  %v2502_v59 = vmul.f32 %v2500_v46, %v2499_v56 }
0x24a5   : > { %v2613_v61 = vrot.slane %v2516_v58, 4  ;;  %v2504_v62 = vrot.slane %v2502_v59, 6 }
0x24a7   : > { %2505 = vrot.lane.b32.xlu0 %v2504_v62, %s3982_s18  ;;  %2614 = vrot.lane.b32.xlu1 %v2613_v61, %s3982_s18 }
0x24ab   : > { %2638 = vperm.xlu1 %3703, %v3259_v17  }
0x2519   : > { %v2506_v63 = vpop.permute.xlu0 %2505 }
0x251a   : > { %v4683_v7 = vadd.f32 %v2506_v63, %v4171_v0 }
0x251c   : > { %3520 = vmatmul.mubr.msk.f32.vlgmr.msra.gmra.mxu1 %vm1803_vm8, %v4683_v7 }
0x251d   : > { %3534 = vmatpush3.msra.mxu1 %v4188_v5  ;;  %3541 = vmatprep.mubr.msk.f32.mxu1 %vm3979_vm7, %v3978_v42 }
0x251e   : > { %3535 = vmatprep.subr.mxu1 %v3978_v42 }
0x251f   : > { %3536 = vmatpush3.msra.mxu1 %v4186_v4 }
0x2520   : > { %3537 = vmatprep.subr.mxu1 %v3978_v42 }
0x2521   : > { %3538 = vmatpush3.msra.mxu1 %v4184_v3 }
0x2522   : > { %3539 = vmatprep.subr.mxu1 %v3978_v42 }
0x2523   : > { %3540 = vmatpush3.msra.mxu1 %v4178_v2  ;;  %v2615_v2 = vpop.permute.xlu1 %2614 }
0x2527   : > { %v2639_v25 = vpop.permute.xlu1 %2638 }
0x2528   : > { %v2641_v38 = vrot.slane %v2639_v25, 4 }
0x25dc   : > { %v2597_v9 = vpop.f32.mrf.mxu1 }
0x25dd   : > { %v2602_v12 = vrot.slane %v2597_v9, 4 }
0x25de   : > { %v3521_v8 = vpop.f32.mrf.mxu1 }
0x25df   : > { %v2604_v5 = vadd.f32 %v2602_v12, %v4203_v14  ;;  %v3984_v8 = vmov 1983009808  }
0x25e1   : > { %3745 = vtanh.f32 %v2604_v5  ;;  %v3258_v13 = vmul.f32 -1.442695, %v2604_v5  ;;  %v1946_v5 = vunpack.c.l.s4 %v3984_v8 }
0x25e3   : > { %3747 = vpow2.f32 %v3258_v13 }
0x25ee   : > { %v3746_v11 = vpop.eup %3745 }
0x25ef   : > { %2619 = vrot.lane.b32.xlu0 %v3746_v11, %s3981_s30  ;;  %v1948_v11 = vlaneseq }
0x25f0   : > { %v3748_v4 = vpop.eup %3747 }
0x25f1   : > { %v2608_v18 = vadd.f32 1.0, %v3748_v4 }
0x25f3   : > { %3749 = vrcp.f32 %v2608_v18 }
0x2600   : > { %v3750_v19 = vpop.eup %3749 }
0x2601   : > { %v2617_v42 = vmul.f32 %v3750_v19, %v2615_v2 }
0x2661   : > { %v2620_v3 = vpop.permute.xlu0 %2619 }
0x2662   : > { %v2622_v21 = vmul.f32 %v3750_v19, %v2620_v3  ;;  %v1949_v3 = vshrl.u32 %v1948_v11, 7 }
0x2664   : > { %2624 = vrot.lane.b32.xlu0 %v2622_v21, %s3982_s18 }
0x26d6   : > { %v2625_v22 = vpop.permute.xlu0 %2624 }
0x26d7   : > { %v2627_v23 = vadd.f32 %v2625_v22, %v2617_v42  ;;  %v2912_v42 = vld [vmem:[%s4875_s1] sm:$0x3] }
0x26d9   : > { %3751 = vtanh.f32 %v2627_v23  ;;  %v2650_v28 = vsub.f32 %v2627_v23, %v4573_v54  ;;  %v3262_v54 = vld [vmem:[%s4875_s1 + $0x2] sm:$0x3] }
0x26db   : > { %v2651_v29 = vmul.f32 %v2650_v28, %v2641_v38 }
0x26dd   : > { %v2653_v39 = vrot.slane %v2651_v29, 4 }
0x26e6   : > { %v3752_v26 = vpop.eup %3751 }
0x26e7   : > { %2630 = vrot.lane.b32.xlu0 %v3752_v26, %s3981_s30 }
0x26eb   : > { %2654 = vrot.lane.b32.xlu0 %v2653_v39, %s3983_s23 }
0x2759   : > { %v2631_v30 = vpop.permute.xlu0 %2630 }
0x275a   : > { %v2633_v31 = vmul.f32 %v3750_v19, %v2631_v30  ;;  %v1947_v19 = vunpack.c.0.s8 %v1946_v5 }
0x275c   : > { %v2640_v32 = vsub.f32 %v2633_v31, %v4570_v48  ;;  %v1950_v22 = vsub.s32 %v1947_v19, %v1949_v3 }
0x275d   : > { %v2655_v33 = vpop.permute.xlu0 %2654 }
0x275e   : > { %v2657_v10 = vadd.f32 %v2655_v33, %v4176_v1  ;;  %v2643_v34 = vmul.f32 %v2641_v38, %v2640_v32  ;;  %v2101_v23 = vrot.slane %v4579_v60, %v1950_v22 }
0x2760   : > { %v2754_v35 = vrot.slane %v2657_v10, 6  ;;  %v2645_v6 = vrot.slane %v2643_v34, 4 }
0x2762   : > { %2755 = vrot.lane.b32.xlu0 %v2754_v35, %s3982_s18  ;;  %2646 = vrot.lane.b32.xlu1 %v2645_v6, %s3982_s18 }
0x2766   : > { %2779 = vperm.xlu0 %3704, %v3262_v54  }
0x27d4   : > { %v2647_v50 = vpop.permute.xlu1 %2646  ;;  %v2756_v55 = vpop.permute.xlu0 %2755 }
0x27d5   : > { %v4710_v40 = vadd.f32 %v2647_v50, %v4171_v0 }
0x27d7   : > { %3531 = vmatmul.mubr.msk.f32.vlgmr.msra.gmra.mxu0 %vm1803_vm8, %v4710_v40 }
0x27e1   : > { %v2780_v59 = vpop.permute.xlu0 %2779 }
0x27e2   : > { %v2782_v62 = vrot.slane %v2780_v59, 6 }
0x2897   : > { %v2738_v48 = vpop.f32.mrf.mxu0 }
0x2898   : > { %v2743_v41 = vrot.slane %v2738_v48, 6 }
0x2899   : > { %v3532_v43 = vpop.f32.mrf.mxu0 }
0x289a   : > { %v2745_v45 = vadd.f32 %v2743_v41, %v4203_v14  ;;  %v2524_v41 = vrot.slane %v4683_v7, %v1950_v22  ;;  %v2665_v43 = vrot.slane %v4710_v40, %v1950_v22 }
0x289c   : > { %3753 = vtanh.f32 %v2745_v45  ;;  %v3261_v53 = vmul.f32 -1.442695, %v2745_v45 }
0x289e   : > { %3755 = vpow2.f32 %v3261_v53 }
0x28a9   : > { %v3754_v15 = vpop.eup %3753 }
0x28aa   : > { %2760 = vrot.lane.b32.xlu1 %v3754_v15, %s3981_s30 }
0x28ab   : > { %v3756_v46 = vpop.eup %3755 }
0x28ac   : > { %v2749_v47 = vadd.f32 1.0, %v3756_v46 }
0x28ae   : > { %3757 = vrcp.f32 %v2749_v47 }
0x28bb   : > { %v3758_v52 = vpop.eup %3757 }
0x28bc   : > { %v2758_v56 = vmul.f32 %v3758_v52, %v2756_v55 }
0x291c   : > { %v2761_v49 = vpop.permute.xlu1 %2760 }
0x291d   : > { %v2763_v51 = vmul.f32 %v3758_v52, %v2761_v49  ;;  %v2251_v49 = vrot.slane %v4615_v44, %v1950_v22 }
0x291f   : > { %2765 = vrot.lane.b32.xlu1 %v2763_v51, %s3982_s18 }
0x2991   : > { %v2766_v57 = vpop.permute.xlu1 %2765 }
0x2992   : > { %v2768_v58 = vadd.f32 %v2766_v57, %v2758_v56 }
0x2994   : > { %3759 = vtanh.f32 %v2768_v58  ;;  %v2791_v61 = vsub.f32 %v2768_v58, %v4608_v37 }
0x2996   : > { %v2792_v17 = vmul.f32 %v2791_v61, %v2782_v62 }
0x2998   : > { %v2794_v9 = vrot.slane %v2792_v17, 2 }
0x29a1   : > { %v3760_v63 = vpop.eup %3759 }
0x29a2   : > { %2771 = vrot.lane.b32.xlu1 %v3760_v63, %s3981_s30 }
0x29a6   : > { %2795 = vrot.lane.b32.xlu1 %v2794_v9, %s3983_s23 }
0x2a14   : > { %v2772_v12 = vpop.permute.xlu1 %2771 }
0x2a15   : > { %v2774_v13 = vmul.f32 %v3758_v52, %v2772_v12 }
0x2a17   : > { %v2781_v4 = vsub.f32 %v2774_v13, %v4606_v36  ;;  %v1951_v36 = vrot.slane %v4543_v27, %v1950_v22 }
0x2a18   : > { %v2796_v18 = vpop.permute.xlu1 %2795 }
0x2a19   : > { %v2798_v37 = vadd.f32 %v2796_v18, %v4176_v1  ;;  %v2784_v21 = vmul.f32 %v2782_v62, %v2781_v4 }
0x2a1b   : > { %2892 = vrot.lane.b32.xlu1 %v2798_v37, %s3982_s18  ;;  %v2786_v2 = vrot.slane %v2784_v21, 2 }
0x2a1d   : > { %2787 = vrot.lane.b32.xlu0 %v2786_v2, %s3982_s18 }
0x2a1f   : > { %2915 = vperm.xlu1 %3703, %v2912_v42  }
0x2a23   : > { %1952 = vrot.lane.b32.xlu1 %v1951_v36, %s3983_s23 }
0x2a27   : > { %2102 = vrot.lane.b32.xlu1 %v2101_v23, %s3981_s30 }
0x2a8d   : > { %v2893_v38 = vpop.permute.xlu1 %2892 }
0x2a8f   : > { %v2788_v25 = vpop.permute.xlu0 %2787 }
0x2a90   : > { %v2790_v28 = vadd.f32 %v2788_v25, %v4171_v0 }
0x2a92   : > { %3542 = vmatmul.mubr.msk.f32.vlgmr.msra.gmra.mxu1 %vm1803_vm8, %v2790_v28  ;;  %v2806_v53 = vrot.slane %v2790_v28, %v1950_v22 }
0x2a9a   : > { %v2916_v29 = vpop.permute.xlu1 %2915 }
0x2a9e   : > { %v1953_v26 = vpop.permute.xlu1 %1952 }
0x2a9f   : > { %1956 = vst.msk [vmem:[%s4205_s2 + $0x2] sm:$0x3] %vm1955_vm9, %v1953_v26 }
0x2aa2   : > { %v2103_v39 = vpop.permute.xlu1 %2102 }
0x2aa3   : > { %2106 = vst.msk [vmem:[%s4205_s2 + $0x2] sm:$0x3] %vm2105_vm10, %v2103_v39 }
0x2b52   : > { %v2879_v27 = vpop.f32.mrf.mxu1 }
0x2b53   : > { %v2883_v60 = vadd.f32 %v2879_v27, %v4203_v14 }
0x2b54   : > { %v3543_v30 = vpop.f32.mrf.mxu1 }
0x2b55   : > { %3761 = vtanh.f32 %v2883_v60  ;;  %v3264_v32 = vmul.f32 -1.442695, %v2883_v60 }
0x2b57   : > { %3763 = vpow2.f32 %v3264_v32 }
0x2b62   : > { %v3762_v31 = vpop.eup %3761 }
0x2b63   : > { %2897 = vrot.lane.b32.xlu0 %v3762_v31, %s3981_s30 }
0x2b64   : > { %v3764_v33 = vpop.eup %3763 }
0x2b65   : > { %v2887_v10 = vadd.f32 1.0, %v3764_v33 }
0x2b67   : > { %3765 = vrcp.f32 %v2887_v10 }
0x2b74   : > { %v3766_v34 = vpop.eup %3765 }
0x2b75   : > { %v2895_v54 = vmul.f32 %v3766_v34, %v2893_v38 }
0x2bd5   : > { %v2898_v35 = vpop.permute.xlu0 %2897 }
0x2bd6   : > { %v2900_v6 = vmul.f32 %v3766_v34, %v2898_v35 }
0x2bd8   : > { %2902 = vrot.lane.b32.xlu0 %v2900_v6, %s3982_s18 }
0x2c4a   : > { %v2903_v50 = vpop.permute.xlu0 %2902 }
0x2c4b   : > { %v2905_v48 = vadd.f32 %v2903_v50, %v2895_v54 }
0x2c4d   : > { %3767 = vtanh.f32 %v2905_v48  ;;  %v2925_v45 = vsub.f32 %v2905_v48, %v4644_v16 }
0x2c4f   : > { %v2926_v15 = vmul.f32 %v2925_v45, %v2916_v29 }
0x2c5a   : > { %v3768_v14 = vpop.eup %3767 }
0x2c5b   : > { %2908 = vrot.lane.b32.xlu0 %v3768_v14, %s3981_s30 }
0x2c5f   : > { %2525 = vrot.lane.b32.xlu0 %v2524_v41, %s3983_s23 }
0x2c63   : > { %2666 = vrot.lane.b32.xlu0 %v2665_v43, %s3981_s30 }
0x2c67   : > { %2928 = vrot.lane.b32.xlu0 %v2926_v15, %s3983_s23 }
0x2c6b   : > { %2807 = vrot.lane.b32.xlu0 %v2806_v53, %s3982_s18 }
0x2ccd   : > { %v2909_v46 = vpop.permute.xlu0 %2908 }
0x2cce   : > { %v2911_v47 = vmul.f32 %v3766_v34, %v2909_v46 }
0x2cd0   : > { %v2918_v7 = vsub.f32 %v2911_v47, %v4642_v20 }
0x2cd1   : > { %v2526_v52 = vpop.permute.xlu0 %2525 }
0x2cd2   : > { %2528 = vst.msk [vmem:[%s4205_s2] sm:$0x3] %vm1955_vm9, %v2526_v52  ;;  %v2919_v40 = vmul.f32 %v2918_v7, %v2916_v29 }
0x2cd4   : > { %2921 = vrot.lane.b32.xlu1 %v2919_v40, %s3982_s18 }
0x2cd5   : > { %v2667_v16 = vpop.permute.xlu0 %2666 }
0x2cd6   : > { %2669 = vst.msk [vmem:[%s4205_s2] sm:$0x3] %vm2105_vm10, %v2667_v16 }
0x2cd8   : > { %2252 = vrot.lane.b32.xlu1 %v2251_v49, %s3982_s18 }
0x2cd9   : > { %v2929_v51 = vpop.permute.xlu0 %2928 }
0x2cda   : > { %v2931_v20 = vadd.f32 %v2929_v51, %v4176_v1 }
0x2cdc   : > { %2934 = vst.msk [vmem:[#allocation3] sm:$0x3] %vm553_vm0, %v2931_v20  ;;  %2939 = vst.msk [vmem:[%s4213_s9] sm:$0x3] %vm553_vm0, %v2931_v20 }
0x2cdd   : > { %v2808_v55 = vpop.permute.xlu0 %2807 }
0x2cde   : > { %2810 = vst.msk [vmem:[%s4205_s2] sm:$0x3] %vm2255_vm11, %v2808_v55 }
0x2d46   : > { %v2922_v56 = vpop.permute.xlu1 %2921 }
0x2d47   : > { %v2924_v57 = vadd.f32 %v2922_v56, %v4171_v0 }
0x2d49   : > { %2932 = vst.msk [vmem:[%s4205_s2] sm:$0x3] %vm553_vm0, %v2924_v57  ;;  %2933 = vst.msk [vmem:[#allocation2] sm:$0x3] %vm553_vm0, %v2924_v57 }
0x2d4a   : > { %2938 = vst.msk [vmem:[%s4209_s7] sm:$0x3] %vm553_vm0, %v2924_v57  ;;  %v2253_v44 = vpop.permute.xlu1 %2252 }
0x2d4b   : > { %2256 = vst.msk [vmem:[%s4205_s2 + $0x2] sm:$0x3] %vm2255_vm11, %v2253_v44 }
0x2d4c   : > { %2386 = vst.msk [vmem:[%s4205_s2 + $0x2] sm:$0x3] %vm553_vm0, %v4651_v24 }
0x2d4d PF: > { %s2945_s30 = sand.u32 1, %s4069_s15   ;;  %s3270_s18 = sshll.u32 %s3957_s12, 5 }
0x2d4e   : > { %s4778_s27 = scalar_lea.hbm %s4882_s8, %s3270_s18  ;;  %s2984_s28 = sshll.u32 %s4209_s7, 4  ;;  %s2985_s28 = int_to_ptr.vmem [resolvable:$true] %s2984_s28 }
0x2d4f   : > { %s3276_s17 = sshll.u32 %s3957_s12, 6  ;;  %s4782_s21 = scalar_lea.sflag [#allocation11], %s2945_s30 }
0x2d50   : > { %s3825_s19 = scalar_lea.vmem %s2985_s28, 32  ;;  %s3985_s11 = smov [#allocation10]  }
0x2d51   : > { %p3826_p5 = scmp.ne.s32.totalorder %s2985_s28, %s3825_s19  ;;  %s3829_s16 = sshll.u32 %s3985_s11, 4  ;;  %s3830_s16 = int_to_ptr.vmem [resolvable:$false] %s3829_s16 }
0x2d52   : > { %s3831_s15 = scalar_lea.vmem %s3830_s16, 64  ;;  %p3832_p7 = scmp.lt.s32.totalorder %s2985_s28, %s3830_s16 }
0x2d53   : > { %p3827_p6 = pnand %p3826_p5, %p4093_p9  ;;  %p3833_p1 = scmp.lt.s32.totalorder %s3831_s15, %s3825_s19 }
0x2d55   : > { %p3828_p4 = pneg %p3827_p6  ;;  %p3834_p10 = por %p3833_p1, %p3832_p7 }
0x2d57   : > { %p3835_p13 = pnand %p3834_p10, %p3828_p4 }
0x2d59   : > { %3838 = shalt.err (!%p3835_p13)
}
0x2d5a   : > { %s3839_s7 = scalar_lea.hbm %s4778_s27, 32  ;;  %s3843_s29 = scalar_lea.hbm %s4882_s8, 64 }
0x2d5b   : > { %p3840_p3 = scmp.ne.s32.totalorder %s4778_s27, %s3839_s7  ;;  %p3844_p2 = scmp.lt.s32.totalorder %s4778_s27, %s4882_s8 }
0x2d5c   : > { %p3845_p5 = scmp.lt.s32.totalorder %s3843_s29, %s3839_s7 }
0x2d5d   : > { %p3841_p8 = pnand %p3840_p3, %p4093_p9 }
0x2d5e   : > { %p3846_p6 = por %p3845_p5, %p3844_p2 }
0x2d5f   : > { %p3842_p0 = pneg %p3841_p8 }
0x2d61   : > { %p3847_p4 = pnand %p3846_p6, %p3842_p0 }
0x2d63   : > { %3850 = shalt.err (!%p3847_p4)
}
0x2d64   : > { %3549 = dma.vmem_to_hbm [thread:$0]  (%p4093_p9), %s2985_s28, 32, %s4778_s27, %s4782_s21  }
0x2d65   : > { %s4908_s11 = sld [smem:[#allocation24_spill]]  ;;  %s2971_s20 = sshll.u32 %s4205_s2, 4  ;;  %s2972_s20 = int_to_ptr.vmem [resolvable:$true] %s2971_s20 }
0x2d66   : > { %s4910_s29 = sld [smem:[#allocation25_spill]]  ;;  %s2941_s23 = scalar_lea.sflag [#allocation6], %s4152_s24 }
0x2d67   : > { %s3851_s0 = scalar_lea.vmem %s2972_s20, 64  ;;  %s3986_s27 = smov [#allocation9]  }
0x2d68   : > { %p3852_p7 = scmp.ne.s32.totalorder %s2972_s20, %s3851_s0  ;;  %s3855_s28 = sshll.u32 %s3986_s27, 4  ;;  %s3856_s28 = int_to_ptr.vmem [resolvable:$false] %s3855_s28 }
0x2d69   : > { %s3857_s26 = scalar_lea.vmem %s3856_s28, 128  ;;  %p3858_p13 = scmp.lt.s32.totalorder %s2972_s20, %s3856_s28 }
0x2d6a   : > { %p3853_p1 = pnand %p3852_p7, %p4093_p9  ;;  %p3859_p3 = scmp.lt.s32.totalorder %s3857_s26, %s3851_s0 }
0x2d6b   : > { %s4909_s16 = smov %s4908_s11  ;;  %s4804_s15 = scalar_lea.hbm %s4908_s11, %s3276_s17 }
0x2d6c   : > { %s4812_s30 = scalar_lea.hbm %s4910_s29, %s3270_s18  ;;  %p3854_p10 = pneg %p3853_p1 }
0x2d6d   : > { %p3860_p8 = por %p3859_p3, %p3858_p13 }
0x2d6f   : > { %p3861_p0 = pnand %p3860_p8, %p3854_p10 }
0x2d71   : > { %3864 = shalt.err (!%p3861_p0)
}
0x2d72   : > { %s3865_s12 = scalar_lea.hbm %s4804_s15, 64  ;;  %s3869_s18 = scalar_lea.hbm %s4909_s16, 128 }
0x2d73   : > { %p3866_p2 = scmp.ne.s32.totalorder %s4804_s15, %s3865_s12  ;;  %p3870_p4 = scmp.lt.s32.totalorder %s4804_s15, %s4909_s16 }
0x2d74   : > { %p3871_p7 = scmp.lt.s32.totalorder %s3869_s18, %s3865_s12 }
0x2d75   : > { %p3867_p5 = pnand %p3866_p2, %p4093_p9 }
0x2d76   : > { %p3872_p1 = por %p3871_p7, %p3870_p4 }
0x2d77   : > { %p3868_p6 = pneg %p3867_p5 }
0x2d79   : > { %p3873_p10 = pnand %p3872_p1, %p3868_p6 }
0x2d7b   : > { %3876 = shalt.err (!%p3873_p10)
}
0x2d7c   : > { %3548 = dma.vmem_to_hbm [thread:$0]  (%p4093_p9), %s2972_s20, 64, %s4804_s15, %s2941_s23  }
0x2d7d   : > { %s2997_s0 = sshll.u32 %s4213_s9, 4  ;;  %s3987_s7 = smov [#allocation12]   ;;  %s2998_s0 = int_to_ptr.vmem [resolvable:$true] %s2997_s0 }
0x2d7e   : > { %s3877_s11 = scalar_lea.vmem %s2998_s0, 32  ;;  %s3881_s25 = sshll.u32 %s3987_s7, 4  ;;  %s3882_s25 = int_to_ptr.vmem [resolvable:$false] %s3881_s25 }
0x2d7f   : > { %p3878_p13 = scmp.ne.s32.totalorder %s2998_s0, %s3877_s11  ;;  %s3883_s27 = scalar_lea.vmem %s3882_s25, 64 }
0x2d80   : > { %p3884_p0 = scmp.lt.s32.totalorder %s2998_s0, %s3882_s25  ;;  %p3885_p2 = scmp.lt.s32.totalorder %s3883_s27, %s3877_s11 }
0x2d81   : > { %p3879_p3 = pnand %p3878_p13, %p4093_p9 }
0x2d82   : > { %p3886_p5 = por %p3885_p2, %p3884_p0 }
0x2d83   : > { %p3880_p8 = pneg %p3879_p3 }
0x2d85   : > { %p3887_p6 = pnand %p3886_p5, %p3880_p8 }
0x2d87   : > { %3890 = shalt.err (!%p3887_p6)
}
0x2d88   : > { %s3891_s9 = scalar_lea.hbm %s4812_s30, 32  ;;  %s3895_s23 = scalar_lea.hbm %s4910_s29, 64 }
0x2d89   : > { %p3892_p4 = scmp.ne.s32.totalorder %s4812_s30, %s3891_s9  ;;  %p3896_p10 = scmp.lt.s32.totalorder %s4812_s30, %s4910_s29 }
0x2d8a   : > { %p3897_p13 = scmp.lt.s32.totalorder %s3895_s23, %s3891_s9 }
0x2d8b   : > { %p3893_p7 = pnand %p3892_p4, %p4093_p9 }
0x2d8c   : > { %p3898_p3 = por %p3897_p13, %p3896_p10 }
0x2d8d   : > { %p3894_p1 = pneg %p3893_p7 }
0x2d8f   : > { %p3899_p8 = pnand %p3898_p3, %p3894_p1 }
0x2d91   : > { %3902 = shalt.err (!%p3899_p8)
}
0x2d92   : > { %3550 = dma.vmem_to_hbm [thread:$0]  (%p4093_p9), %s2998_s0, 32, %s4812_s30, %s4782_s21  }
0x2d93 PF: > { %s4911_s12 = sld [smem:[#allocation17_spill]]  ;;  %p3562_p0 = pnand %p3199_p12, %p4102_p11 }
0x2d95   : > { %p3563_p2 = pneg %p3562_p0 }
0x2d99   : > { %s3009_s2 = sand.u32 1, %s4911_s12  }
0x2d9a   : > { %s3010_s18 = scalar_lea.sflag [#allocation6], %s3009_s2 }
0x2d9b   : > { %3936 = dma.done.wait (%p3563_p2), %s3010_s18, 64  }
0x2d9c   : > { %3938 = vsyncadd (%p3563_p2), %s3010_s18, 4294967232  ;;  %s4913_s17 = sadd.s32 4294967294, %s3965_s14  }
0x2d9d   : > { %s3018_s19 = sand.u32 1, %s4913_s17  }
0x2d9e   : > { %s3019_s11 = scalar_lea.sflag [#allocation11], %s3018_s19 }
0x2d9f   : > { %3940 = dma.done.wait (%p3563_p2), %s3019_s11, 64  }
0x2da0   : > { %3942 = vsyncadd (%p3563_p2), %s3019_s11, 4294967232  ;;  %s32_s14 = sadd.s32 1, %s3965_s14   ;;  %s4914_s22 = sld [smem:[#allocation18_spill]] }
0x2da1   : > { %p29_p9 = scmp.ge.s32.totalorder %s32_s14, 4   ;;  %s4915_s11 = sld [smem:[#allocation20_spill]] }
0x2da2   : > { %s4916_s21 = sld [smem:[#allocation19_spill]]  ;;  %s4917_s30 = smov %s3949_s10 }
0x2da3   : > { %s4919_s12 = smov %s3961_s13 }
0x2da4   :  { %31 = sbr.rel (!%p29_p9) target bundleno = 15 (0xf), region = 181 }
0x2da6   : > { %s4918_s10 = smov %s4914_s22 }
0x2da8   : > { %s4920_s13 = smov %s4916_s21 }
0x2da9   :  { %3033 = vsyncpa [#allocation5], 1 }
0x2daa   :  { %3035 = vsyncpa [#allocation5 + $0x1], 1 }
0x2dab   :  { %3036 = vsyncpa [#allocation8], 1 }
0x2dac   :  { %3038 = vsyncpa [#allocation8 + $0x1], 1 }
0x2dad   :  { %3039 = vsyncpa [#allocation6], 1 }
0x2dae   :  { %3041 = vsyncpa [#allocation6 + $0x1], 1 }
0x2daf   :  { %3042 = vsyncpa [#allocation11], 1 }
0x2db0   :  { %3044 = vsyncpa [#allocation11 + $0x1], 1 }

</bundles_post_ra>
